<compile_context>
chip_gen: v5e
topology: v5e:2x2
jax: 0.10.0
libtpu: 0.0.40
codegen_flags: <defaults>
</compile_context>

<pallas_src>
import functools

import jax
import jax.numpy as jnp
from jax.experimental import pallas as pl
from jax.experimental.pallas import tpu as pltpu


def _conv_block_kernel(x_ref, w_ref, shift_ref, out_ref, patch_ref, *,
                       TH, OWc, KH, KW, Cin, Cpad, stride, negative_slope,
                       ispool):
    """One (batch element, output-row tile) per grid step.

    x_ref     : (1, Hp, Wp, Cin)   full padded NHWC input of this image (bf16)
    w_ref     : (KH*KW*Cin, Cpad)  im2col weight, BN scale folded in (bf16)
    shift_ref : (1, Cpad)          folded BN shift incl. conv bias (f32)
    out_ref   : (1, THp, OWp, Cpad) output tile (lane-dense channels, f32)
    patch_ref : (TH, OWc, KH*KW*Cin) bf16 VMEM scratch for the im2col patch
    """
    r = pl.program_id(1)
    row0 = r * TH * stride            # first padded-input row of this tile

    # Build the im2col patch with KH*KW shifted ref copies into bf16 scratch.
    # TODO(synk): lane-sparse when Cin < 128 (see header); lane-dense for
    # Cin >= 128.
    for kh in range(KH):
        for kw in range(KW):
            if stride == 1:
                piece = x_ref[0, pl.ds(row0 + kh, TH), pl.ds(kw, OWc), :]
            else:
                # stride>1 path (strided pl.ds on H and W); untested by the
                # demo config below.
                piece = x_ref[0, pl.ds(row0 + kh, TH, stride),
                              pl.ds(kw, OWc, stride), :]
            c0 = (kh * KW + kw) * Cin
            patch_ref[:, :, c0:c0 + Cin] = piece

    K = KH * KW * Cin
    patch = patch_ref[...].reshape(TH * OWc, K)

    # Single MXU matmul: bf16 x bf16 -> f32 accumulation.
    acc = jnp.dot(patch, w_ref[...], preferred_element_type=jnp.float32)
    y = acc.reshape(TH, OWc, Cpad)

    if ispool:
        # MaxPool2d(2,2) on the raw accumulator (valid: shift is per-channel
        # constant, LeakyReLU monotone -> both commute with max).  Row pairs
        # via a leading-dim split (pure VPU max); column pairs need one small
        # sublane re-blocking; the 128-lane channel axis stays dense.
        y = y.reshape(TH // 2, 2, OWc, Cpad).max(axis=1)
        y = y.reshape(TH // 2, OWc // 2, 2, Cpad).max(axis=2)

    # Folded BN shift (+ conv bias) and LeakyReLU on the (possibly 4x smaller)
    # pooled tensor.  max(y, a*y) == LeakyReLU(y) for a in (0, 1).
    y = y + shift_ref[0]
    y = jnp.maximum(y, negative_slope * y)
    out_ref[0] = y.astype(out_ref.dtype)


def _vmem_capacity_bytes():
    """Physical VMEM per TensorCore; conservative fallback if query fails."""
    try:
        return int(pltpu.get_tpu_info().vmem_capacity_bytes)
    except Exception:
        return 64 * 1024 * 1024          # v7x-sized fallback (smallest listed)


def _pick_row_tile(OHc, OWc, K, Cpad, ispool, fixed_bytes, budget_bytes):
    """Conv output rows per grid step: largest divisor of OHc (even when
    pooling) whose per-step VMEM footprint fits the byte budget."""
    step = 2 if ispool else 1
    divisors = [d for d in range(step, OHc + 1, step) if OHc % d == 0]
    OWp = OWc // 2 if ispool else OWc
    best = divisors[0]                   # smallest divisor as fallback
    for d in divisors:
        THp = d // 2 if ispool else d
        patch_b = d * OWc * K * 2                  # bf16 im2col scratch
        acc_b = d * OWc * Cpad * 4                 # f32 matmul result value
        out_b = 2 * THp * OWp * Cpad * 4           # double-buffered out block
        if fixed_bytes + patch_b + acc_b + out_b <= budget_bytes:
            best = max(best, d)
    return best


def conv_block(x_nchw, weight, bias, gamma, beta, running_mean, running_var,
               *, stride, padding, ispool, eps=1e-5, negative_slope=0.01):
    """Pallas ConvBlock (eval-mode BN). x_nchw: (N, Cin, H, W) -> NCHW out."""
    N, Cin, H, W = x_nchw.shape
    Cout, _, KH, KW = weight.shape
    OH = (H + 2 * padding - KH) // stride + 1
    OW = (W + 2 * padding - KW) // stride + 1
    if ispool:
        # MaxPool2d(2,2) floors odd dims (PyTorch behavior): only the first
        # 2*OHp rows / 2*OWp cols of the conv output are ever consumed.
        OHp_total, OWp = OH // 2, OW // 2
        OHc, OWc = 2 * OHp_total, 2 * OWp
    else:
        OHp_total, OWp = OH, OW
        OHc, OWc = OH, OW
    Hp, Wp = H + 2 * padding, W + 2 * padding

    LANE = 128
    Cpad = ((Cout + LANE - 1) // LANE) * LANE     # lane-dense output channels
    K = KH * KW * Cin

    # ---- glue (plain JAX): layout + parameter folding ---------------------
    # TODO(synk): keep NHWC (+Cpad, bf16) activations end-to-end and fold the
    # zero-pad into the kernel to avoid these per-layer HBM passes.
    x = x_nchw.astype(jnp.bfloat16)
    x = jnp.transpose(x, (0, 2, 3, 1))                                # NHWC
    x = jnp.pad(x, ((0, 0), (padding, padding), (padding, padding), (0, 0)))

    scale = gamma / jnp.sqrt(running_var + eps)                       # (Cout,)
    shift = (bias - running_mean) * scale + beta                      # (Cout,)
    w = jnp.transpose(weight, (2, 3, 1, 0)).astype(jnp.float32)       # KH,KW,Cin,Cout
    w = w * scale[None, None, None, :]            # fold BN scale into weights
    w = w.reshape(K, Cout)
    w = jnp.pad(w, ((0, 0), (0, Cpad - Cout))).astype(jnp.bfloat16)
    shift_p = jnp.pad(shift.astype(jnp.float32), (0, Cpad - Cout)).reshape(1, Cpad)

    # ---- byte-budgeted tiling ---------------------------------------------
    vmem_cap = _vmem_capacity_bytes()
    budget = int(vmem_cap * 0.70)                 # headroom for compiler temps
    fixed_bytes = (2 * Hp * Wp * Cin * 2          # double-buffered bf16 image
                   + 2 * K * Cpad * 2             # double-buffered bf16 weight
                   + 2 * Cpad * 4)                # shift
    TH = _pick_row_tile(OHc, OWc, K, Cpad, ispool, fixed_bytes, budget)
    RT = OHc // TH
    THp = TH // 2 if ispool else TH

    kernel = functools.partial(
        _conv_block_kernel, TH=TH, OWc=OWc, KH=KH, KW=KW, Cin=Cin, Cpad=Cpad,
        stride=stride, negative_slope=negative_slope, ispool=ispool)

    out_nhwc = pl.pallas_call(
        kernel,
        out_shape=jax.ShapeDtypeStruct((N, OHp_total, OWp, Cpad), jnp.float32),
        grid=(N, RT),     # batch axis first so a megacore split lands on n
        in_specs=[
            # Full padded image per batch element; the block index is constant
            # across the row-tile axis so it is only DMA'd once per image.
            pl.BlockSpec((1, Hp, Wp, Cin), lambda n, r: (n, 0, 0, 0)),
            pl.BlockSpec((K, Cpad), lambda n, r: (0, 0)),
            pl.BlockSpec((1, Cpad), lambda n, r: (0, 0)),
        ],
        out_specs=pl.BlockSpec((1, THp, OWp, Cpad), lambda n, r: (n, r, 0, 0)),
        scratch_shapes=[pltpu.VMEM((TH, OWc, K), jnp.bfloat16)],
        compiler_params=pltpu.CompilerParams(
            dimension_semantics=("parallel", "parallel"),
            vmem_limit_bytes=int(vmem_cap * 0.75)),
    )(x, w, shift_p)

    if Cpad != Cout:
        out_nhwc = out_nhwc[..., :Cout]
    # TODO(synk): emit bf16 output + keep NHWC/Cpad downstream to cut the
    # small-Cout writeback inflation; kept f32 NCHW for module parity.
    return jnp.transpose(out_nhwc, (0, 3, 1, 2))                      # NCHW


def _reference(x_nchw, weight, bias, gamma, beta, running_mean, running_var,
               *, stride, padding, ispool, eps=1e-5, negative_slope=0.01):
    """Pure-JAX f32 reference (inference-mode BN) for correctness checking."""
    y = jax.lax.conv_general_dilated(
        x_nchw, weight, window_strides=(stride, stride),
        padding=[(padding, padding), (padding, padding)],
        dimension_numbers=("NCHW", "OIHW", "NCHW"))
    y = y + bias.reshape(1, -1, 1, 1)
    y = (y - running_mean.reshape(1, -1, 1, 1)) / jnp.sqrt(
        running_var.reshape(1, -1, 1, 1) + eps)
    y = y * gamma.reshape(1, -1, 1, 1) + beta.reshape(1, -1, 1, 1)
    y = jnp.where(y > 0, y, negative_slope * y)
    if ispool:
        y = jax.lax.reduce_window(
            y, -jnp.inf, jax.lax.max,
            window_dimensions=(1, 1, 2, 2), window_strides=(1, 1, 2, 2),
            padding="VALID")
    return y


if __name__ == "__main__":
    # Small ConvBlock config: in=4, out=8, k=3, s=1, p=1, ispool=True
    N, Cin, H, W = 2, 4, 16, 16
    Cout, Ksz, stride, padding, ispool = 8, 3, 1, 1, True

    key = jax.random.PRNGKey(0)
    kx, kw, kb, kg, kbt, km, kv = jax.random.split(key, 7)

    x = jax.random.normal(kx, (N, Cin, H, W), jnp.float32)
    weight = jax.random.normal(kw, (Cout, Cin, Ksz, Ksz), jnp.float32) * 0.1
    bias = jax.random.normal(kb, (Cout,), jnp.float32) * 0.1
    gamma = 1.0 + 0.1 * jax.random.normal(kg, (Cout,), jnp.float32)
    beta = 0.1 * jax.random.normal(kbt, (Cout,), jnp.float32)
    running_mean = 0.1 * jax.random.normal(km, (Cout,), jnp.float32)
    running_var = 1.0 + 0.1 * jax.random.uniform(kv, (Cout,), jnp.float32)

    out = conv_block(x, weight, bias, gamma, beta, running_mean, running_var,
                     stride=stride, padding=padding, ispool=ispool)
    out = jax.block_until_ready(out)

    ref = _reference(x, weight, bias, gamma, beta, running_mean, running_var,
                     stride=stride, padding=padding, ispool=ispool)

    assert out.shape == (N, Cout, H // 2, W // 2), out.shape
    # bf16 operands (f32 accumulate) -> loosened tolerance vs f32 reference.
    err = float(jnp.max(jnp.abs(out - ref)))
    assert jnp.allclose(out, ref, rtol=2e-2, atol=2e-2), err

    print("KERNEL_OK")
</pallas_src>

<mosaic_0001>
module attributes {stable_mosaic.version = 11 : i64} {
  func.func @_conv_block_kernel(%arg0: i32, %arg1: i32, %arg2: memref<1x18x18x4xbf16, #tpu.memory_space<vmem>>, %arg3: memref<36x128xbf16, #tpu.memory_space<vmem>>, %arg4: memref<1x128xf32, #tpu.memory_space<vmem>>, %arg5: memref<1x8x8x128xf32, #tpu.memory_space<vmem>>, %arg6: memref<16x16x36xbf16, #tpu.memory_space<vmem>>) attributes {dimension_semantics = [#tpu.dimension_semantics<parallel>, #tpu.dimension_semantics<parallel>], iteration_bounds = array<i64: 2, 1>, scalar_prefetch = 0 : i64, scratch_operands = 1 : i64, tpu.core_type = #tpu.core_type<tc>, window_params = [{transform_indices = @transform_0, window_bounds = array<i64: 1, 18, 18, 4>}, {pipeline_mode = #tpu.pipeline_mode<synchronous>, transform_indices = @transform_1, window_bounds = array<i64: 36, 128>}, {pipeline_mode = #tpu.pipeline_mode<synchronous>, transform_indices = @transform_2, window_bounds = array<i64: 1, 128>}, {transform_indices = @transform_3, window_bounds = array<i64: 1, 8, 8, 128>}]} {
    %c16_i32 = arith.constant 16 : i32
    %0 = arith.muli %arg1, %c16_i32 : i32
    %c1_i32 = arith.constant 1 : i32
    %1 = arith.muli %0, %c1_i32 : i32
    %c0_i32 = arith.constant 0 : i32
    %2 = arith.addi %1, %c0_i32 : i32
    %c0 = arith.constant 0 : index
    %3 = arith.index_cast %2 : i32 to index
    %c0_0 = arith.constant 0 : index
    %c0_1 = arith.constant 0 : index
    %4 = vector.load %arg2[%c0, %3, %c0_0, %c0_1] : memref<1x18x18x4xbf16, #tpu.memory_space<vmem>>, vector<1x16x16x4xbf16>
    %5 = vector.shape_cast %4 : vector<1x16x16x4xbf16> to vector<16x16x4xbf16>
    %c0_2 = arith.constant 0 : index
    %c0_3 = arith.constant 0 : index
    %c0_4 = arith.constant 0 : index
    %6 = vector.load %arg6[%c0_2, %c0_3, %c0_4] : memref<16x16x36xbf16, #tpu.memory_space<vmem>>, vector<16x16x4xbf16>
    tpu.vector_store %arg6[%c0_2, %c0_3, %c0_4], %5 {strides = array<i32>} : memref<16x16x36xbf16, #tpu.memory_space<vmem>>, vector<16x16x4xbf16>,
    %c0_i32_5 = arith.constant 0 : i32
    %7 = arith.addi %1, %c0_i32_5 : i32
    %c0_6 = arith.constant 0 : index
    %8 = arith.index_cast %7 : i32 to index
    %c1 = arith.constant 1 : index
    %c0_7 = arith.constant 0 : index
    %9 = vector.load %arg2[%c0_6, %8, %c1, %c0_7] : memref<1x18x18x4xbf16, #tpu.memory_space<vmem>>, vector<1x16x16x4xbf16>
    %10 = vector.shape_cast %9 : vector<1x16x16x4xbf16> to vector<16x16x4xbf16>
    %c0_8 = arith.constant 0 : index
    %c0_9 = arith.constant 0 : index
    %c4 = arith.constant 4 : index
    %11 = vector.load %arg6[%c0_8, %c0_9, %c4] : memref<16x16x36xbf16, #tpu.memory_space<vmem>>, vector<16x16x4xbf16>
    tpu.vector_store %arg6[%c0_8, %c0_9, %c4], %10 {strides = array<i32>} : memref<16x16x36xbf16, #tpu.memory_space<vmem>>, vector<16x16x4xbf16>,
    %c0_i32_10 = arith.constant 0 : i32
    %12 = arith.addi %1, %c0_i32_10 : i32
    %c0_11 = arith.constant 0 : index
    %13 = arith.index_cast %12 : i32 to index
    %c2 = arith.constant 2 : index
    %c0_12 = arith.constant 0 : index
    %14 = vector.load %arg2[%c0_11, %13, %c2, %c0_12] : memref<1x18x18x4xbf16, #tpu.memory_space<vmem>>, vector<1x16x16x4xbf16>
    %15 = vector.shape_cast %14 : vector<1x16x16x4xbf16> to vector<16x16x4xbf16>
    %c0_13 = arith.constant 0 : index
    %c0_14 = arith.constant 0 : index
    %c8 = arith.constant 8 : index
    %16 = vector.load %arg6[%c0_13, %c0_14, %c8] : memref<16x16x36xbf16, #tpu.memory_space<vmem>>, vector<16x16x4xbf16>
    tpu.vector_store %arg6[%c0_13, %c0_14, %c8], %15 {strides = array<i32>} : memref<16x16x36xbf16, #tpu.memory_space<vmem>>, vector<16x16x4xbf16>,
    %c1_i32_15 = arith.constant 1 : i32
    %17 = arith.addi %1, %c1_i32_15 : i32
    %c0_16 = arith.constant 0 : index
    %18 = arith.index_cast %17 : i32 to index
    %c0_17 = arith.constant 0 : index
    %c0_18 = arith.constant 0 : index
    %19 = vector.load %arg2[%c0_16, %18, %c0_17, %c0_18] : memref<1x18x18x4xbf16, #tpu.memory_space<vmem>>, vector<1x16x16x4xbf16>
    %20 = vector.shape_cast %19 : vector<1x16x16x4xbf16> to vector<16x16x4xbf16>
    %c0_19 = arith.constant 0 : index
    %c0_20 = arith.constant 0 : index
    %c12 = arith.constant 12 : index
    %21 = vector.load %arg6[%c0_19, %c0_20, %c12] : memref<16x16x36xbf16, #tpu.memory_space<vmem>>, vector<16x16x4xbf16>
    tpu.vector_store %arg6[%c0_19, %c0_20, %c12], %20 {strides = array<i32>} : memref<16x16x36xbf16, #tpu.memory_space<vmem>>, vector<16x16x4xbf16>,
    %c1_i32_21 = arith.constant 1 : i32
    %22 = arith.addi %1, %c1_i32_21 : i32
    %c0_22 = arith.constant 0 : index
    %23 = arith.index_cast %22 : i32 to index
    %c1_23 = arith.constant 1 : index
    %c0_24 = arith.constant 0 : index
    %24 = vector.load %arg2[%c0_22, %23, %c1_23, %c0_24] : memref<1x18x18x4xbf16, #tpu.memory_space<vmem>>, vector<1x16x16x4xbf16>
    %25 = vector.shape_cast %24 : vector<1x16x16x4xbf16> to vector<16x16x4xbf16>
    %c0_25 = arith.constant 0 : index
    %c0_26 = arith.constant 0 : index
    %c16 = arith.constant 16 : index
    %26 = vector.load %arg6[%c0_25, %c0_26, %c16] : memref<16x16x36xbf16, #tpu.memory_space<vmem>>, vector<16x16x4xbf16>
    tpu.vector_store %arg6[%c0_25, %c0_26, %c16], %25 {strides = array<i32>} : memref<16x16x36xbf16, #tpu.memory_space<vmem>>, vector<16x16x4xbf16>,
    %c1_i32_27 = arith.constant 1 : i32
    %27 = arith.addi %1, %c1_i32_27 : i32
    %c0_28 = arith.constant 0 : index
    %28 = arith.index_cast %27 : i32 to index
    %c2_29 = arith.constant 2 : index
    %c0_30 = arith.constant 0 : index
    %29 = vector.load %arg2[%c0_28, %28, %c2_29, %c0_30] : memref<1x18x18x4xbf16, #tpu.memory_space<vmem>>, vector<1x16x16x4xbf16>
    %30 = vector.shape_cast %29 : vector<1x16x16x4xbf16> to vector<16x16x4xbf16>
    %c0_31 = arith.constant 0 : index
    %c0_32 = arith.constant 0 : index
    %c20 = arith.constant 20 : index
    %31 = vector.load %arg6[%c0_31, %c0_32, %c20] : memref<16x16x36xbf16, #tpu.memory_space<vmem>>, vector<16x16x4xbf16>
    tpu.vector_store %arg6[%c0_31, %c0_32, %c20], %30 {strides = array<i32>} : memref<16x16x36xbf16, #tpu.memory_space<vmem>>, vector<16x16x4xbf16>,
    %c2_i32 = arith.constant 2 : i32
    %32 = arith.addi %1, %c2_i32 : i32
    %c0_33 = arith.constant 0 : index
    %33 = arith.index_cast %32 : i32 to index
    %c0_34 = arith.constant 0 : index
    %c0_35 = arith.constant 0 : index
    %34 = vector.load %arg2[%c0_33, %33, %c0_34, %c0_35] : memref<1x18x18x4xbf16, #tpu.memory_space<vmem>>, vector<1x16x16x4xbf16>
    %35 = vector.shape_cast %34 : vector<1x16x16x4xbf16> to vector<16x16x4xbf16>
    %c0_36 = arith.constant 0 : index
    %c0_37 = arith.constant 0 : index
    %c24 = arith.constant 24 : index
    %36 = vector.load %arg6[%c0_36, %c0_37, %c24] : memref<16x16x36xbf16, #tpu.memory_space<vmem>>, vector<16x16x4xbf16>
    tpu.vector_store %arg6[%c0_36, %c0_37, %c24], %35 {strides = array<i32>} : memref<16x16x36xbf16, #tpu.memory_space<vmem>>, vector<16x16x4xbf16>,
    %c2_i32_38 = arith.constant 2 : i32
    %37 = arith.addi %1, %c2_i32_38 : i32
    %c0_39 = arith.constant 0 : index
    %38 = arith.index_cast %37 : i32 to index
    %c1_40 = arith.constant 1 : index
    %c0_41 = arith.constant 0 : index
    %39 = vector.load %arg2[%c0_39, %38, %c1_40, %c0_41] : memref<1x18x18x4xbf16, #tpu.memory_space<vmem>>, vector<1x16x16x4xbf16>
    %40 = vector.shape_cast %39 : vector<1x16x16x4xbf16> to vector<16x16x4xbf16>
    %c0_42 = arith.constant 0 : index
    %c0_43 = arith.constant 0 : index
    %c28 = arith.constant 28 : index
    %41 = vector.load %arg6[%c0_42, %c0_43, %c28] : memref<16x16x36xbf16, #tpu.memory_space<vmem>>, vector<16x16x4xbf16>
    tpu.vector_store %arg6[%c0_42, %c0_43, %c28], %40 {strides = array<i32>} : memref<16x16x36xbf16, #tpu.memory_space<vmem>>, vector<16x16x4xbf16>,
    %c2_i32_44 = arith.constant 2 : i32
    %42 = arith.addi %1, %c2_i32_44 : i32
    %c0_45 = arith.constant 0 : index
    %43 = arith.index_cast %42 : i32 to index
    %c2_46 = arith.constant 2 : index
    %c0_47 = arith.constant 0 : index
    %44 = vector.load %arg2[%c0_45, %43, %c2_46, %c0_47] : memref<1x18x18x4xbf16, #tpu.memory_space<vmem>>, vector<1x16x16x4xbf16>
    %45 = vector.shape_cast %44 : vector<1x16x16x4xbf16> to vector<16x16x4xbf16>
    %c0_48 = arith.constant 0 : index
    %c0_49 = arith.constant 0 : index
    %c32 = arith.constant 32 : index
    %46 = vector.load %arg6[%c0_48, %c0_49, %c32] : memref<16x16x36xbf16, #tpu.memory_space<vmem>>, vector<16x16x4xbf16>
    tpu.vector_store %arg6[%c0_48, %c0_49, %c32], %45 {strides = array<i32>} : memref<16x16x36xbf16, #tpu.memory_space<vmem>>, vector<16x16x4xbf16>,
    %c0_50 = arith.constant 0 : index
    %c0_51 = arith.constant 0 : index
    %c0_52 = arith.constant 0 : index
    %47 = vector.load %arg6[%c0_50, %c0_51, %c0_52] : memref<16x16x36xbf16, #tpu.memory_space<vmem>>, vector<16x16x36xbf16>
    %48 = vector.shape_cast %47 : vector<16x16x36xbf16> to vector<256x36xbf16>
    %c0_53 = arith.constant 0 : index
    %c0_54 = arith.constant 0 : index
    %49 = vector.load %arg3[%c0_53, %c0_54] : memref<36x128xbf16, #tpu.memory_space<vmem>>, vector<36x128xbf16>
    %cst = arith.constant dense<0.000000e+00> : vector<256x128xf32>
    %50 = tpu.matmul %48, %49, %cst {dimension_numbers = #tpu.dot_dimension_numbers<[1], [0], [0], [1], [0, 0, 1, 1], [], []>} : vector<256x36xbf16>, vector<36x128xbf16>, vector<256x128xf32> -> vector<256x128xf32>
    %51 = vector.shape_cast %50 : vector<256x128xf32> to vector<16x16x128xf32>
    %52 = vector.shape_cast %51 : vector<16x16x128xf32> to vector<8x2x16x128xf32>
    %cst_55 = arith.constant dense<0xFF800000> : vector<8x16x128xf32>
    %53 = vector.multi_reduction <maximumf>, %52, %cst_55 [1] : vector<8x2x16x128xf32> to vector<8x16x128xf32>
    %54 = vector.shape_cast %53 : vector<8x16x128xf32> to vector<8x8x2x128xf32>
    %cst_56 = arith.constant dense<0xFF800000> : vector<8x8x128xf32>
    %55 = vector.multi_reduction <maximumf>, %54, %cst_56 [2] : vector<8x8x2x128xf32> to vector<8x8x128xf32>
    %c0_57 = arith.constant 0 : index
    %c0_58 = arith.constant 0 : index
    %56 = vector.load %arg4[%c0_57, %c0_58] : memref<1x128xf32, #tpu.memory_space<vmem>>, vector<1x128xf32>
    %57 = vector.shape_cast %56 : vector<1x128xf32> to vector<128xf32>
    %58 = vector.shape_cast %57 : vector<128xf32> to vector<1x1x128xf32>
    %59 = vector.broadcast %58 : vector<1x1x128xf32> to vector<8x8x128xf32>
    %60 = arith.addf %55, %59 : vector<8x8x128xf32>
    %cst_59 = arith.constant 0.00999999977 : f32
    %61 = vector.broadcast %cst_59 : f32 to vector<8x8x128xf32>
    %62 = arith.mulf %61, %60 : vector<8x8x128xf32>
    %63 = arith.maximumf %60, %62 : vector<8x8x128xf32>
    %c0_60 = arith.constant 0 : index
    %c0_61 = arith.constant 0 : index
    %c0_62 = arith.constant 0 : index
    %c0_63 = arith.constant 0 : index
    %64 = vector.load %arg5[%c0_60, %c0_61, %c0_62, %c0_63] : memref<1x8x8x128xf32, #tpu.memory_space<vmem>>, vector<1x8x8x128xf32>
    %65 = vector.shape_cast %64 : vector<1x8x8x128xf32> to vector<8x8x128xf32>
    %66 = vector.shape_cast %63 : vector<8x8x128xf32> to vector<1x8x8x128xf32>
    tpu.vector_store %arg5[%c0_60, %c0_61, %c0_62, %c0_63], %66 {strides = array<i32>} : memref<1x8x8x128xf32, #tpu.memory_space<vmem>>, vector<1x8x8x128xf32>,
    return
  }
  func.func @transform_0(%arg0: i32, %arg1: i32) -> (i32, i32, i32, i32) {
    %c0_i32 = arith.constant 0 : i32
    %c0_i32_0 = arith.constant 0 : i32
    %c0_i32_1 = arith.constant 0 : i32
    %c0_i32_2 = arith.constant 0 : i32
    return %arg0, %c0_i32, %c0_i32_0, %c0_i32_1 : i32, i32, i32, i32
  }
  func.func @transform_1(%arg0: i32, %arg1: i32) -> (i32, i32) {
    %c0_i32 = arith.constant 0 : i32
    %c0_i32_0 = arith.constant 0 : i32
    %c0_i32_1 = arith.constant 0 : i32
    return %c0_i32, %c0_i32_0 : i32, i32
  }
  func.func @transform_2(%arg0: i32, %arg1: i32) -> (i32, i32) {
    %c0_i32 = arith.constant 0 : i32
    %c0_i32_0 = arith.constant 0 : i32
    %c0_i32_1 = arith.constant 0 : i32
    return %c0_i32, %c0_i32_0 : i32, i32
  }
  func.func @transform_3(%arg0: i32, %arg1: i32) -> (i32, i32, i32, i32) {
    %c0_i32 = arith.constant 0 : i32
    %c0_i32_0 = arith.constant 0 : i32
    %c0_i32_1 = arith.constant 0 : i32
    return %arg0, %arg1, %c0_i32, %c0_i32_0 : i32, i32, i32, i32
  }
}

</mosaic_0001>

<bundles_post_ra>
// kernel: tpu_custom_call.1
= control target key start
LH: loop header
LB: loop body
LE: loop exit
PB: predicated region body
PF: predicated region fallthrough
CT: control target
= control target key end

     0   :  { %8 = vsyncpa [#allocation4], 0  ;;  %s7095_s0 = inlined_call_operand.vmem [shape: bf16[2,18,18,4], index: 0, kind: input, shape index: {}]   ;;  %s7096_s1 = inlined_call_operand.vmem [shape: bf16[36,128], index: 1, kind: input, shape index: {}]   ;;  %s7097_s2 = inlined_call_operand.vmem [shape: f32[1,128], index: 2, kind: input, shape index: {}]   ;;  %s7098_s3 = inlined_call_operand.hbm [shape: f32[2,8,8,128], index: 3, kind: output, shape index: {}]  }
   0x1   :  { %10 = vsyncpa [#allocation4 + $0x1], 0  ;;  %s5302_s12 = smov 0   ;;  %s5304_s13 = smov 0  }
   0x2   :  { %s5306_s14 = smov 0   ;;  %s5308_s15 = smov 0  }
   0x3   :  { %s5310_s16 = smov 0   ;;  %s5312_s17 = smov 0  }
   0x4 LB: > { %s4694_s18 = sadd.s32 4294967295, %s5271_s17   ;;  %s4695_s19 = sadd.s32 4294967294, %s5271_s17   ;;  %s5271_s17 = sphi %s5312_s17, %s16_s17   ;;  %s5267_s16 = sphi %s5310_s16, %s7109_s16   ;;  %s5263_s15 = sphi %s5308_s15, %s7108_s15   ;;  %s5259_s14 = sphi %s5306_s14, %s7107_s14   ;;  %s5255_s13 = sphi %s5304_s13, %s7106_s13   ;;  %s5251_s12 = sphi %s5302_s12, %s7105_s12  }
   0x5   : > { %s28_s20 = sadd.s32 1, %s5267_s16  ;;  %s105_s21 = sadd.s32 1, %s5259_s14 }
   0x6   : > { %p30_p0 = scmp.ge.s32.totalorder %s28_s20, 2  ;;  %p115_p1 = scmp.ne.s32.totalorder %s5259_s14, %s5255_s13 }
   0x7   : > { %p116_p2 = scmp.eq.s32.totalorder %s4694_s18, 1  ;;  %p121_p3 = scmp.ne.s32.totalorder %s5255_s13, %s5251_s12 }
   0x8   : > { %s7111_s20 = smov (%p30_p0, %s28_s20), 0  ;;  %p122_p5 = scmp.eq.s32.totalorder %s4695_s19, 1 }
   0x9   : > { %p5342_p4 = por %p116_p2, %p115_p1  ;;  %s100_s23 = ssub.s32 %s5267_s16, %s7111_s20 }
   0xa   : > { %p4698_p6 = scmp.ge.s32.totalorder %s5271_s17, 1  ;;  %p103_p7 = scmp.eq.s32.totalorder %s100_s23, 0 }
   0xb   : > { %p5349_p8 = por %p122_p5, %p121_p3  ;;  %p154_p9 = scmp.lt.s32.totalorder %s5271_s17, 3 }
   0xc   : > { %s5355_s25 = scalar_select %p103_p7, %s5259_s14, %s105_s21  }
   0xd   : > { %p155_p10 = pnand %p4698_p6, %p154_p9 }
   0xe   : > { %p178_p11 = scmp.lt.s32.totalorder (!%p155_p10), %s5263_s15, 1  ;;  %s5273_s4 = smov (!%p155_p10), 4  }
   0xf   : > { %158 = sbr.rel (%p155_p10) target bundleno = 1048 (0x418), region = 32  ;;  %s5274_s5 = smov (!%p155_p10), 8  }
  0x10   : > { %s5275_s6 = smov (!%p155_p10), 12   ;;  %s5276_s7 = smov (!%p155_p10), 16  }
  0x11   : > { %s5277_s8 = smov (!%p155_p10), 20   ;;  %s5278_s9 = smov (!%p155_p10), 24  }
  0x12   : > { %s5279_s10 = smov (!%p155_p10), 28   ;;  %s5280_s11 = smov (!%p155_p10), 32  }
  0x13   : > { %s5213_s29 = scalar_lea.hbm (!%p155_p10), %s7098_s3, 128 }
  0x14   : > { %s179_s26 = scalar_select %p178_p11, %s5263_s15, 1  ;;  %vm302_vm0 = vsmask.f32 3328  ;;  %vm303_vm1 = vsmask.f32 7440  ;;  %vm914_vm3 = vcmask 1042432  }
  0x15   : > { %vm5373_vm2 = vmor %vm302_vm0, %vm303_vm1  ;;  %vm915_vm4 = vcmask 1046532   ;;  %vm221_vm5 = vcmask 27648   ;;  %vm785_vm7 = vcmask 60448   ;;  %vm1125_vm8 = vcmask 93248  }
  0x16   : > { %s5126_s27 = smul.u32 216, %s179_s26  ;;  %vm5548_vm6 = vmor %vm914_vm3, %vm915_vm4  ;;  %vm1322_vm9 = vcmask 126048   ;;  %vm1883_vm10 = vcmask 158848   ;;  %vm2220_vm11 = vcmask 191648   ;;  %vm2417_vm12 = vcmask 224448  }
  0x17   : > { %vm3529_vm13 = vcmask 1041408   ;;  %vm2978_vm14 = vcmask 257248   ;;  %vm3315_vm15 = vcmask 290048   ;;  %vm3480_vm0 = vcmask 293888  }
  0x18   : > { %s5362_s30 = scalar_lea.vmem %s7095_s0, %s5126_s27  ;;  %vm4459_vm1 = vcmask 1041409   ;;  %vm4465_vm3 = vcmask 1043459   ;;  %vm4468_vm4 = vcmask 1044484  }
  0x19   : > { %v257_v0 = vld [vmem:[%s5362_s30 + $0xc] sm:$0xf]  ;;  %v258_v1 = vld [vmem:[%s5362_s30 + $0x10] sm:$0xf]  ;;  %v254_v2 = vld [vmem:[%s5362_s30] sm:$0xf] }
  0x1a   : > { %v330_v3 = vshrl.u32 %v257_v0, 16  ;;  %v333_v4 = vshll.u32 %v257_v0, 16  ;;  %v339_v5 = vshll.u32 %v258_v1, 16  ;;  %v343_v6 = vshrl.u32 %v258_v1, 16  ;;  %v255_v7 = vld [vmem:[%s5362_s30 + $0x4] sm:$0xf] }
  0x1b   : > { %v306_v8 = vshrl.u32 %v254_v2, 16  ;;  %v309_v9 = vshll.u32 %v254_v2, 16  ;;  %v315_v10 = vshll.u32 %v255_v7, 16  ;;  %v319_v11 = vshrl.u32 %v255_v7, 16  ;;  %v259_v12 = vld [vmem:[%s5362_s30 + $0x14] sm:$0x1] }
  0x1c   : > { %v332_v13 = vrot.slane %v330_v3, 4  ;;  %v335_v14 = vrot.slane %v333_v4, 5  ;;  %v341_v15 = vrot.slane %v339_v5, 5  ;;  %v345_v16 = vrot.slane %v343_v6, 4  ;;  %v256_v17 = vld [vmem:[%s5362_s30 + $0x8] sm:$0x1] }
  0x1d   : > { %v308_v18 = vrot.slane %v306_v8, 4  ;;  %v311_v19 = vrot.slane %v309_v9, 5  ;;  %v321_v20 = vrot.slane %v319_v11, 4  ;;  %v264_v21 = vld [vmem:[%s5362_s30 + $0x28] sm:$0xf]  ;;  %v349_v24 = vshll.u32 %v259_v12, 16 }
  0x1e   : > { %v336_v22 = vor.u32 %v335_v14, %v332_v13  ;;  %v346_v23 = vor.u32 %v345_v16, %v341_v15  ;;  %v317_v27 = vrot.slane %v315_v10, 5  ;;  %v387_v28 = vshll.u32 %v264_v21, 16  ;;  %v263_v30 = vld [vmem:[%s5362_s30 + $0x24] sm:$0xf]  ;;  %v260_v35 = vld [vmem:[%s5362_s30 + $0x18] sm:$0xf] }
  0x1f   : > { %v312_v26 = vor.u32 %v311_v19, %v308_v18  ;;  %v391_v29 = vshrl.u32 %v264_v21, 16  ;;  %v325_v32 = vshll.u32 %v256_v17, 16  ;;  %v351_v38 = vrot.slane %v349_v24, 5  ;;  %v261_v40 = vld [vmem:[%s5362_s30 + $0x1c] sm:$0xf] }
  0x20   : > { %v337_v31 = vrot.slane %v336_v22, 4  ;;  %v322_v34 = vor.u32 %v321_v20, %v317_v27  ;;  %v347_v37 = vrot.slane %v346_v23, 4  ;;  %v378_v39 = vshrl.u32 %v263_v30, 16  ;;  %v265_v42 = vld [vmem:[%s5362_s30 + $0x2c] sm:$0x1] }
  0x21   : > { %v313_v33 = vrot.slane %v312_v26, 4  ;;  %v5386_v43 = vrot.slane %v387_v28, 5  ;;  %v393_v44 = vrot.slane %v391_v29, 4  ;;  %v381_v45 = vshll.u32 %v263_v30, 16  ;;  %v269_v50 = vld [vmem:[%s5362_s30 + $0x3c] sm:$0xf] }
  0x22   : > { %v342_v36 = vsel %vm5373_vm2, %v337_v31, %v341_v15  ;;  %v327_v46 = vrot.slane %v325_v32, 5  ;;  %v380_v47 = vrot.slane %v378_v39, 4  ;;  %v354_v48 = vshrl.u32 %v260_v35, 16  ;;  %v267_v58 = vld [vmem:[%s5362_s30 + $0x34] sm:$0xf] }
  0x23   : > { %693 = vrot.lane.b32.xlu1 %v342_v36, %s5273_s4  ;;  %v318_v41 = vsel %vm5373_vm2, %v313_v33, %v317_v27  ;;  %v357_v49 = vshll.u32 %v260_v35, 16  ;;  %v323_v51 = vrot.slane %v322_v34, 4  ;;  %v383_v52 = vrot.slane %v381_v45, 5  ;;  %v262_v6 = vld [vmem:[%s5362_s30 + $0x20] sm:$0x1] }
  0x24   : > { %689 = vrot.lane.b32.xlu0 %v318_v41, %s5273_s4  ;;  %v363_v53 = vshll.u32 %v261_v40, 16  ;;  %v367_v54 = vshrl.u32 %v261_v40, 16  ;;  %v397_v55 = vshll.u32 %v265_v42, 16  ;;  %v356_v56 = vrot.slane %v354_v48, 4  ;;  %v270_v15 = vld [vmem:[%s5362_s30 + $0x40] sm:$0xf] }
  0x25   : > { %v359_v57 = vrot.slane %v357_v49, 5  ;;  %v394_v59 = vor.u32 %v393_v44, %v5386_v43  ;;  %v426_v61 = vshrl.u32 %v269_v50, 16  ;;  %v429_v62 = vshll.u32 %v269_v50, 16  ;;  %v268_v16 = vld [vmem:[%s5362_s30 + $0x38] sm:$0x1] }
  0x26   : > { %v369_v60 = vrot.slane %v367_v54, 4  ;;  %v352_v63 = vsel %vm5373_vm2, %v347_v37, %v351_v38  ;;  %v384_v0 = vor.u32 %v383_v52, %v380_v47  ;;  %v365_v2 = vrot.slane %v363_v53, 5  ;;  %v273_v20 = vld [vmem:[%s5362_s30 + $0x4c] sm:$0xf]  ;;  %v266_v21 = vld [vmem:[%s5362_s30 + $0x30] sm:$0xf] }
  0x27   : > { %v360_v1 = vor.u32 %v359_v57, %v356_v56  ;;  %v328_v3 = vsel %vm5373_vm2, %v323_v51, %v327_v46  ;;  %v411_v4 = vshll.u32 %v267_v58, 16  ;;  %v415_v5 = vshrl.u32 %v267_v58, 16  ;;  %v272_v24 = vld [vmem:[%s5362_s30 + $0x48] sm:$0xf]  ;;  %v278_v47 = vld [vmem:[%s5362_s30 + $0x60] sm:$0xf] }
  0x28   : > { %v399_v7 = vrot.slane %v397_v55, 5  ;;  %v395_v9 = vrot.slane %v394_v59, 4  ;;  %v428_v10 = vrot.slane %v426_v61, 4  ;;  %v431_v11 = vrot.slane %v429_v62, 5  ;;  %v274_v49 = vld [vmem:[%s5362_s30 + $0x50] sm:$0x1] }
  0x29   : > { %v361_v8 = vrot.slane %v360_v1, 4  ;;  %v370_v12 = vor.u32 %v369_v60, %v365_v2  ;;  %v385_v13 = vrot.slane %v384_v0, 4  ;;  %v373_v17 = vshll.u32 %v262_v6, 16  ;;  %v276_v53 = vld [vmem:[%s5362_s30 + $0x58] sm:$0xf] }
  0x2a   : > { %v5404_v18 = vrot.slane %v411_v4, 5  ;;  %v417_v19 = vrot.slane %v415_v5, 4  ;;  %v400_v26 = vsel %vm5373_vm2, %v395_v9, %v399_v7  ;;  %v432_v27 = vor.u32 %v431_v11, %v428_v10  ;;  %v271_v58 = vld [vmem:[%s5362_s30 + $0x44] sm:$0x1]  ;;  %v282_v11 = vld [vmem:[%s5362_s30 + $0x70] sm:$0xf] }
  0x2b   : > { %695 = vrot.lane.b32.xlu1 %v352_v63, %s5273_s4  ;;  %v366_v14 = vsel %vm5373_vm2, %v361_v8, %v365_v2  ;;  %v371_v22 = vrot.slane %v370_v12, 4  ;;  %v375_v23 = vrot.slane %v373_v17, 5  ;;  %v435_v28 = vshll.u32 %v270_v15, 16  ;;  %v275_v2 = vld [vmem:[%s5362_s30 + $0x54] sm:$0xf] }
  0x2c   : > { %691 = vrot.lane.b32.xlu0 %v328_v3, %s5273_s4  ;;  %697 = vrot.lane.b32.xlu2 %v366_v14, %s5273_s4  ;;  %v421_v29 = vshll.u32 %v268_v16, 16  ;;  %v390_v30 = vsel %vm5373_vm2, %v385_v13, %v5386_v43  ;;  %v459_v31 = vshll.u32 %v273_v20, 16  ;;  %v463_v32 = vshrl.u32 %v273_v20, 16  ;;  %v279_v6 = vld [vmem:[%s5362_s30 + $0x64] sm:$0xf] }
  0x2d   : > { %v402_v33 = vshrl.u32 %v266_v21, 16  ;;  %v418_v34 = vor.u32 %v417_v19, %v5404_v18  ;;  %v450_v35 = vshrl.u32 %v272_v24, 16  ;;  %v453_v36 = vshll.u32 %v272_v24, 16  ;;  %v281_v20 = vld [vmem:[%s5362_s30 + $0x6c] sm:$0xf] }
  0x2e   : > { %v405_v37 = vshll.u32 %v266_v21, 16  ;;  %v439_v38 = vshrl.u32 %v270_v15, 16  ;;  %v376_v39 = vsel %vm5373_vm2, %v371_v22, %v375_v23  ;;  %v437_v41 = vrot.slane %v435_v28, 5  ;;  %v277_v15 = vld [vmem:[%s5362_s30 + $0x5c] sm:$0x1] }
  0x2f   : > { %v404_v40 = vrot.slane %v402_v33, 4  ;;  %v433_v43 = vrot.slane %v432_v27, 4  ;;  %v423_v44 = vrot.slane %v421_v29, 5  ;;  %v5419_v45 = vrot.slane %v459_v31, 5 }
  0x30   : > { %v407_v42 = vrot.slane %v405_v37, 5  ;;  %v465_v46 = vrot.slane %v463_v32, 4  ;;  %v419_v48 = vrot.slane %v418_v34, 4  ;;  %v452_v50 = vrot.slane %v450_v35, 4 }
  0x31   : > { %v455_v51 = vrot.slane %v453_v36, 5  ;;  %v441_v54 = vrot.slane %v439_v38, 4  ;;  %v498_v56 = vshrl.u32 %v278_v47, 16  ;;  %v501_v57 = vshll.u32 %v278_v47, 16  ;;  %v285_v47 = vld [vmem:[%s5362_s30 + $0x7c] sm:$0xf] }
  0x32   : > { %v408_v52 = vor.u32 %v407_v42, %v404_v40  ;;  %v438_v59 = vsel %vm5373_vm2, %v433_v43, %v437_v41  ;;  %v466_v60 = vor.u32 %v465_v46, %v5419_v45  ;;  %v469_v61 = vshll.u32 %v274_v49, 16  ;;  %v287_v42 = vld [vmem:[%s5362_s30 + $0x84] sm:$0xf]  ;;  %v280_v49 = vld [vmem:[%s5362_s30 + $0x68] sm:$0x1] }
  0x33   : > { %703 = vrot.lane.b32.xlu1 %v400_v26, %s5273_s4  ;;  %v424_v62 = vsel %vm5373_vm2, %v419_v48, %v423_v44  ;;  %v456_v63 = vor.u32 %v455_v51, %v452_v50  ;;  %v483_v0 = vshll.u32 %v276_v53, 16  ;;  %v487_v1 = vshrl.u32 %v276_v53, 16 }
  0x34   : > { %701 = vrot.lane.b32.xlu0 %v390_v30, %s5273_s4  ;;  %699 = vrot.lane.b32.xlu2 %v376_v39, %s5273_s4  ;;  %v409_v55 = vrot.slane %v408_v52, 4  ;;  %v442_v4 = vor.u32 %v441_v54, %v437_v41  ;;  %v445_v5 = vshll.u32 %v271_v58, 16  ;;  %v500_v7 = vrot.slane %v498_v56, 4  ;;  %v283_v41 = vld [vmem:[%s5362_s30 + $0x74] sm:$0x1] }
  0x35   : > { %v503_v8 = vrot.slane %v501_v57, 5  ;;  %v467_v9 = vrot.slane %v466_v60, 4  ;;  %v471_v10 = vrot.slane %v469_v61, 5  ;;  %v474_v12 = vshrl.u32 %v275_v2, 16  ;;  %v284_v54 = vld [vmem:[%s5362_s30 + $0x78] sm:$0xf] }
  0x36   : > { %v414_v3 = vsel %vm5373_vm2, %v409_v55, %v5404_v18  ;;  %v477_v13 = vshll.u32 %v275_v2, 16  ;;  %v457_v14 = vrot.slane %v456_v63, 4  ;;  %v5441_v16 = vrot.slane %v483_v0, 5 }
  0x37   : > { %v489_v17 = vrot.slane %v487_v1, 4  ;;  %v443_v18 = vrot.slane %v442_v4, 4  ;;  %v447_v19 = vrot.slane %v445_v5, 5  ;;  %v476_v21 = vrot.slane %v474_v12, 4  ;;  %v288_v4 = vld [vmem:[%s5362_s30 + $0x88] sm:$0xf] }
  0x38   : > { %v479_v22 = vrot.slane %v477_v13, 5  ;;  %v504_v23 = vor.u32 %v503_v8, %v500_v7  ;;  %v507_v24 = vshll.u32 %v279_v6, 16  ;;  %v531_v26 = vshll.u32 %v282_v11, 16 }
  0x39   : > { %v535_v27 = vshrl.u32 %v282_v11, 16  ;;  %v472_v28 = vsel %vm5373_vm2, %v467_v9, %v471_v10  ;;  %v493_v29 = vshll.u32 %v277_v15, 16  ;;  %v462_v30 = vsel %vm5373_vm2, %v457_v14, %v5419_v45  ;;  %v291_v9 = vld [vmem:[%s5362_s30 + $0x94] sm:$0xf]  ;;  %v286_v11 = vld [vmem:[%s5362_s30 + $0x80] sm:$0x1] }
  0x3a   : > { %v490_v31 = vor.u32 %v489_v17, %v5441_v16  ;;  %v522_v32 = vshrl.u32 %v281_v20, 16  ;;  %v525_v33 = vshll.u32 %v281_v20, 16  ;;  %v511_v34 = vshrl.u32 %v279_v6, 16  ;;  %v290_v14 = vld [vmem:[%s5362_s30 + $0x90] sm:$0xf] }
  0x3b   : > { %709 = vrot.lane.b32.xlu1 %v438_v59, %s5273_s4  ;;  %v448_v35 = vsel %vm5373_vm2, %v443_v18, %v447_v19  ;;  %v480_v36 = vor.u32 %v479_v22, %v476_v21  ;;  %v505_v37 = vrot.slane %v504_v23, 4  ;;  %v509_v38 = vrot.slane %v507_v24, 5 }
  0x3c   : > { %707 = vrot.lane.b32.xlu0 %v424_v62, %s5273_s4  ;;  %705 = vrot.lane.b32.xlu2 %v414_v3, %s5273_s4  ;;  %v5453_v39 = vrot.slane %v531_v26, 5  ;;  %v537_v40 = vrot.slane %v535_v27, 4  ;;  %v491_v43 = vrot.slane %v490_v31, 4  ;;  %v495_v44 = vrot.slane %v493_v29, 5 }
  0x3d   : > { %v524_v45 = vrot.slane %v522_v32, 4  ;;  %v527_v46 = vrot.slane %v525_v33, 5  ;;  %v481_v48 = vrot.slane %v480_v36, 4  ;;  %v513_v50 = vrot.slane %v511_v34, 4 }
  0x3e   : > { %v510_v51 = vsel %vm5373_vm2, %v505_v37, %v509_v38  ;;  %v538_v52 = vor.u32 %v537_v40, %v5453_v39  ;;  %v541_v53 = vshll.u32 %v283_v41, 16  ;;  %v570_v55 = vshrl.u32 %v287_v42, 16  ;;  %v292_v37 = vld [vmem:[%s5362_s30 + $0x98] sm:$0x1]  ;;  %v296_v40 = vld [vmem:[%s5362_s30 + $0xa8] sm:$0xf] }
  0x3f   : > { %v573_v56 = vshll.u32 %v287_v42, 16  ;;  %v555_v57 = vshll.u32 %v285_v47, 16  ;;  %v559_v58 = vshrl.u32 %v285_v47, 16  ;;  %v496_v59 = vsel %vm5373_vm2, %v491_v43, %v495_v44  ;;  %v294_v42 = vld [vmem:[%s5362_s30 + $0xa0] sm:$0xf] }
  0x40   : > { %v528_v60 = vor.u32 %v527_v46, %v524_v45  ;;  %v517_v61 = vshll.u32 %v280_v49, 16  ;;  %v486_v62 = vsel %vm5373_vm2, %v481_v48, %v5441_v16  ;;  %v514_v63 = vor.u32 %v513_v50, %v509_v38  ;;  %v289_v43 = vld [vmem:[%s5362_s30 + $0x8c] sm:$0x1]  ;;  %v293_v47 = vld [vmem:[%s5362_s30 + $0x9c] sm:$0xf] }
  0x41   : > { %v546_v0 = vshrl.u32 %v284_v54, 16  ;;  %v549_v1 = vshll.u32 %v284_v54, 16  ;;  %v539_v2 = vrot.slane %v538_v52, 4  ;;  %v543_v3 = vrot.slane %v541_v53, 5 }
  0x42   : > { %v572_v5 = vrot.slane %v570_v55, 4  ;;  %v575_v6 = vrot.slane %v573_v56, 5  ;;  %v5473_v7 = vrot.slane %v555_v57, 5  ;;  %v561_v8 = vrot.slane %v559_v58, 4 }
  0x43   : > { %715 = vrot.lane.b32.xlu1 %v472_v28, %s5273_s4  ;;  %v529_v10 = vrot.slane %v528_v60, 4  ;;  %v515_v12 = vrot.slane %v514_v63, 4  ;;  %v519_v13 = vrot.slane %v517_v61, 5  ;;  %v548_v15 = vrot.slane %v546_v0, 4 }
  0x44   : > { %713 = vrot.lane.b32.xlu0 %v462_v30, %s5273_s4  ;;  %711 = vrot.lane.b32.xlu2 %v448_v35, %s5273_s4  ;;  %v551_v16 = vrot.slane %v549_v1, 5  ;;  %v579_v17 = vshll.u32 %v288_v4, 16  ;;  %v603_v18 = vshll.u32 %v291_v9, 16  ;;  %v607_v19 = vshrl.u32 %v291_v9, 16  ;;  %v295_v1 = vld [vmem:[%s5362_s30 + $0xa4] sm:$0x1] }
  0x45   : > { %v544_v20 = vsel %vm5373_vm2, %v539_v2, %v543_v3  ;;  %v576_v21 = vor.u32 %v575_v6, %v572_v5  ;;  %v562_v22 = vor.u32 %v561_v8, %v5473_v7  ;;  %v565_v23 = vshll.u32 %v286_v11, 16  ;;  %v300_v5 = vld [vmem:[%s5362_s30 + $0xb8] sm:$0xf]  ;;  %v299_v8 = vld [vmem:[%s5362_s30 + $0xb4] sm:$0xf] }
  0x46   : > { %v534_v24 = vsel %vm5373_vm2, %v529_v10, %v5453_v39  ;;  %v594_v26 = vshrl.u32 %v290_v14, 16  ;;  %v597_v27 = vshll.u32 %v290_v14, 16  ;;  %v583_v28 = vshrl.u32 %v288_v4, 16 }
  0x47   : > { %v520_v29 = vsel %vm5373_vm2, %v515_v12, %v519_v13  ;;  %v552_v30 = vor.u32 %v551_v16, %v548_v15  ;;  %v5488_v31 = vrot.slane %v603_v18, 5  ;;  %v609_v32 = vrot.slane %v607_v19, 4 }
  0x48   : > { %v577_v33 = vrot.slane %v576_v21, 4  ;;  %v581_v34 = vrot.slane %v579_v17, 5  ;;  %v563_v35 = vrot.slane %v562_v22, 4  ;;  %v567_v36 = vrot.slane %v565_v23, 5 }
  0x49   : > { %v596_v38 = vrot.slane %v594_v26, 4  ;;  %v599_v39 = vrot.slane %v597_v27, 5  ;;  %v553_v41 = vrot.slane %v552_v30, 4  ;;  %v585_v44 = vrot.slane %v583_v28, 4 }
  0x4a   : > { %v610_v45 = vor.u32 %v609_v32, %v5488_v31  ;;  %v613_v46 = vshll.u32 %v292_v37, 16  ;;  %v582_v48 = vsel %vm5373_vm2, %v577_v33, %v581_v34  ;;  %v568_v49 = vsel %vm5373_vm2, %v563_v35, %v567_v36  ;;  %v298_v36 = vld [vmem:[%s5362_s30 + $0xb0] sm:$0x1] }
  0x4b   : > { %721 = vrot.lane.b32.xlu1 %v510_v51, %s5273_s4  ;;  %v642_v50 = vshrl.u32 %v296_v40, 16  ;;  %v645_v51 = vshll.u32 %v296_v40, 16  ;;  %v600_v52 = vor.u32 %v599_v39, %v596_v38  ;;  %v627_v53 = vshll.u32 %v294_v42, 16 }
  0x4c   : > { %719 = vrot.lane.b32.xlu0 %v496_v59, %s5273_s4  ;;  %717 = vrot.lane.b32.xlu2 %v486_v62, %s5273_s4  ;;  %v631_v54 = vshrl.u32 %v294_v42, 16  ;;  %v589_v55 = vshll.u32 %v289_v43, 16  ;;  %v558_v56 = vsel %vm5373_vm2, %v553_v41, %v5473_v7  ;;  %v586_v57 = vor.u32 %v585_v44, %v581_v34  ;;  %v297_v62 = vld [vmem:[%s5362_s30 + $0xac] sm:$0xf] }
  0x4d   : > { %v618_v58 = vshrl.u32 %v293_v47, 16  ;;  %v621_v59 = vshll.u32 %v293_v47, 16  ;;  %v611_v60 = vrot.slane %v610_v45, 4  ;;  %v615_v61 = vrot.slane %v613_v46, 5 }
  0x4e   : > { %v644_v63 = vrot.slane %v642_v50, 4  ;;  %v647_v0 = vrot.slane %v645_v51, 5  ;;  %v601_v2 = vrot.slane %v600_v52, 4  ;;  %v629_v3 = vrot.slane %v627_v53, 5  ;;  %v821_v51 = vld [vmem:[%s5362_s30 + $0xc] sm:$0xe] }
  0x4f   : > { %v633_v4 = vrot.slane %v631_v54, 4  ;;  %v587_v6 = vrot.slane %v586_v57, 4  ;;  %v591_v7 = vrot.slane %v589_v55, 5  ;;  %v620_v9 = vrot.slane %v618_v58, 4  ;;  %v822_v53 = vld [vmem:[%s5362_s30 + $0x10] sm:$0xf] }
  0x50   : > { %v623_v10 = vrot.slane %v621_v59, 5  ;;  %v616_v11 = vsel %vm5373_vm2, %v611_v60, %v615_v61  ;;  %v651_v12 = vshll.u32 %v297_v62, 16  ;;  %v648_v13 = vor.u32 %v647_v0, %v644_v63  ;;  %v820_v54 = vld [vmem:[%s5362_s30 + $0x8] sm:$0x1]  ;;  %v818_v61 = vld [vmem:[%s5362_s30] sm:$0xe] }
  0x51   : > { %v637_v14 = vshll.u32 %v295_v1, 16  ;;  %v675_v15 = vshll.u32 %v300_v5, 16  ;;  %v679_v16 = vshrl.u32 %v300_v5, 16  ;;  %v606_v17 = vsel %vm5373_vm2, %v601_v2, %v5488_v31  ;;  %v301_v31 = vld [vmem:[%s5362_s30 + $0xbc] sm:$0x1] }
  0x52   : > { %v634_v18 = vor.u32 %v633_v4, %v629_v3  ;;  %v666_v19 = vshrl.u32 %v299_v8, 16  ;;  %v655_v21 = vshrl.u32 %v297_v62, 16  ;;  %v592_v22 = vsel %vm5373_vm2, %v587_v6, %v591_v7  ;;  %v825_v63 = vld [vmem:[%s5362_s30 + $0x1c] sm:$0xf]  ;;  %v193_v0 = vld [vmem:[%s5362_s30 + $0x18] sm:$0xf] }
  0x53   : > { %727 = vrot.lane.b32.xlu1 %v544_v20, %s5273_s4  ;;  %v669_v20 = vshll.u32 %v299_v8, 16  ;;  %v624_v23 = vor.u32 %v623_v10, %v620_v9  ;;  %v653_v26 = vrot.slane %v651_v12, 5  ;;  %v677_v27 = vrot.slane %v675_v15, 5  ;;  %226 = vst.msk [vmem:[#allocation2 + $0x10] sm:$0xf] %vm221_vm5, %v193_v0 }
  0x54   : > { %725 = vrot.lane.b32.xlu0 %v534_v24, %s5273_s4  ;;  %723 = vrot.lane.b32.xlu2 %v520_v29, %s5273_s4  ;;  %v649_v24 = vrot.slane %v648_v13, 4  ;;  %v681_v28 = vrot.slane %v679_v16, 4  ;;  %v635_v29 = vrot.slane %v634_v18, 4  ;;  %v639_v30 = vrot.slane %v637_v14, 5  ;;  %v191_v2 = vld [vmem:[%s5362_s30 + $0xc] sm:$0xf] }
  0x55   : > { %v668_v32 = vrot.slane %v666_v19, 4  ;;  %v671_v33 = vrot.slane %v669_v20, 5  ;;  %v625_v34 = vrot.slane %v624_v23, 4  ;;  %v657_v35 = vrot.slane %v655_v21, 4  ;;  %224 = vst.msk [vmem:[#allocation2 + $0x8] sm:$0xf] %vm221_vm5, %v191_v2 }
  0x56   : > { %v654_v37 = vsel %vm5373_vm2, %v649_v24, %v653_v26  ;;  %v682_v38 = vor.u32 %v681_v28, %v677_v27  ;;  %v685_v39 = vshll.u32 %v301_v31, 16  ;;  %v640_v40 = vsel %vm5373_vm2, %v635_v29, %v639_v30  ;;  %v826_v6 = vld [vmem:[%s5362_s30 + $0x20] sm:$0x1]  ;;  %v824_v9 = vld [vmem:[%s5362_s30 + $0x18] sm:$0xe] }
  0x57   : > { %v672_v41 = vor.u32 %v671_v33, %v668_v32  ;;  %v630_v42 = vsel %vm5373_vm2, %v625_v34, %v629_v3  ;;  %v658_v43 = vor.u32 %v657_v35, %v653_v26  ;;  %v661_v44 = vshll.u32 %v298_v36, 16  ;;  %v189_v3 = vld [vmem:[%s5362_s30] sm:$0xf]  ;;  %v823_v12 = vld [vmem:[%s5362_s30 + $0x14] sm:$0x1] }
  0x58   : > { %v683_v45 = vrot.slane %v682_v38, 4  ;;  %v687_v46 = vrot.slane %v685_v39, 5  ;;  %v4702_v58 = vrot.slane %v821_v51, 9  ;;  %v926_v59 = vrot.slane %v822_v53, 5  ;;  %222 = vst.msk [vmem:[#allocation2] sm:$0xf] %vm221_vm5, %v189_v3 }
  0x59   : > { %v673_v47 = vrot.slane %v672_v41, 4  ;;  %v663_v50 = vrot.slane %v661_v44, 5  ;;  %v922_v60 = vrot.slane %v820_v54, 5  ;;  %v4701_v4 = vrot.slane %v818_v61, 9  ;;  %v828_v15 = vld [vmem:[%s5362_s30 + $0x28] sm:$0xf] }
  0x5a   : > { %v688_v52 = vsel %vm5373_vm2, %v683_v45, %v687_v46  ;;  %v927_v5 = vsel %vm5548_vm6, %v4702_v58, %v926_v59  ;;  %v933_v7 = vrot.slane %v825_v63, 5  ;;  %v4703_v14 = vrot.slane %v824_v9, 9  ;;  %v194_v16 = vld [vmem:[%s5362_s30 + $0x1c] sm:$0xf]  ;;  %v190_v18 = vld [vmem:[%s5362_s30 + $0x4] sm:$0xf] }
  0x5b   : > { %733 = vrot.lane.b32.xlu1 %v582_v48, %s5273_s4  ;;  %v819_v48 = vld [vmem:[%s5362_s30 + $0x4] sm:$0xf]  ;;  %227 = vst.msk [vmem:[#allocation2 + $0x14] sm:$0xf] %vm221_vm5, %v194_v16  ;;  %v928_v19 = vrot.slane %v926_v59, 4  ;;  %v929_v20 = vrot.slane %v823_v12, 5 }
  0x5c   : > { %731 = vrot.lane.b32.xlu0 %v568_v49, %s5273_s4  ;;  %729 = vrot.lane.b32.xlu2 %v558_v56, %s5273_s4  ;;  %v659_v49 = vrot.slane %v658_v43, 4  ;;  %v919_v55 = vrot.slane %v819_v48, 5  ;;  %v678_v56 = vsel %vm5373_vm2, %v673_v47, %v677_v27  ;;  %v935_v13 = vrot.slane %v933_v7, 4  ;;  %223 = vst.msk [vmem:[#allocation2 + $0x4] sm:$0xf] %vm221_vm5, %v190_v18 }
  0x5d   : > { %v831_v23 = vld [vmem:[%s5362_s30 + $0x34] sm:$0xf]  ;;  %v940_v24 = vrot.slane %v828_v15, 5  ;;  %v934_v26 = vsel %vm5548_vm6, %v4703_v14, %v933_v7  ;;  %v829_v27 = vld [vmem:[%s5362_s30 + $0x2c] sm:$0x1]  ;;  %v930_v28 = vsel %vm5548_vm6, %v928_v19, %v929_v20 }
  0x5e   : > { %v664_v57 = vsel %vm5373_vm2, %v659_v49, %v663_v50  ;;  %v921_v62 = vrot.slane %v919_v55, 4  ;;  %v920_v10 = vsel %vm5548_vm6, %v4701_v4, %v919_v55  ;;  %v947_v30 = vrot.slane %v831_v23, 5  ;;  %v827_v31 = vld [vmem:[%s5362_s30 + $0x24] sm:$0xe]  ;;  %v834_v34 = vld [vmem:[%s5362_s30 + $0x40] sm:$0xf] }
  0x5f   : > { %v942_v32 = vrot.slane %v940_v24, 4  ;;  %v943_v33 = vrot.slane %v829_v27, 5  ;;  %v197_v35 = vld [vmem:[%s5362_s30 + $0x30] sm:$0xf]  ;;  %v196_v36 = vld [vmem:[%s5362_s30 + $0x28] sm:$0xf] }
  0x60   : > { %v923_v8 = vsel %vm5548_vm6, %v921_v62, %v922_v60  ;;  %230 = vst.msk [vmem:[#allocation2 + $0x20] sm:$0xf] %vm221_vm5, %v197_v35  ;;  %v4704_v38 = vrot.slane %v827_v31, 9  ;;  %v954_v41 = vrot.slane %v834_v34, 5  ;;  %v835_v43 = vld [vmem:[%s5362_s30 + $0x44] sm:$0x1] }
  0x61   : > { %229 = vst.msk [vmem:[#allocation2 + $0x1c] sm:$0xf] %vm221_vm5, %v196_v36  ;;  %v833_v44 = vld [vmem:[%s5362_s30 + $0x3c] sm:$0xe]  ;;  %v832_v46 = vld [vmem:[%s5362_s30 + $0x38] sm:$0x1] }
  0x62   : > { %v941_v45 = vsel %vm5548_vm6, %v4704_v38, %v940_v24  ;;  %v956_v47 = vrot.slane %v954_v41, 4  ;;  %v957_v48 = vrot.slane %v835_v43, 5  ;;  %v4706_v49 = vrot.slane %v833_v44, 9  ;;  %v200_v50 = vld [vmem:[%s5362_s30 + $0x40] sm:$0xf] }
  0x63   : > { %739 = vrot.lane.b32.xlu1 %v616_v11, %s5273_s4  ;;  %v936_v11 = vrot.slane %v826_v6, 5  ;;  %233 = vst.msk [vmem:[#allocation2 + $0x2c] sm:$0xf] %vm221_vm5, %v200_v50  ;;  %v199_v51 = vld [vmem:[%s5362_s30 + $0x3c] sm:$0xf]  ;;  %v949_v54 = vrot.slane %v947_v30, 4 }
  0x64   : > { %737 = vrot.lane.b32.xlu0 %v606_v17, %s5273_s4  ;;  %735 = vrot.lane.b32.xlu2 %v592_v22, %s5273_s4  ;;  %v192_v17 = vld [vmem:[%s5362_s30 + $0x10] sm:$0xf]  ;;  %v837_v53 = vld [vmem:[%s5362_s30 + $0x4c] sm:$0xf]  ;;  %v950_v55 = vrot.slane %v832_v46, 5  ;;  %v955_v58 = vsel %vm5548_vm6, %v4706_v49, %v954_v41 }
  0x65   : > { %225 = vst.msk [vmem:[#allocation2 + $0xc] sm:$0xf] %vm221_vm5, %v192_v17  ;;  %v937_v21 = vsel %vm5548_vm6, %v935_v13, %v936_v11  ;;  %v830_v22 = vld [vmem:[%s5362_s30 + $0x30] sm:$0xe]  ;;  %v839_v59 = vld [vmem:[%s5362_s30 + $0x54] sm:$0xe] }
  0x66   : > { %v4705_v29 = vrot.slane %v830_v22, 9  ;;  %232 = vst.msk [vmem:[#allocation2 + $0x28] sm:$0xf] %vm221_vm5, %v199_v51  ;;  %v840_v60 = vld [vmem:[%s5362_s30 + $0x58] sm:$0xf]  ;;  %v961_v61 = vrot.slane %v837_v53, 5  ;;  %v951_v63 = vsel %vm5548_vm6, %v949_v54, %v950_v55 }
  0x67   : > { %v838_v62 = vld [vmem:[%s5362_s30 + $0x50] sm:$0x1]  ;;  %v836_v0 = vld [vmem:[%s5362_s30 + $0x48] sm:$0xe]  ;;  %v4708_v2 = vrot.slane %v839_v59, 9  ;;  %v968_v3 = vrot.slane %v840_v60, 5 }
  0x68   : > { %v203_v4 = vld [vmem:[%s5362_s30 + $0x54] sm:$0xf]  ;;  %v963_v6 = vrot.slane %v961_v61, 4  ;;  %v964_v7 = vrot.slane %v838_v62, 5  ;;  %v202_v11 = vld [vmem:[%s5362_s30 + $0x4c] sm:$0xf] }
  0x69   : > { %236 = vst.msk [vmem:[#allocation2 + $0x38] sm:$0xf] %vm221_vm5, %v203_v4  ;;  %v201_v13 = vld [vmem:[%s5362_s30 + $0x48] sm:$0xf]  ;;  %v969_v14 = vsel %vm5548_vm6, %v4708_v2, %v968_v3  ;;  %v842_v18 = vld [vmem:[%s5362_s30 + $0x60] sm:$0xe] }
  0x6a   : > { %v965_v16 = vsel %vm5548_vm6, %v963_v6, %v964_v7  ;;  %v844_v17 = vld [vmem:[%s5362_s30 + $0x68] sm:$0x1]  ;;  %235 = vst.msk [vmem:[#allocation2 + $0x34] sm:$0xf] %vm221_vm5, %v202_v11  ;;  %v841_v20 = vld [vmem:[%s5362_s30 + $0x5c] sm:$0x1] }
  0x6b   : > { %745 = vrot.lane.b32.xlu1 %v654_v37, %s5273_s4  ;;  %v195_v37 = vld [vmem:[%s5362_s30 + $0x24] sm:$0xf]  ;;  %234 = vst.msk [vmem:[#allocation2 + $0x30] sm:$0xf] %vm221_vm5, %v201_v13  ;;  %v978_v22 = vrot.slane %v844_v17, 5 }
  0x6c   : > { %743 = vrot.lane.b32.xlu0 %v640_v40, %s5273_s4  ;;  %741 = vrot.lane.b32.xlu2 %v630_v42, %s5273_s4  ;;  %228 = vst.msk [vmem:[#allocation2 + $0x18] sm:$0xf] %vm221_vm5, %v195_v37  ;;  %v948_v40 = vsel %vm5548_vm6, %v4705_v29, %v947_v30  ;;  %v944_v42 = vsel %vm5548_vm6, %v942_v32, %v943_v33  ;;  %v206_v23 = vld [vmem:[%s5362_s30 + $0x64] sm:$0xf]  ;;  %v846_v27 = vld [vmem:[%s5362_s30 + $0x70] sm:$0xf] }
  0x6d   : > { %239 = vst.msk [vmem:[#allocation2 + $0x44] sm:$0xf] %vm221_vm5, %v206_v23  ;;  %v970_v29 = vrot.slane %v968_v3, 4  ;;  %v971_v30 = vrot.slane %v841_v20, 5  ;;  %v205_v31 = vld [vmem:[%s5362_s30 + $0x60] sm:$0xf] }
  0x6e   : > { %v204_v33 = vld [vmem:[%s5362_s30 + $0x58] sm:$0xf]  ;;  %v849_v37 = vld [vmem:[%s5362_s30 + $0x7c] sm:$0xf]  ;;  %v982_v38 = vrot.slane %v846_v27, 5 }
  0x6f   : > { %v848_v35 = vld [vmem:[%s5362_s30 + $0x78] sm:$0xe]  ;;  %238 = vst.msk [vmem:[#allocation2 + $0x40] sm:$0xf] %vm221_vm5, %v205_v31  ;;  %v845_v41 = vld [vmem:[%s5362_s30 + $0x6c] sm:$0xe] }
  0x70   : > { %237 = vst.msk [vmem:[#allocation2 + $0x3c] sm:$0xf] %vm221_vm5, %v204_v33  ;;  %v989_v43 = vrot.slane %v849_v37, 5  ;;  %v209_v44 = vld [vmem:[%s5362_s30 + $0x78] sm:$0xf]  ;;  %v984_v46 = vrot.slane %v982_v38, 4 }
  0x71   : > { %242 = vst.msk [vmem:[#allocation2 + $0x50] sm:$0xf] %vm221_vm5, %v209_v44  ;;  %v4710_v50 = vrot.slane %v845_v41, 9  ;;  %v208_v51 = vld [vmem:[%s5362_s30 + $0x70] sm:$0xf] }
  0x72   : > { %v207_v53 = vld [vmem:[%s5362_s30 + $0x6c] sm:$0xf]  ;;  %241 = vst.msk [vmem:[#allocation2 + $0x4c] sm:$0xf] %vm221_vm5, %v208_v51  ;;  %v850_v60 = vld [vmem:[%s5362_s30 + $0x80] sm:$0x1] }
  0x73   : > { %751 = vrot.lane.b32.xlu1 %v688_v52, %s5273_s4  ;;  %v198_v52 = vld [vmem:[%s5362_s30 + $0x34] sm:$0xf]  ;;  %v983_v59 = vsel %vm5548_vm6, %v4710_v50, %v982_v38  ;;  %240 = vst.msk [vmem:[#allocation2 + $0x48] sm:$0xf] %vm221_vm5, %v207_v53  ;;  %v992_v6 = vrot.slane %v850_v60, 5 }
  0x74   : > { %749 = vrot.lane.b32.xlu0 %v678_v56, %s5273_s4  ;;  %747 = vrot.lane.b32.xlu2 %v664_v57, %s5273_s4  ;;  %231 = vst.msk [vmem:[#allocation2 + $0x24] sm:$0xf] %vm221_vm5, %v198_v52  ;;  %v958_v57 = vsel %vm5548_vm6, %v956_v47, %v957_v48  ;;  %v852_v48 = vld [vmem:[%s5362_s30 + $0x88] sm:$0xf]  ;;  %v855_v3 = vld [vmem:[%s5362_s30 + $0x94] sm:$0xf] }
  0x75   : > { %v996_v55 = vrot.slane %v852_v48, 5  ;;  %v211_v7 = vld [vmem:[%s5362_s30 + $0x84] sm:$0xf]  ;;  %v857_v11 = vld [vmem:[%s5362_s30 + $0x9c] sm:$0xe] }
  0x76   : > { %v858_v13 = vld [vmem:[%s5362_s30 + $0xa0] sm:$0xf]  ;;  %244 = vst.msk [vmem:[#allocation2 + $0x58] sm:$0xf] %vm221_vm5, %v211_v7  ;;  %v854_v17 = vld [vmem:[%s5362_s30 + $0x90] sm:$0xe] }
  0x77   : > { %v215_v20 = vld [vmem:[%s5362_s30 + $0x9c] sm:$0xf]  ;;  %v4713_v27 = vrot.slane %v854_v17, 9  ;;  %v859_v37 = vld [vmem:[%s5362_s30 + $0xa4] sm:$0x1] }
  0x78   : > { %248 = vst.msk [vmem:[#allocation2 + $0x68] sm:$0xf] %vm221_vm5, %v215_v20  ;;  %v865_v53 = vld [vmem:[%s5362_s30 + $0xbc] sm:$0x1] }
  0x79   : > { %v4720_v7 = vld [vmem:[%s5362_s30 + $0x1c] sm:$0xf] }
  0x7a   : > { %v4725_v20 = vld [vmem:[%s5362_s30 + $0x3c] sm:$0xf] }
  0x7b   : > { %1033 = vrot.lane.b32.xlu1 %v927_v5, %s5274_s5 }
  0x7c   : > { %1031 = vrot.lane.b32.xlu0 %v923_v8, %s5274_s5  ;;  %1029 = vrot.lane.b32.xlu2 %v920_v10, %s5274_s5  ;;  %v843_v8 = vld [vmem:[%s5362_s30 + $0x64] sm:$0xf]  ;;  %v4707_v10 = vrot.slane %v836_v0, 9 }
  0x7d   : > { %v975_v15 = vrot.slane %v843_v8, 5 }
  0x7e   : > { %v962_v19 = vsel %vm5548_vm6, %v4707_v10, %v961_v61  ;;  %v998_v61 = vrot.slane %v996_v55, 4 }
  0x83   : > { %1039 = vrot.lane.b32.xlu1 %v937_v21, %s5274_s5  ;;  %v977_v21 = vrot.slane %v975_v15, 4 }
  0x84   : > { %1037 = vrot.lane.b32.xlu0 %v934_v26, %s5274_s5  ;;  %1035 = vrot.lane.b32.xlu2 %v930_v28, %s5274_s5  ;;  %v4709_v26 = vrot.slane %v842_v18, 9  ;;  %v4714_v18 = vrot.slane %v857_v11, 9 }
  0x85   : > { %v979_v34 = vsel %vm5548_vm6, %v977_v21, %v978_v22 }
  0x86   : > { %v698_v39 = vpop.permute.xlu2 %697  ;;  %v976_v36 = vsel %vm5548_vm6, %v4709_v26, %v975_v15  ;;  %v856_v15 = vld [vmem:[%s5362_s30 + $0x98] sm:$0x1] }
  0x87   : > { %790 = vst.msk [vmem:[#allocation2 + $0x10] sm:$0xf] %vm785_vm7, %v698_v39  ;;  %v847_v39 = vld [vmem:[%s5362_s30 + $0x74] sm:$0x1]  ;;  %v1006_v23 = vrot.slane %v856_v15, 5 }
  0x88   : > { %v985_v47 = vrot.slane %v847_v39, 5  ;;  %v4721_v15 = vld [vmem:[%s5362_s30 + $0x24] sm:$0xf] }
  0x8b   : > { %1045 = vrot.lane.b32.xlu1 %v948_v40, %s5274_s5  ;;  %v972_v40 = vsel %vm5548_vm6, %v970_v29, %v971_v30  ;;  %v213_v30 = vld [vmem:[%s5362_s30 + $0x90] sm:$0xf] }
  0x8c   : > { %1043 = vrot.lane.b32.xlu0 %v944_v42, %s5274_s5  ;;  %1041 = vrot.lane.b32.xlu2 %v941_v45, %s5274_s5  ;;  %v4711_v42 = vrot.slane %v848_v35, 9  ;;  %v860_v35 = vld [vmem:[%s5362_s30 + $0xa8] sm:$0xe]  ;;  %246 = vst.msk [vmem:[#allocation2 + $0x60] sm:$0xf] %vm221_vm5, %v213_v30 }
  0x8e   : > { %v700_v56 = vpop.permute.xlu2 %699  ;;  %v990_v54 = vsel %vm5548_vm6, %v4711_v42, %v989_v43  ;;  %v4715_v42 = vrot.slane %v860_v35, 9 }
  0x8f   : > { %791 = vst.msk [vmem:[#allocation2 + $0x14] sm:$0xf] %vm785_vm7, %v700_v56  ;;  %v986_v56 = vsel %vm5548_vm6, %v984_v46, %v985_v47  ;;  %v1013_v46 = vrot.slane %v859_v37, 5  ;;  %v217_v47 = vld [vmem:[%s5362_s30 + $0xa8] sm:$0xf] }
  0x90   : > { %250 = vst.msk [vmem:[#allocation2 + $0x70] sm:$0xf] %vm221_vm5, %v217_v47 }
  0x93   : > { %1051 = vrot.lane.b32.xlu1 %v958_v57, %s5274_s5  ;;  %v853_v57 = vld [vmem:[%s5362_s30 + $0x8c] sm:$0x1] }
  0x94   : > { %1049 = vrot.lane.b32.xlu0 %v955_v58, %s5274_s5  ;;  %1047 = vrot.lane.b32.xlu2 %v951_v63, %s5274_s5  ;;  %v851_v58 = vld [vmem:[%s5362_s30 + $0x84] sm:$0xe]  ;;  %v999_v62 = vrot.slane %v853_v57, 5  ;;  %v212_v63 = vld [vmem:[%s5362_s30 + $0x88] sm:$0xf] }
  0x95   : > { %v694_v5 = vpop.permute.xlu1 %693  ;;  %v4712_v2 = vrot.slane %v851_v58, 9  ;;  %245 = vst.msk [vmem:[#allocation2 + $0x5c] sm:$0xf] %vm221_vm5, %v212_v63  ;;  %v1027_v58 = vrot.slane %v865_v53, 5  ;;  %v219_v63 = vld [vmem:[%s5362_s30 + $0xb4] sm:$0xf] }
  0x96   : > { %788 = vst.msk [vmem:[#allocation2 + $0x8] sm:$0xf] %vm785_vm7, %v694_v5  ;;  %v690_v9 = vpop.permute.xlu0 %689  ;;  %v706_v12 = vpop.permute.xlu2 %705  ;;  %v991_v5 = vrot.slane %v989_v43, 4  ;;  %v1000_v10 = vsel %vm5548_vm6, %v998_v61, %v999_v62  ;;  %v864_v43 = vld [vmem:[%s5362_s30 + $0xb8] sm:$0xf] }
  0x97   : > { %786 = vst.msk [vmem:[#allocation2] sm:$0xf] %vm785_vm7, %v690_v9  ;;  %v210_v9 = vld [vmem:[%s5362_s30 + $0x7c] sm:$0xf]  ;;  %v220_v61 = vld [vmem:[%s5362_s30 + $0xb8] sm:$0xf] }
  0x98   : > { %794 = vst.msk [vmem:[#allocation2 + $0x20] sm:$0xf] %vm785_vm7, %v706_v12  ;;  %v997_v12 = vsel %vm5548_vm6, %v4712_v2, %v996_v55  ;;  %v863_v55 = vld [vmem:[%s5362_s30 + $0xb4] sm:$0xe]  ;;  %v4750_v53 = vld [vmem:[%s5362_s30 + $0x10] sm:$0xf] }
  0x99   : > { %243 = vst.msk [vmem:[#allocation2 + $0x54] sm:$0xf] %vm221_vm5, %v210_v9  ;;  %v4716_v60 = vrot.slane %v863_v55, 9  ;;  %v4718_v9 = vld [vmem:[%s5362_s30 + $0x10] sm:$0xf] }
  0x9a   : > { %253 = vst.msk [vmem:[#allocation2 + $0x7c] sm:$0xf] %vm221_vm5, %v220_v61  ;;  %v4743_v61 = vld [vmem:[%s5362_s30 + $0xa8] sm:$0xf] }
  0x9b   : > { %1057 = vrot.lane.b32.xlu1 %v969_v14, %s5274_s5  ;;  %v1003_v14 = vrot.slane %v855_v3, 5  ;;  %252 = vst.msk [vmem:[#allocation2 + $0x78] sm:$0xf] %vm221_vm5, %v219_v63 }
  0x9c   : > { %1055 = vrot.lane.b32.xlu0 %v965_v16, %s5274_s5  ;;  %1053 = vrot.lane.b32.xlu2 %v962_v19, %s5274_s5  ;;  %v993_v16 = vsel %vm5548_vm6, %v991_v5, %v992_v6  ;;  %v1010_v19 = vrot.slane %v858_v13, 5  ;;  %v4723_v13 = vld [vmem:[%s5362_s30 + $0x30] sm:$0xf] }
  0x9d   : > { %v696_v24 = vpop.permute.xlu1 %695  ;;  %v1005_v22 = vrot.slane %v1003_v14, 4 }
  0x9e   : > { %789 = vst.msk [vmem:[#allocation2 + $0xc] sm:$0xf] %vm785_vm7, %v696_v24  ;;  %v692_v28 = vpop.permute.xlu0 %691  ;;  %v712_v32 = vpop.permute.xlu2 %711  ;;  %v861_v24 = vld [vmem:[%s5362_s30 + $0xac] sm:$0xf]  ;;  %v1011_v31 = vsel %vm5548_vm6, %v4714_v18, %v1010_v19 }
  0x9f   : > { %787 = vst.msk [vmem:[#allocation2 + $0x4] sm:$0xf] %vm785_vm7, %v692_v28  ;;  %v214_v28 = vld [vmem:[%s5362_s30 + $0x94] sm:$0xf]  ;;  %v1007_v33 = vsel %vm5548_vm6, %v1005_v22, %v1006_v23 }
  0xa0   : > { %797 = vst.msk [vmem:[#allocation2 + $0x2c] sm:$0xf] %vm785_vm7, %v712_v32  ;;  %v1017_v32 = vrot.slane %v861_v24, 5 }
  0xa1   : > { %247 = vst.msk [vmem:[#allocation2 + $0x64] sm:$0xf] %vm221_vm5, %v214_v28  ;;  %v4727_v28 = vld [vmem:[%s5362_s30 + $0x48] sm:$0xf] }
  0xa2   : > { %v1019_v38 = vrot.slane %v1017_v32, 4  ;;  %v1018_v51 = vsel %vm5548_vm6, %v4715_v42, %v1017_v32  ;;  %v4732_v32 = vld [vmem:[%s5362_s30 + $0x64] sm:$0xf] }
  0xa3   : > { %1063 = vrot.lane.b32.xlu1 %v979_v34, %s5274_s5  ;;  %v862_v34 = vld [vmem:[%s5362_s30 + $0xb0] sm:$0x1] }
  0xa4   : > { %1061 = vrot.lane.b32.xlu0 %v976_v36, %s5274_s5  ;;  %1059 = vrot.lane.b32.xlu2 %v972_v40, %s5274_s5  ;;  %v1004_v36 = vsel %vm5548_vm6, %v4713_v27, %v1003_v14  ;;  %v1020_v39 = vrot.slane %v862_v34, 5  ;;  %v218_v40 = vld [vmem:[%s5362_s30 + $0xac] sm:$0xf]  ;;  %v4722_v14 = vld [vmem:[%s5362_s30 + $0x28] sm:$0xf] }
  0xa5   : > { %v704_v45 = vpop.permute.xlu1 %703  ;;  %251 = vst.msk [vmem:[#allocation2 + $0x74] sm:$0xf] %vm221_vm5, %v218_v40  ;;  %v4728_v27 = vld [vmem:[%s5362_s30 + $0x4c] sm:$0xf]  ;;  %v4730_v34 = vld [vmem:[%s5362_s30 + $0x58] sm:$0xf] }
  0xa6   : > { %793 = vst.msk [vmem:[#allocation2 + $0x1c] sm:$0xf] %vm785_vm7, %v704_v45  ;;  %v702_v49 = vpop.permute.xlu0 %701  ;;  %v718_v52 = vpop.permute.xlu2 %717  ;;  %v1012_v45 = vrot.slane %v1010_v19, 4  ;;  %v1021_v50 = vsel %vm5548_vm6, %v1019_v38, %v1020_v39  ;;  %v4726_v19 = vld [vmem:[%s5362_s30 + $0x40] sm:$0xf] }
  0xa7   : > { %792 = vst.msk [vmem:[#allocation2 + $0x18] sm:$0xf] %vm785_vm7, %v702_v49  ;;  %v216_v49 = vld [vmem:[%s5362_s30 + $0xa0] sm:$0xf]  ;;  %v4735_v38 = vld [vmem:[%s5362_s30 + $0x78] sm:$0xf] }
  0xa8   : > { %800 = vst.msk [vmem:[#allocation2 + $0x38] sm:$0xf] %vm785_vm7, %v718_v52  ;;  %v1024_v52 = vrot.slane %v864_v43, 5  ;;  %v4734_v39 = vld [vmem:[%s5362_s30 + $0x70] sm:$0xf] }
  0xa9   : > { %249 = vst.msk [vmem:[#allocation2 + $0x6c] sm:$0xf] %vm221_vm5, %v216_v49  ;;  %v4733_v40 = vld [vmem:[%s5362_s30 + $0x6c] sm:$0xf]  ;;  %vm4471_vm5 = vcmask 1045509  }
  0xaa   : > { %v1026_v57 = vrot.slane %v1024_v52, 4  ;;  %v1025_v3 = vsel %vm5548_vm6, %v4716_v60, %v1024_v52  ;;  %v4739_v52 = vld [vmem:[%s5362_s30 + $0x90] sm:$0xf]  ;;  %v4744_v60 = vld [vmem:[%s5362_s30 + $0xac] sm:$0xf] }
  0xab   : > { %1069 = vrot.lane.b32.xlu1 %v990_v54, %s5274_s5  ;;  %v1014_v54 = vsel %vm5548_vm6, %v1012_v45, %v1013_v46  ;;  %v4737_v45 = vld [vmem:[%s5362_s30 + $0x84] sm:$0xf]  ;;  %v4736_v46 = vld [vmem:[%s5362_s30 + $0x7c] sm:$0xf] }
  0xac   : > { %1067 = vrot.lane.b32.xlu0 %v986_v56, %s5274_s5  ;;  %1065 = vrot.lane.b32.xlu2 %v983_v59, %s5274_s5  ;;  %v1028_v2 = vsel %vm5548_vm6, %v1026_v57, %v1027_v58  ;;  %v1413_v58 = vshll.u32 %v4750_v53, 16 }
  0xad   : > { %v710_v0 = vpop.permute.xlu1 %709 }
  0xae   : > { %796 = vst.msk [vmem:[#allocation2 + $0x28] sm:$0xf] %vm785_vm7, %v710_v0  ;;  %v708_v4 = vpop.permute.xlu0 %707  ;;  %v724_v8 = vpop.permute.xlu2 %723  ;;  %v4717_v0 = vld [vmem:[%s5362_s30 + $0xc] sm:$0xf] }
  0xaf   : > { %795 = vst.msk [vmem:[#allocation2 + $0x24] sm:$0xf] %vm785_vm7, %v708_v4 }
  0xb0   : > { %803 = vst.msk [vmem:[#allocation2 + $0x44] sm:$0xf] %vm785_vm7, %v724_v8  ;;  %v4719_v8 = vld [vmem:[%s5362_s30 + $0x18] sm:$0xf] }
  0xb3   : > { %1075 = vrot.lane.b32.xlu1 %v1000_v10, %s5274_s5 }
  0xb4   : > { %1073 = vrot.lane.b32.xlu0 %v997_v12, %s5274_s5  ;;  %1071 = vrot.lane.b32.xlu2 %v993_v16, %s5274_s5 }
  0xb5   : > { %v716_v21 = vpop.permute.xlu1 %715 }
  0xb6   : > { %799 = vst.msk [vmem:[#allocation2 + $0x34] sm:$0xf] %vm785_vm7, %v716_v21  ;;  %v714_v26 = vpop.permute.xlu0 %713  ;;  %v730_v29 = vpop.permute.xlu2 %729  ;;  %v4724_v21 = vld [vmem:[%s5362_s30 + $0x34] sm:$0xf] }
  0xb7   : > { %798 = vst.msk [vmem:[#allocation2 + $0x30] sm:$0xf] %vm785_vm7, %v714_v26  ;;  %v4729_v26 = vld [vmem:[%s5362_s30 + $0x54] sm:$0xf] }
  0xb8   : > { %806 = vst.msk [vmem:[#allocation2 + $0x50] sm:$0xf] %vm785_vm7, %v730_v29 }
  0xbb   : > { %1081 = vrot.lane.b32.xlu1 %v1011_v31, %s5274_s5 }
  0xbc   : > { %1079 = vrot.lane.b32.xlu0 %v1007_v33, %s5274_s5  ;;  %1077 = vrot.lane.b32.xlu2 %v1004_v36, %s5274_s5  ;;  %v4731_v33 = vld [vmem:[%s5362_s30 + $0x60] sm:$0xf] }
  0xbd   : > { %v722_v41 = vpop.permute.xlu1 %721 }
  0xbe   : > { %802 = vst.msk [vmem:[#allocation2 + $0x40] sm:$0xf] %vm785_vm7, %v722_v41  ;;  %v720_v44 = vpop.permute.xlu0 %719  ;;  %v736_v48 = vpop.permute.xlu2 %735 }
  0xbf   : > { %801 = vst.msk [vmem:[#allocation2 + $0x3c] sm:$0xf] %vm785_vm7, %v720_v44  ;;  %v4738_v44 = vld [vmem:[%s5362_s30 + $0x88] sm:$0xf] }
  0xc0   : > { %809 = vst.msk [vmem:[#allocation2 + $0x5c] sm:$0xf] %vm785_vm7, %v736_v48 }
  0xc3   : > { %1087 = vrot.lane.b32.xlu1 %v1021_v50, %s5274_s5  ;;  %v4741_v50 = vld [vmem:[%s5362_s30 + $0x9c] sm:$0xf] }
  0xc4   : > { %1085 = vrot.lane.b32.xlu0 %v1018_v51, %s5274_s5  ;;  %1083 = vrot.lane.b32.xlu2 %v1014_v54, %s5274_s5  ;;  %v4740_v51 = vld [vmem:[%s5362_s30 + $0x94] sm:$0xf] }
  0xc5   : > { %v728_v56 = vpop.permute.xlu1 %727 }
  0xc6   : > { %805 = vst.msk [vmem:[#allocation2 + $0x4c] sm:$0xf] %vm785_vm7, %v728_v56  ;;  %v726_v59 = vpop.permute.xlu0 %725  ;;  %v742_v62 = vpop.permute.xlu2 %741  ;;  %v4749_v56 = vld [vmem:[%s5362_s30 + $0xc] sm:$0xf] }
  0xc7   : > { %804 = vst.msk [vmem:[#allocation2 + $0x48] sm:$0xf] %vm785_vm7, %v726_v59  ;;  %v1417_v59 = vshrl.u32 %v4750_v53, 16  ;;  %v1407_v63 = vshll.u32 %v4749_v56, 16  ;;  %v4748_v53 = vld [vmem:[%s5362_s30 + $0xc4] sm:$0xf] }
  0xc8   : > { %812 = vst.msk [vmem:[#allocation2 + $0x68] sm:$0xf] %vm785_vm7, %v742_v62  ;;  %v1404_v62 = vshrl.u32 %v4749_v56, 16 }
  0xcb   : > { %1226 = vrot.lane.b32.xlu1 %v4717_v0, %s5275_s6  ;;  %v4742_v0 = vld [vmem:[%s5362_s30 + $0xa0] sm:$0xf] }
  0xcc   : > { %1091 = vrot.lane.b32.xlu0 %v1028_v2, %s5274_s5  ;;  %1089 = vrot.lane.b32.xlu2 %v1025_v3, %s5274_s5  ;;  %v5860_v2 = vrot.slane %v1413_v58, 5  ;;  %v1419_v3 = vrot.slane %v1417_v59, 4 }
  0xcd   : > { %v734_v4 = vpop.permute.xlu1 %733 }
  0xce   : > { %808 = vst.msk [vmem:[#allocation2 + $0x58] sm:$0xf] %vm785_vm7, %v734_v4  ;;  %v732_v5 = vpop.permute.xlu0 %731  ;;  %v748_v6 = vpop.permute.xlu2 %747  ;;  %v4751_v4 = vld [vmem:[%s5362_s30 + $0x14] sm:$0x1] }
  0xcf   : > { %807 = vst.msk [vmem:[#allocation2 + $0x54] sm:$0xf] %vm785_vm7, %v732_v5 }
  0xd0   : > { %815 = vst.msk [vmem:[#allocation2 + $0x74] sm:$0xf] %vm785_vm7, %v748_v6  ;;  %v1406_v6 = vrot.slane %v1404_v62, 4  ;;  %v4764_v62 = vld [vmem:[%s5362_s30 + $0x48] sm:$0xf] }
  0xd3   : > { %1232 = vrot.lane.b32.xlu1 %v4720_v7, %s5275_s6  ;;  %v1409_v7 = vrot.slane %v1407_v63, 5 }
  0xd4   : > { %1230 = vrot.lane.b32.xlu0 %v4719_v8, %s5275_s6  ;;  %1228 = vrot.lane.b32.xlu2 %v4718_v9, %s5275_s6  ;;  %v4755_v8 = vld [vmem:[%s5362_s30 + $0x24] sm:$0xf] }
  0xd5   : > { %v740_v10 = vpop.permute.xlu1 %739 }
  0xd6   : > { %811 = vst.msk [vmem:[#allocation2 + $0x64] sm:$0xf] %vm785_vm7, %v740_v10  ;;  %v738_v11 = vpop.permute.xlu0 %737  ;;  %v1030_v12 = vpop.permute.xlu2 %1029  ;;  %v4753_v10 = vld [vmem:[%s5362_s30 + $0x1c] sm:$0xf] }
  0xd7   : > { %810 = vst.msk [vmem:[#allocation2 + $0x60] sm:$0xf] %vm785_vm7, %v738_v11  ;;  %v1420_v11 = vor.u32 %v1419_v3, %v5860_v2  ;;  %v4762_v3 = vld [vmem:[%s5362_s30 + $0x40] sm:$0xf] }
  0xd8   : > { %1126 = vst.msk [vmem:[#allocation2] sm:$0xf] %vm1125_vm8, %v1030_v12  ;;  %v1423_v12 = vshll.u32 %v4751_v4, 16 }
  0xdb   : > { %1238 = vrot.lane.b32.xlu1 %v4723_v13, %s5275_s6 }
  0xdc   : > { %1236 = vrot.lane.b32.xlu0 %v4722_v14, %s5275_s6  ;;  %1234 = vrot.lane.b32.xlu2 %v4721_v15, %s5275_s6  ;;  %v4752_v14 = vld [vmem:[%s5362_s30 + $0x18] sm:$0xf]  ;;  %v4747_v15 = vld [vmem:[%s5362_s30 + $0xc0] sm:$0xf] }
  0xdd   : > { %v746_v16 = vpop.permute.xlu1 %745 }
  0xde   : > { %814 = vst.msk [vmem:[#allocation2 + $0x70] sm:$0xf] %vm785_vm7, %v746_v16  ;;  %v744_v17 = vpop.permute.xlu0 %743  ;;  %v1036_v18 = vpop.permute.xlu2 %1035  ;;  %v1452_v16 = vshrl.u32 %v4755_v8, 16 }
  0xdf   : > { %813 = vst.msk [vmem:[#allocation2 + $0x6c] sm:$0xf] %vm785_vm7, %v744_v17  ;;  %v1455_v17 = vshll.u32 %v4755_v8, 16 }
  0xe0   : > { %1129 = vst.msk [vmem:[#allocation2 + $0xc] sm:$0xf] %vm1125_vm8, %v1036_v18  ;;  %v4746_v18 = vld [vmem:[%s5362_s30 + $0xb8] sm:$0xf] }
  0xe3   : > { %1244 = vrot.lane.b32.xlu1 %v4726_v19, %s5275_s6  ;;  %v1410_v19 = vor.u32 %v1409_v7, %v1406_v6  ;;  %v4761_v7 = vld [vmem:[%s5362_s30 + $0x3c] sm:$0xf] }
  0xe4   : > { %1242 = vrot.lane.b32.xlu0 %v4725_v20, %s5275_s6  ;;  %1240 = vrot.lane.b32.xlu2 %v4724_v21, %s5275_s6  ;;  %v1437_v20 = vshll.u32 %v4753_v10, 16  ;;  %v1441_v21 = vshrl.u32 %v4753_v10, 16 }
  0xe5   : > { %v752_v22 = vpop.permute.xlu1 %751 }
  0xe6   : > { %817 = vst.msk [vmem:[#allocation2 + $0x7c] sm:$0xf] %vm785_vm7, %v752_v22  ;;  %v750_v23 = vpop.permute.xlu0 %749  ;;  %v1042_v24 = vpop.permute.xlu2 %1041  ;;  %v4745_v22 = vld [vmem:[%s5362_s30 + $0xb4] sm:$0xf] }
  0xe7   : > { %816 = vst.msk [vmem:[#allocation2 + $0x78] sm:$0xf] %vm785_vm7, %v750_v23  ;;  %v1428_v23 = vshrl.u32 %v4752_v14, 16  ;;  %vm4477_vm7 = vcmask 1047559  }
  0xe8   : > { %1132 = vst.msk [vmem:[#allocation2 + $0x18] sm:$0xf] %vm1125_vm8, %v1042_v24  ;;  %v1431_v24 = vshll.u32 %v4752_v14, 16 }
  0xeb   : > { %1250 = vrot.lane.b32.xlu1 %v4729_v26, %s5275_s6  ;;  %v1421_v26 = vrot.slane %v1420_v11, 4 }
  0xec   : > { %1248 = vrot.lane.b32.xlu0 %v4728_v27, %s5275_s6  ;;  %1246 = vrot.lane.b32.xlu2 %v4727_v28, %s5275_s6  ;;  %v1425_v27 = vrot.slane %v1423_v12, 5  ;;  %v1454_v28 = vrot.slane %v1452_v16, 4  ;;  %v1524_v12 = vshrl.u32 %v4764_v62, 16  ;;  %v1509_v16 = vshll.u32 %v4762_v3, 16 }
  0xed   : > { %v1034_v29 = vpop.permute.xlu1 %1033 }
  0xee   : > { %1128 = vst.msk [vmem:[#allocation2 + $0x8] sm:$0xf] %vm1125_vm8, %v1034_v29  ;;  %v1032_v30 = vpop.permute.xlu0 %1031  ;;  %v1048_v31 = vpop.permute.xlu2 %1047  ;;  %v1457_v29 = vrot.slane %v1455_v17, 5  ;;  %v1513_v17 = vshrl.u32 %v4762_v3, 16 }
  0xef   : > { %1127 = vst.msk [vmem:[#allocation2 + $0x4] sm:$0xf] %vm1125_vm8, %v1032_v30  ;;  %v4759_v30 = vld [vmem:[%s5362_s30 + $0x34] sm:$0xf] }
  0xf0   : > { %1135 = vst.msk [vmem:[#allocation2 + $0x24] sm:$0xf] %vm1125_vm8, %v1048_v31  ;;  %v4758_v31 = vld [vmem:[%s5362_s30 + $0x30] sm:$0xf] }
  0xf3   : > { %1256 = vrot.lane.b32.xlu1 %v4732_v32, %s5275_s6 }
  0xf4   : > { %1254 = vrot.lane.b32.xlu0 %v4731_v33, %s5275_s6  ;;  %1252 = vrot.lane.b32.xlu2 %v4730_v34, %s5275_s6  ;;  %v1411_v33 = vrot.slane %v1410_v19, 4  ;;  %v4756_v34 = vld [vmem:[%s5362_s30 + $0x28] sm:$0xf]  ;;  %v4768_v19 = vld [vmem:[%s5362_s30 + $0x58] sm:$0xf] }
  0xf5   : > { %v1040_v35 = vpop.permute.xlu1 %1039 }
  0xf6   : > { %1131 = vst.msk [vmem:[#allocation2 + $0x14] sm:$0xf] %vm1125_vm8, %v1040_v35  ;;  %v1038_v36 = vpop.permute.xlu0 %1037  ;;  %v1054_v37 = vpop.permute.xlu2 %1053  ;;  %v5881_v35 = vrot.slane %v1437_v20, 5  ;;  %v1500_v20 = vshrl.u32 %v4761_v7, 16 }
  0xf7   : > { %1130 = vst.msk [vmem:[#allocation2 + $0x10] sm:$0xf] %vm1125_vm8, %v1038_v36  ;;  %v1443_v36 = vrot.slane %v1441_v21, 4  ;;  %v1503_v21 = vshll.u32 %v4761_v7, 16  ;;  %v4771_v7 = vld [vmem:[%s5362_s30 + $0x64] sm:$0xf] }
  0xf8   : > { %1138 = vst.msk [vmem:[#allocation2 + $0x30] sm:$0xf] %vm1125_vm8, %v1054_v37 }
  0xfb   : > { %1262 = vrot.lane.b32.xlu1 %v4735_v38, %s5275_s6  ;;  %v4754_v38 = vld [vmem:[%s5362_s30 + $0x20] sm:$0x1] }
  0xfc   : > { %1260 = vrot.lane.b32.xlu0 %v4734_v39, %s5275_s6  ;;  %1258 = vrot.lane.b32.xlu2 %v4733_v40, %s5275_s6  ;;  %v1430_v39 = vrot.slane %v1428_v23, 4  ;;  %v1433_v40 = vrot.slane %v1431_v24, 5 }
  0xfd   : > { %v1046_v41 = vpop.permute.xlu1 %1045 }
  0xfe   : > { %1134 = vst.msk [vmem:[#allocation2 + $0x20] sm:$0xf] %vm1125_vm8, %v1046_v41  ;;  %v1044_v42 = vpop.permute.xlu0 %1043  ;;  %v1060_v43 = vpop.permute.xlu2 %1059 }
  0xff   : > { %1133 = vst.msk [vmem:[#allocation2 + $0x1c] sm:$0xf] %vm1125_vm8, %v1044_v42  ;;  %v1485_v42 = vshll.u32 %v4759_v30, 16 }
 0x100   : > { %1141 = vst.msk [vmem:[#allocation2 + $0x3c] sm:$0xf] %vm1125_vm8, %v1060_v43  ;;  %v1489_v43 = vshrl.u32 %v4759_v30, 16  ;;  %v1526_v30 = vrot.slane %v1524_v12, 4 }
 0x102   : > { %v1491_v56 = vrot.slane %v1489_v43, 4 }
 0x103   : > { %1268 = vrot.lane.b32.xlu1 %v4738_v44, %s5275_s6  ;;  %v1476_v44 = vshrl.u32 %v4758_v31, 16 }
 0x104   : > { %1266 = vrot.lane.b32.xlu0 %v4737_v45, %s5275_s6  ;;  %1264 = vrot.lane.b32.xlu2 %v4736_v46, %s5275_s6  ;;  %v1479_v45 = vshll.u32 %v4758_v31, 16  ;;  %v1426_v46 = vsel %vm5373_vm2, %v1421_v26, %v1425_v27 }
 0x105   : > { %v1052_v47 = vpop.permute.xlu1 %1051 }
 0x106   : > { %1137 = vst.msk [vmem:[#allocation2 + $0x2c] sm:$0xf] %vm1125_vm8, %v1052_v47  ;;  %v1050_v48 = vpop.permute.xlu0 %1049  ;;  %v1066_v49 = vpop.permute.xlu2 %1065  ;;  %v1458_v47 = vor.u32 %v1457_v29, %v1454_v28  ;;  %v1481_v58 = vrot.slane %v1479_v45, 5  ;;  %v4765_v29 = vld [vmem:[%s5362_s30 + $0x4c] sm:$0xf] }
 0x107   : > { %1136 = vst.msk [vmem:[#allocation2 + $0x28] sm:$0xf] %vm1125_vm8, %v1050_v48  ;;  %v1461_v48 = vshll.u32 %v4756_v34, 16 }
 0x108   : > { %1144 = vst.msk [vmem:[#allocation2 + $0x48] sm:$0xf] %vm1125_vm8, %v1066_v49  ;;  %v1416_v49 = vsel %vm5373_vm2, %v1411_v33, %v5860_v2  ;;  %v1459_v59 = vrot.slane %v1458_v47, 4  ;;  %v5920_v33 = vrot.slane %v1509_v16, 5 }
 0x10b   : > { %1274 = vrot.lane.b32.xlu1 %v4741_v50, %s5275_s6  ;;  %v1444_v50 = vor.u32 %v1443_v36, %v5881_v35  ;;  %v1557_v36 = vshll.u32 %v4768_v19, 16 }
 0x10c   : > { %1272 = vrot.lane.b32.xlu0 %v4740_v51, %s5275_s6  ;;  %1270 = vrot.lane.b32.xlu2 %v4739_v52, %s5275_s6  ;;  %v1447_v51 = vshll.u32 %v4754_v38, 16  ;;  %v1465_v52 = vshrl.u32 %v4756_v34, 16  ;;  %v1515_v34 = vrot.slane %v1513_v17, 4  ;;  %v4767_v38 = vld [vmem:[%s5362_s30 + $0x54] sm:$0xf]  ;;  %v1581_v17 = vshll.u32 %v4771_v7, 16 }
 0x10d   : > { %v1058_v54 = vpop.permute.xlu1 %1057 }
 0x10e   : > { %1140 = vst.msk [vmem:[#allocation2 + $0x38] sm:$0xf] %vm1125_vm8, %v1058_v54  ;;  %v1056_v55 = vpop.permute.xlu0 %1055  ;;  %v1072_v57 = vpop.permute.xlu2 %1071  ;;  %v1434_v54 = vor.u32 %v1433_v40, %v1430_v39  ;;  %v1449_v2 = vrot.slane %v1447_v51, 5  ;;  %v1467_v6 = vrot.slane %v1465_v52, 4  ;;  %v1502_v39 = vrot.slane %v1500_v20, 4 }
 0x10f   : > { %1139 = vst.msk [vmem:[#allocation2 + $0x34] sm:$0xf] %vm1125_vm8, %v1056_v55  ;;  %v5895_v55 = vrot.slane %v1485_v42, 5  ;;  %v1505_v40 = vrot.slane %v1503_v21, 5  ;;  %v1548_v51 = vshrl.u32 %v4767_v38, 16  ;;  %v5933_v52 = vrot.slane %v1557_v36, 5 }
 0x110   : > { %1147 = vst.msk [vmem:[#allocation2 + $0x54] sm:$0xf] %vm1125_vm8, %v1072_v57  ;;  %v1478_v57 = vrot.slane %v1476_v44, 4 }
 0x111   : > { %v1492_v8 = vor.u32 %v1491_v56, %v5895_v55  ;;  %v1506_v56 = vor.u32 %v1505_v40, %v1502_v39 }
 0x112   : > { %v1482_v10 = vor.u32 %v1481_v58, %v1478_v57  ;;  %v1537_v57 = vshrl.u32 %v4765_v29, 16 }
 0x113   : > { %1280 = vrot.lane.b32.xlu1 %v4744_v60, %s5275_s6  ;;  %v1463_v60 = vrot.slane %v1461_v48, 5  ;;  %v1493_v26 = vrot.slane %v1492_v8, 4 }
 0x114   : > { %1278 = vrot.lane.b32.xlu0 %v4743_v61, %s5275_s6  ;;  %1276 = vrot.lane.b32.xlu2 %v4742_v0, %s5275_s6  ;;  %v4760_v61 = vld [vmem:[%s5362_s30 + $0x38] sm:$0x1]  ;;  %v1445_v0 = vrot.slane %v1444_v50, 4  ;;  %v1483_v28 = vrot.slane %v1482_v10, 4 }
 0x115   : > { %v1064_v5 = vpop.permute.xlu1 %1063  ;;  %v1464_v14 = vsel %vm5373_vm2, %v1459_v59, %v1463_v60  ;;  %v1468_v23 = vor.u32 %v1467_v6, %v1463_v60  ;;  %v4773_v60 = vld [vmem:[%s5362_s30 + $0x6c] sm:$0xf]  ;;  %v1507_v6 = vrot.slane %v1506_v56, 4 }
 0x116   : > { %1143 = vst.msk [vmem:[#allocation2 + $0x44] sm:$0xf] %vm1125_vm8, %v1064_v5  ;;  %v1062_v9 = vpop.permute.xlu0 %1061  ;;  %v1078_v13 = vpop.permute.xlu2 %1077  ;;  %v1435_v5 = vrot.slane %v1434_v54, 4  ;;  %v1488_v45 = vsel %vm5373_vm2, %v1483_v28, %v5895_v55  ;;  %v1551_v54 = vshll.u32 %v4767_v38, 16  ;;  %v4769_v55 = vld [vmem:[%s5362_s30 + $0x5c] sm:$0x1] }
 0x117   : > { %1142 = vst.msk [vmem:[#allocation2 + $0x40] sm:$0xf] %vm1125_vm8, %v1062_v9  ;;  %v1495_v9 = vshll.u32 %v4760_v61, 16  ;;  %v1469_v42 = vrot.slane %v1468_v23, 4  ;;  %v1599_v10 = vshll.u32 %v4773_v60, 16 }
 0x118   : > { %1150 = vst.msk [vmem:[#allocation2 + $0x60] sm:$0xf] %vm1125_vm8, %v1078_v13  ;;  %v4757_v13 = vld [vmem:[%s5362_s30 + $0x2c] sm:$0x1]  ;;  %v4772_v38 = vld [vmem:[%s5362_s30 + $0x68] sm:$0x1] }
 0x119   : > { %v1471_v24 = vshll.u32 %v4757_v13, 16  ;;  %v1497_v27 = vrot.slane %v1495_v9, 5  ;;  %v1596_v9 = vshrl.u32 %v4773_v60, 16  ;;  %v4766_v13 = vld [vmem:[%s5362_s30 + $0x50] sm:$0x1] }
 0x11b   : > { %1286 = vrot.lane.b32.xlu1 %v4747_v15, %s5275_s6  ;;  %v1527_v15 = vshll.u32 %v4764_v62, 16  ;;  %v1473_v43 = vrot.slane %v1471_v24, 5  ;;  %v1498_v44 = vsel %vm5373_vm2, %v1493_v26, %v1497_v27  ;;  %v1543_v24 = vshll.u32 %v4766_v13, 16 }
 0x11c   : > { %1284 = vrot.lane.b32.xlu0 %v4746_v18, %s5275_s6  ;;  %1282 = vrot.lane.b32.xlu2 %v4745_v22, %s5275_s6  ;;  %v1450_v18 = vsel %vm5373_vm2, %v1445_v0, %v1449_v2  ;;  %v1440_v22 = vsel %vm5373_vm2, %v1435_v5, %v5881_v35  ;;  %v1561_v35 = vshrl.u32 %v4768_v19, 16  ;;  %v1550_v0 = vrot.slane %v1548_v51, 4 }
 0x11d   : > { %v1070_v32 = vpop.permute.xlu1 %1069  ;;  %v1529_v31 = vrot.slane %v1527_v15, 5  ;;  %v1474_v58 = vsel %vm5373_vm2, %v1469_v42, %v1473_v43  ;;  %v1553_v5 = vrot.slane %v1551_v54, 5  ;;  %v1598_v28 = vrot.slane %v1596_v9, 4  ;;  %v4779_v9 = vld [vmem:[%s5362_s30 + $0x84] sm:$0xf] }
 0x11e   : > { %1146 = vst.msk [vmem:[#allocation2 + $0x50] sm:$0xf] %vm1125_vm8, %v1070_v32  ;;  %v1068_v37 = vpop.permute.xlu0 %1067  ;;  %v1084_v41 = vpop.permute.xlu2 %1083  ;;  %v4763_v32 = vld [vmem:[%s5362_s30 + $0x44] sm:$0x1] }
 0x11f   : > { %1145 = vst.msk [vmem:[#allocation2 + $0x4c] sm:$0xf] %vm1125_vm8, %v1068_v37  ;;  %v1530_v48 = vor.u32 %v1529_v31, %v1526_v30  ;;  %v1519_v50 = vshll.u32 %v4763_v32, 16  ;;  %v1554_v21 = vor.u32 %v1553_v5, %v1550_v0  ;;  %v5958_v30 = vrot.slane %v1581_v17, 5  ;;  %v4777_v32 = vld [vmem:[%s5362_s30 + $0x7c] sm:$0xf] }
 0x120   : > { %1153 = vst.msk [vmem:[#allocation2 + $0x6c] sm:$0xf] %vm1125_vm8, %v1084_v41  ;;  %v4780_v5 = vld [vmem:[%s5362_s30 + $0x88] sm:$0xf] }
 0x121   : > { %v1531_v61 = vrot.slane %v1530_v48, 4 }
 0x123   : > { %1789 = vrot.lane.b32.xlu1 %v1426_v46, %s5276_s7  ;;  %v1533_v46 = vshll.u32 %v4765_v29, 16  ;;  %v1601_v29 = vrot.slane %v1599_v10, 5 }
 0x124   : > { %1787 = vrot.lane.b32.xlu0 %v1416_v49, %s5276_s7  ;;  %1288 = vrot.lane.b32.xlu2 %v4748_v53, %s5275_s6  ;;  %v1516_v49 = vor.u32 %v1515_v34, %v5920_v33  ;;  %v1563_v53 = vrot.slane %v1561_v35, 4  ;;  %v4776_v34 = vld [vmem:[%s5362_s30 + $0x78] sm:$0xf]  ;;  %v4774_v35 = vld [vmem:[%s5362_s30 + $0x70] sm:$0xf] }
 0x125   : > { %v1076_v63 = vpop.permute.xlu1 %1075  ;;  %v1535_v59 = vrot.slane %v1533_v46, 5  ;;  %v1633_v46 = vshrl.u32 %v4777_v32, 16  ;;  %v1623_v48 = vshll.u32 %v4776_v34, 16  ;;  %v1609_v56 = vshrl.u32 %v4774_v35, 16 }
 0x126   : > { %1149 = vst.msk [vmem:[#allocation2 + $0x5c] sm:$0xf] %vm1125_vm8, %v1076_v63  ;;  %v1074_v4 = vpop.permute.xlu0 %1073  ;;  %v1090_v11 = vpop.permute.xlu2 %1089  ;;  %v1517_v62 = vrot.slane %v1516_v49, 4  ;;  %v1521_v63 = vrot.slane %v1519_v50, 5  ;;  %v1564_v3 = vor.u32 %v1563_v53, %v5933_v52  ;;  %v1602_v49 = vor.u32 %v1601_v29, %v1598_v28 }
 0x127   : > { %1148 = vst.msk [vmem:[#allocation2 + $0x58] sm:$0xf] %vm1125_vm8, %v1074_v4  ;;  %v1567_v4 = vshll.u32 %v4769_v55, 16  ;;  %v1536_v15 = vsel %vm5373_vm2, %v1531_v61, %v1535_v59  ;;  %v1605_v50 = vshll.u32 %v4774_v35, 16  ;;  %v1591_v53 = vshll.u32 %v4772_v38, 16 }
 0x128   : > { %1156 = vst.msk [vmem:[#allocation2 + $0x78] sm:$0xf] %vm1125_vm8, %v1090_v11  ;;  %v1539_v11 = vrot.slane %v1537_v57, 4  ;;  %v1522_v16 = vsel %vm5373_vm2, %v1517_v62, %v1521_v63  ;;  %v1565_v19 = vrot.slane %v1564_v3, 4  ;;  %v1625_v61 = vrot.slane %v1623_v48, 5 }
 0x129   : > { %v1569_v20 = vrot.slane %v1567_v4, 5  ;;  %v1603_v62 = vrot.slane %v1602_v49, 4  ;;  %v1607_v63 = vrot.slane %v1605_v50, 5  ;;  %v1593_v0 = vrot.slane %v1591_v53, 5  ;;  %v4782_v4 = vld [vmem:[%s5362_s30 + $0x90] sm:$0xf] }
 0x12a   : > { %v1540_v23 = vor.u32 %v1539_v11, %v1535_v59  ;;  %v1635_v59 = vrot.slane %v1633_v46, 4  ;;  %v1668_v17 = vshrl.u32 %v4782_v4, 16 }
 0x12b   : > { %1795 = vrot.lane.b32.xlu1 %v1464_v14, %s5276_s7  ;;  %v4770_v14 = vld [vmem:[%s5362_s30 + $0x60] sm:$0xf] }
 0x12c   : > { %1793 = vrot.lane.b32.xlu0 %v1450_v18, %s5276_s7  ;;  %1791 = vrot.lane.b32.xlu2 %v1440_v22, %s5276_s7  ;;  %v1585_v18 = vshrl.u32 %v4771_v7, 16  ;;  %v1512_v22 = vsel %vm5373_vm2, %v1507_v6, %v5920_v33  ;;  %v1572_v26 = vshrl.u32 %v4770_v14, 16  ;;  %v1575_v27 = vshll.u32 %v4770_v14, 16  ;;  %v4775_v14 = vld [vmem:[%s5362_s30 + $0x74] sm:$0x1] }
 0x12d   : > { %v1082_v37 = vpop.permute.xlu1 %1081  ;;  %v1570_v33 = vsel %vm5373_vm2, %v1565_v19, %v1569_v20  ;;  %v1541_v40 = vrot.slane %v1540_v23, 4  ;;  %v1653_v19 = vshll.u32 %v4780_v5, 16  ;;  %v1657_v20 = vshrl.u32 %v4780_v5, 16 }
 0x12e   : > { %1152 = vst.msk [vmem:[#allocation2 + $0x68] sm:$0xf] %vm1125_vm8, %v1082_v37  ;;  %v1080_v41 = vpop.permute.xlu0 %1079  ;;  %v1229_v47 = vpop.permute.xlu2 %1228  ;;  %v1587_v31 = vrot.slane %v1585_v18, 4  ;;  %v1555_v37 = vrot.slane %v1554_v21, 4  ;;  %v1574_v42 = vrot.slane %v1572_v26, 4  ;;  %v1577_v43 = vrot.slane %v1575_v27, 5 }
 0x12f   : > { %1151 = vst.msk [vmem:[#allocation2 + $0x64] sm:$0xf] %vm1125_vm8, %v1080_v41  ;;  %v1545_v41 = vrot.slane %v1543_v24, 5  ;;  %v1671_v18 = vshll.u32 %v4782_v4, 16  ;;  %v1644_v21 = vshrl.u32 %v4779_v9, 16  ;;  %v1615_v26 = vshll.u32 %v4775_v14, 16 }
 0x130   : > { %1324 = vst.msk [vmem:[#allocation2 + $0x4] sm:$0xf] %vm1322_vm9, %v1229_v47  ;;  %v1620_v47 = vshrl.u32 %v4776_v34, 16  ;;  %v1588_v51 = vor.u32 %v1587_v31, %v5958_v30  ;;  %v1560_v54 = vsel %vm5373_vm2, %v1555_v37, %v5933_v52  ;;  %v1670_v31 = vrot.slane %v1668_v17, 4  ;;  %v4786_v34 = vld [vmem:[%s5362_s30 + $0xa0] sm:$0xf] }
 0x131   : > { %v1546_v57 = vsel %vm5373_vm2, %v1541_v40, %v1545_v41  ;;  %v4783_v37 = vld [vmem:[%s5362_s30 + $0x94] sm:$0xf]  ;;  %v6003_v35 = vrot.slane %v1653_v19, 5  ;;  %v1646_v38 = vrot.slane %v1644_v21, 4  ;;  %v4781_v41 = vld [vmem:[%s5362_s30 + $0x8c] sm:$0x1] }
 0x132   : > { %v1622_v60 = vrot.slane %v1620_v47, 4  ;;  %v1589_v52 = vrot.slane %v1588_v51, 4  ;;  %v1705_v46 = vshrl.u32 %v4786_v34, 16  ;;  %v1677_v51 = vshll.u32 %v4783_v37, 16  ;;  %v4784_v14 = vld [vmem:[%s5362_s30 + $0x98] sm:$0x1] }
 0x133   : > { %1801 = vrot.lane.b32.xlu1 %v1498_v44, %s5276_s7 }
 0x134   : > { %1799 = vrot.lane.b32.xlu0 %v1488_v45, %s5276_s7  ;;  %1797 = vrot.lane.b32.xlu2 %v1474_v58, %s5276_s7  ;;  %v1629_v45 = vshll.u32 %v4777_v32, 16  ;;  %v1578_v58 = vor.u32 %v1577_v43, %v1574_v42  ;;  %v1673_v32 = vrot.slane %v1671_v18, 5  ;;  %v1617_v43 = vrot.slane %v1615_v26, 5 }
 0x135   : > { %v1088_v2 = vpop.permute.xlu1 %1087 }
 0x136   : > { %1155 = vst.msk [vmem:[#allocation2 + $0x74] sm:$0xf] %vm1125_vm8, %v1088_v2  ;;  %v1086_v8 = vpop.permute.xlu0 %1085  ;;  %v1235_v12 = vpop.permute.xlu2 %1234  ;;  %v5977_v55 = vrot.slane %v1629_v45, 5  ;;  %v4778_v2 = vld [vmem:[%s5362_s30 + $0x80] sm:$0x1]  ;;  %v1579_v7 = vrot.slane %v1578_v58, 4  ;;  %v1674_v50 = vor.u32 %v1673_v32, %v1670_v31 }
 0x137   : > { %1154 = vst.msk [vmem:[#allocation2 + $0x70] sm:$0xf] %vm1125_vm8, %v1086_v8  ;;  %v1611_v8 = vrot.slane %v1609_v56, 4  ;;  %v1639_v11 = vshll.u32 %v4778_v2, 16  ;;  %v1701_v45 = vshll.u32 %v4786_v34, 16  ;;  %v1663_v56 = vshll.u32 %v4781_v41, 16 }
 0x138   : > { %1327 = vst.msk [vmem:[#allocation2 + $0x10] sm:$0xf] %vm1322_vm9, %v1235_v12  ;;  %v1636_v10 = vor.u32 %v1635_v59, %v5977_v55  ;;  %v1626_v12 = vor.u32 %v1625_v61, %v1622_v60  ;;  %v1584_v23 = vsel %vm5373_vm2, %v1579_v7, %v5958_v30  ;;  %v1659_v30 = vrot.slane %v1657_v20, 4  ;;  %v4787_v60 = vld [vmem:[%s5362_s30 + $0xa4] sm:$0x1] }
 0x139   : > { %v1612_v24 = vor.u32 %v1611_v8, %v1607_v63  ;;  %v1641_v28 = vrot.slane %v1639_v11, 5  ;;  %v1681_v58 = vshrl.u32 %v4783_v37, 16  ;;  %v6019_v61 = vrot.slane %v1701_v45, 5  ;;  %v4792_v32 = vld [vmem:[%s5362_s30 + $0xb8] sm:$0xf] }
 0x13a   : > { %v1637_v27 = vrot.slane %v1636_v10, 4  ;;  %v1627_v29 = vrot.slane %v1626_v12, 4  ;;  %v1665_v4 = vrot.slane %v1663_v56, 5  ;;  %v1711_v8 = vshll.u32 %v4787_v60, 16 }
 0x13b   : > { %1807 = vrot.lane.b32.xlu1 %v1536_v15, %s5276_s7  ;;  %v1608_v15 = vsel %vm5373_vm2, %v1603_v62, %v1607_v63  ;;  %v1613_v42 = vrot.slane %v1612_v24, 4  ;;  %v1707_v62 = vrot.slane %v1705_v46, 4  ;;  %v1683_v10 = vrot.slane %v1681_v58, 4 }
 0x13c   : > { %1805 = vrot.lane.b32.xlu0 %v1522_v16, %s5276_s7  ;;  %1803 = vrot.lane.b32.xlu2 %v1512_v22, %s5276_s7  ;;  %v1594_v16 = vsel %vm5373_vm2, %v1589_v52, %v1593_v0  ;;  %v1647_v22 = vshll.u32 %v4779_v9, 16  ;;  %v1642_v49 = vsel %vm5373_vm2, %v1637_v27, %v1641_v28  ;;  %v1632_v53 = vsel %vm5373_vm2, %v1627_v29, %v5977_v55  ;;  %v4789_v9 = vld [vmem:[%s5362_s30 + $0xac] sm:$0xf] }
 0x13d   : > { %v1227_v36 = vpop.permute.xlu1 %1226  ;;  %v1618_v59 = vsel %vm5373_vm2, %v1613_v42, %v1617_v43  ;;  %v1675_v55 = vrot.slane %v1674_v50, 4  ;;  %v1679_v0 = vrot.slane %v1677_v51, 5  ;;  %v1708_v11 = vor.u32 %v1707_v62, %v6019_v61 }
 0x13e   : > { %1323 = vst.msk [vmem:[#allocation2] sm:$0xf] %vm1322_vm9, %v1227_v36  ;;  %v1092_v39 = vpop.permute.xlu0 %1091  ;;  %v1241_v44 = vpop.permute.xlu2 %1240  ;;  %v4785_v36 = vld [vmem:[%s5362_s30 + $0x9c] sm:$0xf]  ;;  %v1725_v21 = vshll.u32 %v4789_v9, 16  ;;  %v1687_v24 = vshll.u32 %v4784_v14, 16 }
 0x13f   : > { %1157 = vst.msk [vmem:[#allocation2 + $0x7c] sm:$0xf] %vm1125_vm8, %v1092_v39  ;;  %v1649_v39 = vrot.slane %v1647_v22, 5  ;;  %v1692_v47 = vshrl.u32 %v4785_v36, 16  ;;  %v1695_v48 = vshll.u32 %v4785_v36, 16  ;;  %v1729_v22 = vshrl.u32 %v4789_v9, 16 }
 0x140   : > { %1330 = vst.msk [vmem:[#allocation2 + $0x1c] sm:$0xf] %vm1322_vm9, %v1241_v44  ;;  %v1709_v28 = vrot.slane %v1708_v11, 4  ;;  %v1713_v29 = vrot.slane %v1711_v8, 5  ;;  %v1689_v42 = vrot.slane %v1687_v24, 5  ;;  %v1753_v58 = vshrl.u32 %v4792_v32, 16 }
 0x141   : > { %v1694_v63 = vrot.slane %v1692_v47, 4  ;;  %v1697_v52 = vrot.slane %v1695_v48, 5  ;;  %v4798_v24 = vld [vmem:[%s5362_s30 + $0x10] sm:$0xf] }
 0x142   : > { %v1714_v45 = vsel %vm5373_vm2, %v1709_v28, %v1713_v29  ;;  %v1755_v8 = vrot.slane %v1753_v58, 4 }
 0x143   : > { %1813 = vrot.lane.b32.xlu1 %v1570_v33, %s5276_s7  ;;  %v1698_v12 = vor.u32 %v1697_v52, %v1694_v63 }
 0x144   : > { %1811 = vrot.lane.b32.xlu0 %v1560_v54, %s5276_s7  ;;  %1809 = vrot.lane.b32.xlu2 %v1546_v57, %s5276_s7  ;;  %v1660_v54 = vor.u32 %v1659_v30, %v6003_v35  ;;  %v1650_v57 = vor.u32 %v1649_v39, %v1646_v38  ;;  %v1731_v30 = vrot.slane %v1729_v22, 4  ;;  %v4795_v38 = vld [vmem:[%s5362_s30 + $0xc4] sm:$0xf]  ;;  %v4794_v39 = vld [vmem:[%s5362_s30 + $0xc0] sm:$0xf] }
 0x145   : > { %v1233_v3 = vpop.permute.xlu1 %1232  ;;  %v1699_v31 = vrot.slane %v1698_v12, 4  ;;  %v1773_v50 = vshll.u32 %v4795_v38, 16  ;;  %v1777_v51 = vshrl.u32 %v4795_v38, 16  ;;  %v1764_v56 = vshrl.u32 %v4794_v39, 16 }
 0x146   : > { %1326 = vst.msk [vmem:[#allocation2 + $0xc] sm:$0xf] %vm1322_vm9, %v1233_v3  ;;  %v1231_v6 = vpop.permute.xlu0 %1230  ;;  %v1247_v13 = vpop.permute.xlu2 %1246  ;;  %v1661_v3 = vrot.slane %v1660_v54, 4  ;;  %v1651_v5 = vrot.slane %v1650_v57, 4  ;;  %v1767_v57 = vshll.u32 %v4794_v39, 16 }
 0x147   : > { %1325 = vst.msk [vmem:[#allocation2 + $0x8] sm:$0xf] %vm1322_vm9, %v1231_v6  ;;  %v4791_v6 = vld [vmem:[%s5362_s30 + $0xb4] sm:$0xf]  ;;  %v1704_v46 = vsel %vm5373_vm2, %v1699_v31, %v6019_v61  ;;  %v1775_v63 = vrot.slane %v1773_v50, 5  ;;  %v1779_v52 = vrot.slane %v1777_v51, 4 }
 0x148   : > { %1333 = vst.msk [vmem:[#allocation2 + $0x28] sm:$0xf] %vm1322_vm9, %v1247_v13  ;;  %v1740_v17 = vshrl.u32 %v4791_v6, 16  ;;  %v1743_v18 = vshll.u32 %v4791_v6, 16  ;;  %v1666_v19 = vsel %vm5373_vm2, %v1661_v3, %v1665_v4  ;;  %v1656_v20 = vsel %vm5373_vm2, %v1651_v5, %v6003_v35  ;;  %v4796_v3 = vld [vmem:[%s5362_s30 + $0xc8] sm:$0x1] }
 0x149   : > { %v1727_v35 = vrot.slane %v1725_v21, 5  ;;  %v1766_v4 = vrot.slane %v1764_v56, 4  ;;  %v1769_v5 = vrot.slane %v1767_v57, 5  ;;  %v1780_v12 = vor.u32 %v1779_v52, %v1775_v63  ;;  %v4803_v50 = vld [vmem:[%s5362_s30 + $0x24] sm:$0xe] }
 0x14a   : > { %v1742_v34 = vrot.slane %v1740_v17, 4  ;;  %v1745_v36 = vrot.slane %v1743_v18, 5  ;;  %v4847_v58 = vrot.slane %v4803_v50, 9 }
 0x14b   : > { %1819 = vrot.lane.b32.xlu1 %v1608_v15, %s5276_s7  ;;  %v4788_v15 = vld [vmem:[%s5362_s30 + $0xa8] sm:$0xf] }
 0x14c   : > { %1817 = vrot.lane.b32.xlu0 %v1594_v16, %s5276_s7  ;;  %1815 = vrot.lane.b32.xlu2 %v1584_v23, %s5276_s7  ;;  %v1680_v16 = vsel %vm5373_vm2, %v1675_v55, %v1679_v0  ;;  %v1684_v23 = vor.u32 %v1683_v10, %v1679_v0  ;;  %v1716_v26 = vshrl.u32 %v4788_v15, 16  ;;  %v1719_v27 = vshll.u32 %v4788_v15, 16  ;;  %v4793_v10 = vld [vmem:[%s5362_s30 + $0xbc] sm:$0x1] }
 0x14d   : > { %v1239_v33 = vpop.permute.xlu1 %1238  ;;  %v1746_v48 = vor.u32 %v1745_v36, %v1742_v34  ;;  %v1770_v15 = vor.u32 %v1769_v5, %v1766_v4  ;;  %v1759_v18 = vshll.u32 %v4793_v10, 16  ;;  %v4801_v34 = vld [vmem:[%s5362_s30 + $0x1c] sm:$0xf]  ;;  %v2014_v36 = vrot.slane %v4798_v24, 5  ;;  %v4808_v4 = vld [vmem:[%s5362_s30 + $0x38] sm:$0x1] }
 0x14e   : > { %1329 = vst.msk [vmem:[#allocation2 + $0x18] sm:$0xf] %vm1322_vm9, %v1239_v33  ;;  %v1237_v40 = vpop.permute.xlu0 %1236  ;;  %v1253_v44 = vpop.permute.xlu2 %1252  ;;  %v4790_v33 = vld [vmem:[%s5362_s30 + $0xb0] sm:$0x1]  ;;  %v1685_v41 = vrot.slane %v1684_v23, 4  ;;  %v1718_v43 = vrot.slane %v1716_v26, 4 }
 0x14f   : > { %1328 = vst.msk [vmem:[#allocation2 + $0x14] sm:$0xf] %vm1322_vm9, %v1237_v40  ;;  %v1735_v54 = vshll.u32 %v4790_v33, 16  ;;  %v1747_v61 = vrot.slane %v1746_v48, 4  ;;  %v1771_v22 = vrot.slane %v1770_v15, 4  ;;  %v2021_v38 = vrot.slane %v4801_v34, 5 }
 0x150   : > { %1336 = vst.msk [vmem:[#allocation2 + $0x34] sm:$0xf] %vm1322_vm9, %v1253_v44  ;;  %v1721_v44 = vrot.slane %v1719_v27, 5  ;;  %v1761_v27 = vrot.slane %v1759_v18, 5  ;;  %v4799_v33 = vld [vmem:[%s5362_s30 + $0x14] sm:$0x1] }
 0x151   : > { %v1776_v31 = vsel %vm5373_vm2, %v1771_v22, %v1775_v63  ;;  %v4811_v22 = vld [vmem:[%s5362_s30 + $0x44] sm:$0x1] }
 0x152   : > { %v1722_v60 = vor.u32 %v1721_v44, %v1718_v43 }
 0x153   : > { %1825 = vrot.lane.b32.xlu1 %v1642_v49, %s5276_s7  ;;  %v1749_v49 = vshll.u32 %v4792_v32, 16  ;;  %v4800_v32 = vld [vmem:[%s5362_s30 + $0x18] sm:$0xe] }
 0x154   : > { %1823 = vrot.lane.b32.xlu0 %v1632_v53, %s5276_s7  ;;  %1821 = vrot.lane.b32.xlu2 %v1618_v59, %s5276_s7  ;;  %v1732_v53 = vor.u32 %v1731_v30, %v1727_v35  ;;  %v1690_v59 = vsel %vm5373_vm2, %v1685_v41, %v1689_v42  ;;  %v4846_v30 = vrot.slane %v4800_v32, 9  ;;  %v2017_v41 = vrot.slane %v4799_v33, 5  ;;  %v4804_v42 = vld [vmem:[%s5362_s30 + $0x28] sm:$0xf] }
 0x155   : > { %v1245_v2 = vpop.permute.xlu1 %1244  ;;  %v1751_v62 = vrot.slane %v1749_v49, 5  ;;  %v4805_v49 = vld [vmem:[%s5362_s30 + $0x2c] sm:$0x1]  ;;  %v2045_v32 = vrot.slane %v4811_v22, 5 }
 0x156   : > { %1332 = vst.msk [vmem:[#allocation2 + $0x24] sm:$0xf] %vm1322_vm9, %v1245_v2  ;;  %v1243_v7 = vpop.permute.xlu0 %1242  ;;  %v1259_v13 = vpop.permute.xlu2 %1258  ;;  %v1733_v0 = vrot.slane %v1732_v53, 4  ;;  %v1737_v2 = vrot.slane %v1735_v54, 5  ;;  %v4802_v53 = vld [vmem:[%s5362_s30 + $0x20] sm:$0x1] }
 0x157   : > { %1331 = vst.msk [vmem:[#allocation2 + $0x20] sm:$0xf] %vm1322_vm9, %v1243_v7  ;;  %v1723_v7 = vrot.slane %v1722_v60, 4  ;;  %v1752_v11 = vsel %vm5373_vm2, %v1747_v61, %v1751_v62  ;;  %v1756_v17 = vor.u32 %v1755_v8, %v1751_v62  ;;  %v2031_v56 = vrot.slane %v4805_v49, 5  ;;  %v4807_v60 = vld [vmem:[%s5362_s30 + $0x34] sm:$0xf] }
 0x158   : > { %1339 = vst.msk [vmem:[#allocation2 + $0x40] sm:$0xf] %vm1322_vm9, %v1259_v13  ;;  %v1783_v13 = vshll.u32 %v4796_v3, 16  ;;  %v1738_v14 = vsel %vm5373_vm2, %v1733_v0, %v1737_v2  ;;  %v2023_v61 = vrot.slane %v2021_v38, 4  ;;  %v2024_v62 = vrot.slane %v4802_v53, 5 }
 0x159   : > { %v1757_v26 = vrot.slane %v1756_v17, 4  ;;  %v4809_v0 = vld [vmem:[%s5362_s30 + $0x3c] sm:$0xe]  ;;  %v4810_v2 = vld [vmem:[%s5362_s30 + $0x40] sm:$0xf]  ;;  %v2035_v3 = vrot.slane %v4807_v60, 5 }
 0x15a   : > { %v2025_v5 = vsel %vm5548_vm6, %v2023_v61, %v2024_v62  ;;  %v2042_v8 = vrot.slane %v4810_v2, 5 }
 0x15b   : > { %1831 = vrot.lane.b32.xlu1 %v1680_v16, %s5276_s7  ;;  %v1728_v16 = vsel %vm5373_vm2, %v1723_v7, %v1727_v35  ;;  %v4797_v35 = vld [vmem:[%s5362_s30 + $0xc] sm:$0xe]  ;;  %v4849_v7 = vrot.slane %v4809_v0, 9  ;;  %v2037_v10 = vrot.slane %v2035_v3, 4 }
 0x15c   : > { %1829 = vrot.lane.b32.xlu0 %v1666_v19, %s5276_s7  ;;  %1827 = vrot.lane.b32.xlu2 %v1656_v20, %s5276_s7  ;;  %v1781_v19 = vrot.slane %v1780_v12, 4  ;;  %v1785_v20 = vrot.slane %v1783_v13, 5  ;;  %v4845_v44 = vrot.slane %v4797_v35, 9  ;;  %v4813_v12 = vld [vmem:[%s5362_s30 + $0x4c] sm:$0xf] }
 0x15d   : > { %v1251_v37 = vpop.permute.xlu1 %1250  ;;  %v2049_v17 = vrot.slane %v4813_v12, 5  ;;  %v4819_v35 = vld [vmem:[%s5362_s30 + $0x64] sm:$0xf] }
 0x15e   : > { %1335 = vst.msk [vmem:[#allocation2 + $0x30] sm:$0xf] %vm1322_vm9, %v1251_v37  ;;  %v1249_v40 = vpop.permute.xlu0 %1248  ;;  %v1265_v47 = vpop.permute.xlu2 %1264  ;;  %v1786_v29 = vsel %vm5373_vm2, %v1781_v19, %v1785_v20  ;;  %v1762_v37 = vsel %vm5373_vm2, %v1757_v26, %v1761_v27  ;;  %v2015_v51 = vsel %vm5548_vm6, %v4845_v44, %v2014_v36  ;;  %v4814_v19 = vld [vmem:[%s5362_s30 + $0x50] sm:$0x1]  ;;  %v4812_v20 = vld [vmem:[%s5362_s30 + $0x48] sm:$0xe] }
 0x15f   : > { %1334 = vst.msk [vmem:[#allocation2 + $0x2c] sm:$0xf] %vm1322_vm9, %v1249_v40  ;;  %v2016_v40 = vrot.slane %v2014_v36, 4  ;;  %v2052_v24 = vrot.slane %v4814_v19, 5  ;;  %v4850_v27 = vrot.slane %v4812_v20, 9 }
 0x160   : > { %1342 = vst.msk [vmem:[#allocation2 + $0x4c] sm:$0xf] %vm1322_vm9, %v1265_v47  ;;  %v2028_v47 = vrot.slane %v4804_v42, 5  ;;  %v2063_v42 = vrot.slane %v4819_v35, 5 }
 0x161   : > { %v2018_v48 = vsel %vm5548_vm6, %v2016_v40, %v2017_v41  ;;  %v2050_v33 = vsel %vm5548_vm6, %v4850_v27, %v2049_v17  ;;  %v4815_v40 = vld [vmem:[%s5362_s30 + $0x54] sm:$0xe]  ;;  %v4829_v27 = vld [vmem:[%s5362_s30 + $0x8c] sm:$0x1] }
 0x162   : > { %v2030_v54 = vrot.slane %v2028_v47, 4 }
 0x163   : > { %1837 = vrot.lane.b32.xlu1 %v1714_v45, %s5276_s7 }
 0x164   : > { %1835 = vrot.lane.b32.xlu0 %v1704_v46, %s5276_s7  ;;  %1833 = vrot.lane.b32.xlu2 %v1690_v59, %s5276_s7  ;;  %v2022_v46 = vsel %vm5548_vm6, %v4846_v30, %v2021_v38  ;;  %v2032_v52 = vsel %vm5548_vm6, %v2030_v54, %v2031_v56  ;;  %v4817_v38 = vld [vmem:[%s5362_s30 + $0x5c] sm:$0x1]  ;;  %v4823_v54 = vld [vmem:[%s5362_s30 + $0x74] sm:$0x1] }
 0x165   : > { %v1257_v55 = vpop.permute.xlu1 %1256  ;;  %v4821_v56 = vld [vmem:[%s5362_s30 + $0x6c] sm:$0xe]  ;;  %v2073_v60 = vrot.slane %v4823_v54, 5 }
 0x166   : > { %1338 = vst.msk [vmem:[#allocation2 + $0x3c] sm:$0xf] %vm1322_vm9, %v1257_v55  ;;  %v1255_v6 = vpop.permute.xlu0 %1254  ;;  %v1271_v9 = vpop.permute.xlu2 %1270  ;;  %v2029_v55 = vsel %vm5548_vm6, %v4847_v58, %v2028_v47  ;;  %v4820_v58 = vld [vmem:[%s5362_s30 + $0x68] sm:$0x1]  ;;  %v4853_v62 = vrot.slane %v4821_v56, 9 }
 0x167   : > { %1337 = vst.msk [vmem:[#allocation2 + $0x38] sm:$0xf] %vm1322_vm9, %v1255_v6  ;;  %v4806_v6 = vld [vmem:[%s5362_s30 + $0x30] sm:$0xe]  ;;  %v2066_v0 = vrot.slane %v4820_v58, 5 }
 0x168   : > { %1345 = vst.msk [vmem:[#allocation2 + $0x58] sm:$0xf] %vm1322_vm9, %v1271_v9 }
 0x16b   : > { %1843 = vrot.lane.b32.xlu1 %v1752_v11, %s5276_s7  ;;  %v2038_v11 = vrot.slane %v4808_v4, 5 }
 0x16c   : > { %1841 = vrot.lane.b32.xlu0 %v1738_v14, %s5276_s7  ;;  %1839 = vrot.lane.b32.xlu2 %v1728_v16, %s5276_s7  ;;  %v4848_v14 = vrot.slane %v4806_v6, 9  ;;  %v2043_v16 = vsel %vm5548_vm6, %v4849_v7, %v2042_v8  ;;  %v4828_v6 = vld [vmem:[%s5362_s30 + $0x88] sm:$0xf] }
 0x16d   : > { %v1263_v21 = vpop.permute.xlu1 %1262  ;;  %v2039_v18 = vsel %vm5548_vm6, %v2037_v10, %v2038_v11  ;;  %v4824_v10 = vld [vmem:[%s5362_s30 + $0x78] sm:$0xe]  ;;  %v2084_v12 = vrot.slane %v4828_v6, 5 }
 0x16e   : > { %1341 = vst.msk [vmem:[#allocation2 + $0x48] sm:$0xf] %vm1322_vm9, %v1263_v21  ;;  %v1261_v23 = vpop.permute.xlu0 %1260  ;;  %v1277_v28 = vpop.permute.xlu2 %1276  ;;  %v2036_v21 = vsel %vm5548_vm6, %v4848_v14, %v2035_v3 }
 0x16f   : > { %1340 = vst.msk [vmem:[#allocation2 + $0x44] sm:$0xf] %vm1322_vm9, %v1261_v23  ;;  %v2051_v23 = vrot.slane %v2049_v17, 4 }
 0x170   : > { %1348 = vst.msk [vmem:[#allocation2 + $0x64] sm:$0xf] %vm1322_vm9, %v1277_v28 }
 0x171   : > { %v2053_v36 = vsel %vm5548_vm6, %v2051_v23, %v2052_v24  ;;  %v4832_v23 = vld [vmem:[%s5362_s30 + $0x98] sm:$0x1]  ;;  %v4830_v24 = vld [vmem:[%s5362_s30 + $0x90] sm:$0xe] }
 0x173   : > { %1849 = vrot.lane.b32.xlu1 %v1786_v29, %s5276_s7  ;;  %v4816_v29 = vld [vmem:[%s5362_s30 + $0x58] sm:$0xf] }
 0x174   : > { %1847 = vrot.lane.b32.xlu0 %v1776_v31, %s5276_s7  ;;  %1845 = vrot.lane.b32.xlu2 %v1762_v37, %s5276_s7  ;;  %v2044_v31 = vrot.slane %v2042_v8, 4  ;;  %v4818_v37 = vld [vmem:[%s5362_s30 + $0x60] sm:$0xe]  ;;  %v2056_v30 = vrot.slane %v4816_v29, 5  ;;  %v4826_v8 = vld [vmem:[%s5362_s30 + $0x80] sm:$0x1] }
 0x175   : > { %v1269_v39 = vpop.permute.xlu1 %1268  ;;  %v4852_v41 = vrot.slane %v4818_v37, 9  ;;  %v2094_v29 = vrot.slane %v4832_v23, 5  ;;  %v2087_v37 = vrot.slane %v4829_v27, 5  ;;  %v4863_v27 = vld [vmem:[%s5362_s30 + $0x24] sm:$0xf] }
 0x176   : > { %1344 = vst.msk [vmem:[#allocation2 + $0x54] sm:$0xf] %vm1322_vm9, %v1269_v39  ;;  %v1267_v43 = vpop.permute.xlu0 %1266  ;;  %v1283_v45 = vpop.permute.xlu2 %1282  ;;  %v2046_v39 = vsel %vm5548_vm6, %v2044_v31, %v2045_v32  ;;  %v2058_v44 = vrot.slane %v2056_v30, 4  ;;  %v4856_v32 = vrot.slane %v4830_v24, 9 }
 0x177   : > { %1343 = vst.msk [vmem:[#allocation2 + $0x50] sm:$0xf] %vm1322_vm9, %v1267_v43  ;;  %v2064_v50 = vsel %vm5548_vm6, %v4852_v41, %v2063_v42 }
 0x178   : > { %1351 = vst.msk [vmem:[#allocation2 + $0x70] sm:$0xf] %vm1322_vm9, %v1283_v45  ;;  %v2059_v45 = vrot.slane %v4817_v38, 5 }
 0x17a   : > { %v2060_v53 = vsel %vm5548_vm6, %v2058_v44, %v2059_v45  ;;  %v4833_v44 = vld [vmem:[%s5362_s30 + $0x9c] sm:$0xe] }
 0x17b   : > { %2128 = vrot.lane.b32.xlu1 %v2022_v46, %s5277_s8  ;;  %v4822_v46 = vld [vmem:[%s5362_s30 + $0x70] sm:$0xf] }
 0x17c   : > { %2126 = vrot.lane.b32.xlu0 %v2018_v48, %s5277_s8  ;;  %2124 = vrot.lane.b32.xlu2 %v2015_v51, %s5277_s8  ;;  %v4851_v48 = vrot.slane %v4815_v40, 9  ;;  %v2070_v51 = vrot.slane %v4822_v46, 5  ;;  %v4837_v40 = vld [vmem:[%s5362_s30 + $0xac] sm:$0xf] }
 0x17d   : > { %v1275_v57 = vpop.permute.xlu1 %1274  ;;  %v2105_v46 = vrot.slane %v4837_v40, 5  ;;  %v4865_v40 = vld [vmem:[%s5362_s30 + $0x30] sm:$0xf] }
 0x17e   : > { %1347 = vst.msk [vmem:[#allocation2 + $0x60] sm:$0xf] %vm1322_vm9, %v1275_v57  ;;  %v1273_v59 = vpop.permute.xlu0 %1272  ;;  %v1289_v63 = vpop.permute.xlu2 %1288  ;;  %v2057_v57 = vsel %vm5548_vm6, %v4851_v48, %v2056_v30  ;;  %v2071_v4 = vsel %vm5548_vm6, %v4853_v62, %v2070_v51  ;;  %v4838_v62 = vld [vmem:[%s5362_s30 + $0xb0] sm:$0x1] }
 0x17f   : > { %1346 = vst.msk [vmem:[#allocation2 + $0x5c] sm:$0xf] %vm1322_vm9, %v1273_v59  ;;  %v2072_v59 = vrot.slane %v2070_v51, 4 }
 0x180   : > { %1354 = vst.msk [vmem:[#allocation2 + $0x7c] sm:$0xf] %vm1322_vm9, %v1289_v63 }
 0x181   : > { %v2074_v3 = vsel %vm5548_vm6, %v2072_v59, %v2073_v60  ;;  %v4841_v59 = vld [vmem:[%s5362_s30 + $0xbc] sm:$0x1]  ;;  %v4839_v60 = vld [vmem:[%s5362_s30 + $0xb4] sm:$0xe] }
 0x183   : > { %2134 = vrot.lane.b32.xlu1 %v2032_v52, %s5277_s8  ;;  %v4825_v52 = vld [vmem:[%s5362_s30 + $0x7c] sm:$0xf] }
 0x184   : > { %2132 = vrot.lane.b32.xlu0 %v2029_v55, %s5277_s8  ;;  %2130 = vrot.lane.b32.xlu2 %v2025_v5, %s5277_s8  ;;  %v2065_v55 = vrot.slane %v2063_v42, 4  ;;  %v4827_v5 = vld [vmem:[%s5362_s30 + $0x84] sm:$0xe]  ;;  %v2077_v7 = vrot.slane %v4825_v52, 5  ;;  %v4835_v42 = vld [vmem:[%s5362_s30 + $0xa4] sm:$0x1] }
 0x185   : > { %v1281_v9 = vpop.permute.xlu1 %1280  ;;  %v4855_v11 = vrot.slane %v4827_v5, 9  ;;  %v2115_v52 = vrot.slane %v4841_v59, 5  ;;  %v2108_v5 = vrot.slane %v4838_v62, 5 }
 0x186   : > { %1350 = vst.msk [vmem:[#allocation2 + $0x6c] sm:$0xf] %vm1322_vm9, %v1281_v9  ;;  %v1279_v13 = vpop.permute.xlu0 %1278  ;;  %v1792_v15 = vpop.permute.xlu2 %1791  ;;  %v2067_v9 = vsel %vm5548_vm6, %v2065_v55, %v2066_v0  ;;  %v2079_v14 = vrot.slane %v2077_v7, 4  ;;  %v4859_v0 = vrot.slane %v4839_v60, 9  ;;  %v4877_v60 = vld [vmem:[%s5362_s30 + $0x78] sm:$0xf] }
 0x187   : > { %1349 = vst.msk [vmem:[#allocation2 + $0x68] sm:$0xf] %vm1322_vm9, %v1279_v13  ;;  %v2085_v20 = vsel %vm5548_vm6, %v4855_v11, %v2084_v12 }
 0x188   : > { %1886 = vst.msk [vmem:[#allocation2 + $0x8] sm:$0xf] %vm1883_vm10, %v1792_v15  ;;  %v2080_v15 = vrot.slane %v4826_v8, 5 }
 0x18a   : > { %v2081_v22 = vsel %vm5548_vm6, %v2079_v14, %v2080_v15 }
 0x18b   : > { %2140 = vrot.lane.b32.xlu1 %v2043_v16, %s5277_s8  ;;  %v4831_v16 = vld [vmem:[%s5362_s30 + $0x94] sm:$0xf] }
 0x18c   : > { %2138 = vrot.lane.b32.xlu0 %v2039_v18, %s5277_s8  ;;  %2136 = vrot.lane.b32.xlu2 %v2036_v21, %s5277_s8  ;;  %v4854_v18 = vrot.slane %v4824_v10, 9  ;;  %v2091_v21 = vrot.slane %v4831_v16, 5  ;;  %v4844_v10 = vld [vmem:[%s5362_s30 + $0xc8] sm:$0x1] }
 0x18d   : > { %v1287_v26 = vpop.permute.xlu1 %1286  ;;  %v2122_v15 = vrot.slane %v4844_v10, 5 }
 0x18e   : > { %1353 = vst.msk [vmem:[#allocation2 + $0x78] sm:$0xf] %vm1322_vm9, %v1287_v26  ;;  %v1285_v28 = vpop.permute.xlu0 %1284  ;;  %v1798_v34 = vpop.permute.xlu2 %1797  ;;  %v2078_v26 = vsel %vm5548_vm6, %v4854_v18, %v2077_v7  ;;  %v2092_v38 = vsel %vm5548_vm6, %v4856_v32, %v2091_v21 }
 0x18f   : > { %1352 = vst.msk [vmem:[#allocation2 + $0x74] sm:$0xf] %vm1322_vm9, %v1285_v28  ;;  %v2093_v28 = vrot.slane %v2091_v21, 4 }
 0x190   : > { %1889 = vst.msk [vmem:[#allocation2 + $0x14] sm:$0xf] %vm1883_vm10, %v1798_v34 }
 0x191   : > { %v2095_v30 = vsel %vm5548_vm6, %v2093_v28, %v2094_v29  ;;  %v4862_v28 = vld [vmem:[%s5362_s30 + $0x1c] sm:$0xf] }
 0x193   : > { %2146 = vrot.lane.b32.xlu1 %v2053_v36, %s5277_s8  ;;  %v4834_v36 = vld [vmem:[%s5362_s30 + $0xa0] sm:$0xf] }
 0x194   : > { %2144 = vrot.lane.b32.xlu0 %v2050_v33, %s5277_s8  ;;  %2142 = vrot.lane.b32.xlu2 %v2046_v39, %s5277_s8  ;;  %v2086_v33 = vrot.slane %v2084_v12, 4  ;;  %v4836_v39 = vld [vmem:[%s5362_s30 + $0xa8] sm:$0xe]  ;;  %v2098_v41 = vrot.slane %v4834_v36, 5  ;;  %v4842_v12 = vld [vmem:[%s5362_s30 + $0xc0] sm:$0xe] }
 0x195   : > { %v1790_v43 = vpop.permute.xlu1 %1789  ;;  %v4858_v45 = vrot.slane %v4836_v39, 9 }
 0x196   : > { %1885 = vst.msk [vmem:[#allocation2 + $0x4] sm:$0xf] %vm1883_vm10, %v1790_v43  ;;  %v1788_v47 = vpop.permute.xlu0 %1787  ;;  %v1804_v49 = vpop.permute.xlu2 %1803  ;;  %v2088_v43 = vsel %vm5548_vm6, %v2086_v33, %v2087_v37  ;;  %v2100_v48 = vrot.slane %v2098_v41, 4  ;;  %v4867_v33 = vld [vmem:[%s5362_s30 + $0x3c] sm:$0xf] }
 0x197   : > { %1884 = vst.msk [vmem:[#allocation2] sm:$0xf] %vm1883_vm10, %v1788_v47  ;;  %v2106_v56 = vsel %vm5548_vm6, %v4858_v45, %v2105_v46 }
 0x198   : > { %1892 = vst.msk [vmem:[#allocation2 + $0x20] sm:$0xf] %vm1883_vm10, %v1804_v49  ;;  %v2101_v49 = vrot.slane %v4835_v42, 5 }
 0x19a   : > { %v2102_v58 = vsel %vm5548_vm6, %v2100_v48, %v2101_v49  ;;  %v4930_v48 = vld [vmem:[%s5362_s30 + $0xac] sm:$0xf] }
 0x19b   : > { %2152 = vrot.lane.b32.xlu1 %v2064_v50, %s5277_s8  ;;  %v4840_v50 = vld [vmem:[%s5362_s30 + $0xb8] sm:$0xf]  ;;  %v2800_v59 = vshrl.u32 %v4930_v48, 16 }
 0x19c   : > { %2150 = vrot.lane.b32.xlu0 %v2060_v53, %s5277_s8  ;;  %2148 = vrot.lane.b32.xlu2 %v2057_v57, %s5277_s8  ;;  %v4857_v53 = vrot.slane %v4833_v44, 9  ;;  %v2112_v57 = vrot.slane %v4840_v50, 5  ;;  %v4919_v44 = vld [vmem:[%s5362_s30 + $0x80] sm:$0x1]  ;;  %v4929_v50 = vld [vmem:[%s5362_s30 + $0xa8] sm:$0xf] }
 0x19d   : > { %v1796_v61 = vpop.permute.xlu1 %1795  ;;  %v2790_v62 = vshll.u32 %v4929_v50, 16 }
 0x19e   : > { %1888 = vst.msk [vmem:[#allocation2 + $0x10] sm:$0xf] %vm1883_vm10, %v1796_v61  ;;  %v1794_v63 = vpop.permute.xlu0 %1793  ;;  %v1810_v2 = vpop.permute.xlu2 %1809  ;;  %v2099_v61 = vsel %vm5548_vm6, %v4857_v53, %v2098_v41  ;;  %v2113_v8 = vsel %vm5548_vm6, %v4859_v0, %v2112_v57 }
 0x19f   : > { %1887 = vst.msk [vmem:[#allocation2 + $0xc] sm:$0xf] %vm1883_vm10, %v1794_v63  ;;  %v2114_v63 = vrot.slane %v2112_v57, 4 }
 0x1a0   : > { %1895 = vst.msk [vmem:[#allocation2 + $0x2c] sm:$0xf] %vm1883_vm10, %v1810_v2 }
 0x1a1   : > { %v2116_v7 = vsel %vm5548_vm6, %v2114_v63, %v2115_v52 }
 0x1a3   : > { %2158 = vrot.lane.b32.xlu1 %v2074_v3, %s5277_s8  ;;  %v4843_v3 = vld [vmem:[%s5362_s30 + $0xc4] sm:$0xf] }
 0x1a4   : > { %2156 = vrot.lane.b32.xlu0 %v2071_v4, %s5277_s8  ;;  %2154 = vrot.lane.b32.xlu2 %v2067_v9, %s5277_s8  ;;  %v2107_v4 = vrot.slane %v2105_v46, 4  ;;  %v2119_v9 = vrot.slane %v4843_v3, 5  ;;  %v2802_v3 = vrot.slane %v2800_v59, 4 }
 0x1a5   : > { %v1802_v13 = vpop.permute.xlu1 %1801 }
 0x1a6   : > { %1891 = vst.msk [vmem:[#allocation2 + $0x1c] sm:$0xf] %vm1883_vm10, %v1802_v13  ;;  %v1800_v17 = vpop.permute.xlu0 %1799  ;;  %v1816_v19 = vpop.permute.xlu2 %1815  ;;  %v2109_v11 = vsel %vm5548_vm6, %v2107_v4, %v2108_v5  ;;  %v2121_v14 = vrot.slane %v2119_v9, 4  ;;  %v4931_v5 = vld [vmem:[%s5362_s30 + $0xb0] sm:$0x1] }
 0x1a7   : > { %1890 = vst.msk [vmem:[#allocation2 + $0x18] sm:$0xf] %vm1883_vm10, %v1800_v17  ;;  %v4860_v17 = vrot.slane %v4842_v12, 9  ;;  %v4966_v12 = vld [vmem:[%s5362_s30 + $0x7c] sm:$0xf] }
 0x1a8   : > { %1898 = vst.msk [vmem:[#allocation2 + $0x38] sm:$0xf] %vm1883_vm10, %v1816_v19  ;;  %v4861_v19 = vld [vmem:[%s5362_s30 + $0x18] sm:$0xf] }
 0x1a9   : > { %v2120_v21 = vsel %vm5548_vm6, %v4860_v17, %v2119_v9 }
 0x1ab   : > { %2164 = vrot.lane.b32.xlu1 %v2085_v20, %s5277_s8  ;;  %v2123_v20 = vsel %vm5548_vm6, %v2121_v14, %v2122_v15  ;;  %v2806_v14 = vshll.u32 %v4931_v5, 16  ;;  %v4886_v15 = vld [vmem:[%s5362_s30 + $0xac] sm:$0xf] }
 0x1ac   : > { %2162 = vrot.lane.b32.xlu0 %v2081_v22, %s5277_s8  ;;  %2160 = vrot.lane.b32.xlu2 %v2078_v26, %s5277_s8  ;;  %v4864_v26 = vld [vmem:[%s5362_s30 + $0x28] sm:$0xf] }
 0x1ad   : > { %v1808_v31 = vpop.permute.xlu1 %1807 }
 0x1ae   : > { %1894 = vst.msk [vmem:[#allocation2 + $0x28] sm:$0xf] %vm1883_vm10, %v1808_v31  ;;  %v1806_v34 = vpop.permute.xlu0 %1805  ;;  %v1822_v35 = vpop.permute.xlu2 %1821  ;;  %v4918_v31 = vld [vmem:[%s5362_s30 + $0x7c] sm:$0xf] }
 0x1af   : > { %1893 = vst.msk [vmem:[#allocation2 + $0x24] sm:$0xf] %vm1883_vm10, %v1806_v34  ;;  %v4917_v34 = vld [vmem:[%s5362_s30 + $0x78] sm:$0xf]  ;;  %v2700_v37 = vshll.u32 %v4918_v31, 16 }
 0x1b0   : > { %1901 = vst.msk [vmem:[#allocation2 + $0x44] sm:$0xf] %vm1883_vm10, %v1822_v35  ;;  %v2704_v35 = vshrl.u32 %v4918_v31, 16  ;;  %v2694_v39 = vshll.u32 %v4917_v34, 16  ;;  %v4979_v31 = vld [vmem:[%s5362_s30 + $0xb0] sm:$0x1] }
 0x1b1   : > { %v2702_v41 = vrot.slane %v2700_v37, 5 }
 0x1b2   : > { %v2706_v42 = vrot.slane %v2704_v35, 4  ;;  %v2696_v46 = vrot.slane %v2694_v39, 5 }
 0x1b3   : > { %2170 = vrot.lane.b32.xlu1 %v2095_v30, %s5277_s8  ;;  %v4866_v30 = vld [vmem:[%s5362_s30 + $0x34] sm:$0xf] }
 0x1b4   : > { %2168 = vrot.lane.b32.xlu0 %v2092_v38, %s5277_s8  ;;  %2166 = vrot.lane.b32.xlu2 %v2088_v43, %s5277_s8  ;;  %v2691_v38 = vshrl.u32 %v4917_v34, 16  ;;  %v2707_v53 = vor.u32 %v2706_v42, %v2702_v41 }
 0x1b5   : > { %v1814_v47 = vpop.permute.xlu1 %1813 }
 0x1b6   : > { %1897 = vst.msk [vmem:[#allocation2 + $0x34] sm:$0xf] %vm1883_vm10, %v1814_v47  ;;  %v1812_v51 = vpop.permute.xlu0 %1811  ;;  %v1828_v54 = vpop.permute.xlu2 %1827  ;;  %v2693_v45 = vrot.slane %v2691_v38, 4  ;;  %v2708_v63 = vrot.slane %v2707_v53, 4  ;;  %v4967_v38 = vld [vmem:[%s5362_s30 + $0x80] sm:$0x1] }
 0x1b7   : > { %1896 = vst.msk [vmem:[#allocation2 + $0x30] sm:$0xf] %vm1883_vm10, %v1812_v51  ;;  %v4885_v51 = vld [vmem:[%s5362_s30 + $0xa8] sm:$0xf] }
 0x1b8   : > { %1904 = vst.msk [vmem:[#allocation2 + $0x50] sm:$0xf] %vm1883_vm10, %v1828_v54  ;;  %v2710_v54 = vshll.u32 %v4919_v44, 16  ;;  %v2697_v57 = vor.u32 %v2696_v46, %v2693_v45  ;;  %v4906_v44 = vld [vmem:[%s5362_s30 + $0x4c] sm:$0xf] }
 0x1ba   : > { %v2712_v52 = vrot.slane %v2710_v54, 5  ;;  %v2698_v0 = vrot.slane %v2697_v57, 4  ;;  %v2604_v54 = vshll.u32 %v4906_v44, 16 }
 0x1bb   : > { %2176 = vrot.lane.b32.xlu1 %v2106_v56, %s5277_s8  ;;  %v4878_v56 = vld [vmem:[%s5362_s30 + $0x7c] sm:$0xf] }
 0x1bc   : > { %2174 = vrot.lane.b32.xlu0 %v2102_v58, %s5277_s8  ;;  %2172 = vrot.lane.b32.xlu2 %v2099_v61, %s5277_s8  ;;  %v2796_v58 = vshll.u32 %v4930_v48, 16  ;;  %v2787_v61 = vshrl.u32 %v4929_v50, 16  ;;  %v2713_v9 = vsel %vm5373_vm2, %v2708_v63, %v2712_v52  ;;  %v2703_v10 = vsel %vm5373_vm2, %v2698_v0, %v2702_v41  ;;  %v4905_v48 = vld [vmem:[%s5362_s30 + $0x48] sm:$0xf] }
 0x1bd   : > { %v1820_v55 = vpop.permute.xlu1 %1819  ;;  %v2598_v59 = vshll.u32 %v4905_v48, 16  ;;  %v2606_v52 = vrot.slane %v2604_v54, 5  ;;  %v4921_v54 = vld [vmem:[%s5362_s30 + $0x88] sm:$0xf] }
 0x1be   : > { %1900 = vst.msk [vmem:[#allocation2 + $0x40] sm:$0xf] %vm1883_vm10, %v1820_v55  ;;  %v1818_v2 = vpop.permute.xlu0 %1817  ;;  %v1834_v6 = vpop.permute.xlu2 %1833 }
 0x1bf   : > { %1899 = vst.msk [vmem:[#allocation2 + $0x3c] sm:$0xf] %vm1883_vm10, %v1818_v2  ;;  %v2798_v2 = vrot.slane %v2796_v58, 5  ;;  %v2595_v58 = vshrl.u32 %v4905_v48, 16 }
 0x1c0   : > { %1907 = vst.msk [vmem:[#allocation2 + $0x5c] sm:$0xf] %vm1883_vm10, %v1834_v6  ;;  %v2789_v6 = vrot.slane %v2787_v61, 4 }
 0x1c3   : > { %2182 = vrot.lane.b32.xlu1 %v2116_v7, %s5277_s8  ;;  %v2792_v7 = vrot.slane %v2790_v62, 5 }
 0x1c4   : > { %2180 = vrot.lane.b32.xlu0 %v2113_v8, %s5277_s8  ;;  %2178 = vrot.lane.b32.xlu2 %v2109_v11, %s5277_s8  ;;  %v4965_v11 = vld [vmem:[%s5362_s30 + $0x78] sm:$0xe] }
 0x1c5   : > { %v1826_v13 = vpop.permute.xlu1 %1825  ;;  %v4997_v17 = vrot.slane %v4965_v11, 9 }
 0x1c6   : > { %1903 = vst.msk [vmem:[#allocation2 + $0x4c] sm:$0xf] %vm1883_vm10, %v1826_v13  ;;  %v1824_v16 = vpop.permute.xlu0 %1823  ;;  %v1840_v18 = vpop.permute.xlu2 %1839  ;;  %v2803_v13 = vor.u32 %v2802_v3, %v2798_v2  ;;  %v2597_v3 = vrot.slane %v2595_v58, 4 }
 0x1c7   : > { %1902 = vst.msk [vmem:[#allocation2 + $0x48] sm:$0xf] %vm1883_vm10, %v1824_v16  ;;  %v2793_v16 = vor.u32 %v2792_v7, %v2789_v6 }
 0x1c8   : > { %1910 = vst.msk [vmem:[#allocation2 + $0x68] sm:$0xf] %vm1883_vm10, %v1840_v18  ;;  %v3165_v18 = vrot.slane %v4966_v12, 5  ;;  %v4870_v12 = vld [vmem:[%s5362_s30 + $0x4c] sm:$0xf] }
 0x1ca   : > { %v3167_v46 = vrot.slane %v3165_v18, 4 }
 0x1cb   : > { %2321 = vrot.lane.b32.xlu1 %v4861_v19, %s5278_s9  ;;  %v4978_v19 = vld [vmem:[%s5362_s30 + $0xac] sm:$0xf] }
 0x1cc   : > { %2186 = vrot.lane.b32.xlu0 %v2123_v20, %s5277_s8  ;;  %2184 = vrot.lane.b32.xlu2 %v2120_v21, %s5277_s8  ;;  %v2804_v21 = vrot.slane %v2803_v13, 4 }
 0x1cd   : > { %v1832_v22 = vpop.permute.xlu1 %1831 }
 0x1ce   : > { %1906 = vst.msk [vmem:[#allocation2 + $0x58] sm:$0xf] %vm1883_vm10, %v1832_v22  ;;  %v1830_v23 = vpop.permute.xlu0 %1829  ;;  %v1846_v24 = vpop.permute.xlu2 %1845  ;;  %v2808_v22 = vrot.slane %v2806_v14, 5  ;;  %v4869_v14 = vld [vmem:[%s5362_s30 + $0x48] sm:$0xf] }
 0x1cf   : > { %1905 = vst.msk [vmem:[#allocation2 + $0x54] sm:$0xf] %vm1883_vm10, %v1830_v23  ;;  %v4893_v23 = vld [vmem:[%s5362_s30 + $0x18] sm:$0xf] }
 0x1d0   : > { %1913 = vst.msk [vmem:[#allocation2 + $0x74] sm:$0xf] %vm1883_vm10, %v1846_v24  ;;  %v2502_v34 = vshll.u32 %v4893_v23, 16 }
 0x1d3   : > { %2327 = vrot.lane.b32.xlu1 %v4864_v26, %s5278_s9  ;;  %v2794_v26 = vrot.slane %v2793_v16, 4 }
 0x1d4   : > { %2325 = vrot.lane.b32.xlu0 %v4863_v27, %s5278_s9  ;;  %2323 = vrot.lane.b32.xlu2 %v4862_v28, %s5278_s9  ;;  %v3193_v27 = vrot.slane %v4978_v19, 5 }
 0x1d5   : > { %v1838_v29 = vpop.permute.xlu1 %1837  ;;  %v2799_v37 = vsel %vm5373_vm2, %v2794_v26, %v2798_v2  ;;  %v4907_v2 = vld [vmem:[%s5362_s30 + $0x50] sm:$0x1] }
 0x1d6   : > { %1909 = vst.msk [vmem:[#allocation2 + $0x64] sm:$0xf] %vm1883_vm10, %v1838_v29  ;;  %v1836_v32 = vpop.permute.xlu0 %1835  ;;  %v2125_v36 = vpop.permute.xlu2 %2124  ;;  %v3166_v29 = vsel %vm5548_vm6, %v4997_v17, %v3165_v18  ;;  %v3195_v35 = vrot.slane %v3193_v27, 4  ;;  %v2614_v11 = vshll.u32 %v4907_v2, 16  ;;  %v4879_v2 = vld [vmem:[%s5362_s30 + $0x84] sm:$0xf] }
 0x1d7   : > { %1908 = vst.msk [vmem:[#allocation2 + $0x60] sm:$0xf] %vm1883_vm10, %v1836_v32  ;;  %v2499_v32 = vshrl.u32 %v4893_v23, 16 }
 0x1d8   : > { %2221 = vst.msk [vmem:[#allocation2] sm:$0xf] %vm2220_vm11, %v2125_v36  ;;  %v2809_v36 = vsel %vm5373_vm2, %v2804_v21, %v2808_v22  ;;  %v2616_v18 = vrot.slane %v2614_v11, 5  ;;  %v4942_v22 = vld [vmem:[%s5362_s30 + $0x1c] sm:$0xf] }
 0x1d9   : > { %v2501_v39 = vrot.slane %v2499_v32, 4  ;;  %v3109_v32 = vrot.slane %v4942_v22, 5  ;;  %v4888_v22 = vld [vmem:[%s5362_s30 + $0xb8] sm:$0xf] }
 0x1db   : > { %2333 = vrot.lane.b32.xlu1 %v4867_v33, %s5278_s9  ;;  %v4977_v33 = vld [vmem:[%s5362_s30 + $0xa8] sm:$0xe] }
 0x1dc   : > { %2331 = vrot.lane.b32.xlu0 %v4866_v30, %s5278_s9  ;;  %2329 = vrot.lane.b32.xlu2 %v4865_v40, %s5278_s9  ;;  %v3196_v30 = vrot.slane %v4979_v31, 5  ;;  %v2504_v40 = vrot.slane %v2502_v34, 5  ;;  %v5001_v42 = vrot.slane %v4977_v33, 9  ;;  %v4954_v31 = vld [vmem:[%s5362_s30 + $0x4c] sm:$0xf] }
 0x1dd   : > { %v1844_v43 = vpop.permute.xlu1 %1843  ;;  %v4943_v34 = vld [vmem:[%s5362_s30 + $0x20] sm:$0x1]  ;;  %v4941_v33 = vld [vmem:[%s5362_s30 + $0x18] sm:$0xe] }
 0x1de   : > { %1912 = vst.msk [vmem:[#allocation2 + $0x70] sm:$0xf] %vm1883_vm10, %v1844_v43  ;;  %v1842_v47 = vpop.permute.xlu0 %1841  ;;  %v2131_v49 = vpop.permute.xlu2 %2130  ;;  %v4894_v43 = vld [vmem:[%s5362_s30 + $0x1c] sm:$0xf]  ;;  %v3194_v57 = vsel %vm5548_vm6, %v5001_v42, %v3193_v27  ;;  %v4989_v42 = vrot.slane %v4941_v33, 9 }
 0x1df   : > { %1911 = vst.msk [vmem:[#allocation2 + $0x6c] sm:$0xf] %vm1883_vm10, %v1842_v47  ;;  %v3168_v47 = vrot.slane %v4967_v38, 5  ;;  %v2508_v53 = vshll.u32 %v4894_v43, 16  ;;  %v3111_v38 = vrot.slane %v3109_v32, 4 }
 0x1e0   : > { %2224 = vst.msk [vmem:[#allocation2 + $0xc] sm:$0xf] %vm2220_vm11, %v2131_v49  ;;  %v3197_v49 = vsel %vm5548_vm6, %v3195_v35, %v3196_v30  ;;  %v3137_v35 = vrot.slane %v4954_v31, 5  ;;  %v3110_v48 = vsel %vm5548_vm6, %v4989_v42, %v3109_v32  ;;  %v4970_v42 = vld [vmem:[%s5362_s30 + $0x8c] sm:$0x1] }
 0x1e1   : > { %v3169_v61 = vsel %vm5548_vm6, %v3167_v46, %v3168_v47  ;;  %v2510_v63 = vrot.slane %v2508_v53, 5 }
 0x1e2   : > { %v3139_v58 = vrot.slane %v3137_v35, 4 }
 0x1e3   : > { %2369 = vrot.lane.b32.xlu1 %v4885_v51, %s5278_s9  ;;  %v2505_v51 = vor.u32 %v2504_v40, %v2501_v39  ;;  %v3112_v39 = vrot.slane %v4943_v34, 5  ;;  %v4920_v40 = vld [vmem:[%s5362_s30 + $0x84] sm:$0xf] }
 0x1e4   : > { %2355 = vrot.lane.b32.xlu0 %v4878_v56, %s5278_s9  ;;  %2353 = vrot.lane.b32.xlu2 %v4877_v60, %s5278_s9  ;;  %v2608_v56 = vshrl.u32 %v4906_v44, 16  ;;  %v2512_v60 = vshrl.u32 %v4894_v43, 16  ;;  %v2718_v46 = vshll.u32 %v4920_v40, 16 }
 0x1e5   : > { %v1850_v55 = vpop.permute.xlu1 %1849  ;;  %v2506_v62 = vrot.slane %v2505_v51, 4  ;;  %v3113_v47 = vsel %vm5548_vm6, %v3111_v38, %v3112_v39  ;;  %v4980_v39 = vld [vmem:[%s5362_s30 + $0xb4] sm:$0xe] }
 0x1e6   : > { %1915 = vst.msk [vmem:[#allocation2 + $0x7c] sm:$0xf] %vm1883_vm10, %v1850_v55  ;;  %v1848_v4 = vpop.permute.xlu0 %1847  ;;  %v2137_v8 = vpop.permute.xlu2 %2136  ;;  %v2610_v55 = vrot.slane %v2608_v56, 4  ;;  %v2514_v6 = vrot.slane %v2512_v60, 4  ;;  %v2720_v51 = vrot.slane %v2718_v46, 5 }
 0x1e7   : > { %1914 = vst.msk [vmem:[#allocation2 + $0x78] sm:$0xf] %vm1883_vm10, %v1848_v4  ;;  %v2600_v4 = vrot.slane %v2598_v59, 5  ;;  %v4933_v56 = vld [vmem:[%s5362_s30 + $0xb8] sm:$0xf] }
 0x1e8   : > { %2227 = vst.msk [vmem:[#allocation2 + $0x18] sm:$0xf] %vm2220_vm11, %v2137_v8  ;;  %v4895_v8 = vld [vmem:[%s5362_s30 + $0x20] sm:$0x1]  ;;  %v4932_v60 = vld [vmem:[%s5362_s30 + $0xb4] sm:$0xf] }
 0x1e9   : > { %v2601_v13 = vor.u32 %v2600_v4, %v2597_v3  ;;  %v2518_v16 = vshll.u32 %v4895_v8, 16  ;;  %v2811_v3 = vshrl.u32 %v4932_v60, 16  ;;  %v2814_v4 = vshll.u32 %v4932_v60, 16 }
 0x1eb   : > { %2916 = vrot.lane.b32.xlu1 %v2713_v9, %s5279_s10  ;;  %v2511_v9 = vsel %vm5373_vm2, %v2506_v62, %v2510_v63 }
 0x1ec   : > { %2914 = vrot.lane.b32.xlu0 %v2703_v10, %s5279_s10  ;;  %2371 = vrot.lane.b32.xlu2 %v4886_v15, %s5278_s9  ;;  %v2611_v10 = vor.u32 %v2610_v55, %v2606_v52  ;;  %v2515_v15 = vor.u32 %v2514_v6, %v2510_v63  ;;  %v2820_v55 = vshll.u32 %v4933_v56, 16 }
 0x1ed   : > { %v2129_v20 = vpop.permute.xlu1 %2128 }
 0x1ee   : > { %2223 = vst.msk [vmem:[#allocation2 + $0x8] sm:$0xf] %vm2220_vm11, %v2129_v20  ;;  %v2127_v24 = vpop.permute.xlu0 %2126  ;;  %v2143_v28 = vpop.permute.xlu2 %2142  ;;  %v2612_v17 = vrot.slane %v2611_v10, 4  ;;  %v2602_v20 = vrot.slane %v2601_v13, 4  ;;  %v2516_v23 = vrot.slane %v2515_v15, 4  ;;  %v2813_v13 = vrot.slane %v2811_v3, 4 }
 0x1ef   : > { %2222 = vst.msk [vmem:[#allocation2 + $0x4] sm:$0xf] %vm2220_vm11, %v2127_v24  ;;  %v2520_v24 = vrot.slane %v2518_v16, 5 }
 0x1f0   : > { %2230 = vst.msk [vmem:[#allocation2 + $0x24] sm:$0xf] %vm2220_vm11, %v2143_v28  ;;  %v2617_v27 = vsel %vm5373_vm2, %v2612_v17, %v2616_v18  ;;  %v2607_v28 = vsel %vm5373_vm2, %v2602_v20, %v2606_v52  ;;  %v2724_v52 = vshll.u32 %v4921_v54, 16  ;;  %v4922_v18 = vld [vmem:[%s5362_s30 + $0x8c] sm:$0x1] }
 0x1f2   : > { %v2726_v8 = vrot.slane %v2724_v52, 5 }
 0x1f3   : > { %3251 = vrot.lane.b32.xlu1 %v3166_v29, %s5280_s11  ;;  %v4953_v29 = vld [vmem:[%s5362_s30 + $0x48] sm:$0xe] }
 0x1f4   : > { %2932 = vrot.lane.b32.xlu0 %v2809_v36, %s5279_s10  ;;  %2930 = vrot.lane.b32.xlu2 %v2799_v37, %s5279_s10  ;;  %v2521_v36 = vsel %vm5373_vm2, %v2516_v23, %v2520_v24  ;;  %v4993_v37 = vrot.slane %v4953_v29, 9  ;;  %v4887_v24 = vld [vmem:[%s5362_s30 + $0xb4] sm:$0xf] }
 0x1f5   : > { %v2135_v41 = vpop.permute.xlu1 %2134 }
 0x1f6   : > { %2226 = vst.msk [vmem:[#allocation2 + $0x14] sm:$0xf] %vm2220_vm11, %v2135_v41  ;;  %v2133_v45 = vpop.permute.xlu0 %2132  ;;  %v2149_v50 = vpop.permute.xlu2 %2148  ;;  %v3138_v44 = vsel %vm5548_vm6, %v4993_v37, %v3137_v35 }
 0x1f7   : > { %2225 = vst.msk [vmem:[#allocation2 + $0x10] sm:$0xf] %vm2220_vm11, %v2133_v45  ;;  %v2715_v45 = vshrl.u32 %v4920_v40, 16  ;;  %v4981_v40 = vld [vmem:[%s5362_s30 + $0xb8] sm:$0xf] }
 0x1f8   : > { %2233 = vst.msk [vmem:[#allocation2 + $0x30] sm:$0xf] %vm2220_vm11, %v2149_v50  ;;  %v3200_v46 = vrot.slane %v4981_v40, 5  ;;  %v4946_v40 = vld [vmem:[%s5362_s30 + $0x2c] sm:$0x1] }
 0x1f9   : > { %v2717_v50 = vrot.slane %v2715_v45, 4  ;;  %v5002_v45 = vrot.slane %v4980_v39, 9 }
 0x1fb   : > { %3269 = vrot.lane.b32.xlu1 %v3197_v49, %s5280_s11  ;;  %v4955_v49 = vld [vmem:[%s5362_s30 + $0x50] sm:$0x1]  ;;  %v2721_v63 = vor.u32 %v2720_v51, %v2717_v50  ;;  %v4908_v50 = vld [vmem:[%s5362_s30 + $0x54] sm:$0xf] }
 0x1fc   : > { %3267 = vrot.lane.b32.xlu0 %v3194_v57, %s5280_s11  ;;  %3253 = vrot.lane.b32.xlu2 %v3169_v61, %s5280_s11  ;;  %v3140_v59 = vrot.slane %v4955_v49, 5  ;;  %v4880_v61 = vld [vmem:[%s5362_s30 + $0x88] sm:$0xf]  ;;  %v3175_v49 = vrot.slane %v4970_v42, 5  ;;  %v2622_v60 = vshll.u32 %v4908_v50, 16 }
 0x1fd   : > { %v2141_v0 = vpop.permute.xlu1 %2140  ;;  %v4944_v42 = vld [vmem:[%s5362_s30 + $0x24] sm:$0xe] }
 0x1fe   : > { %2229 = vst.msk [vmem:[#allocation2 + $0x20] sm:$0xf] %vm2220_vm11, %v2141_v0  ;;  %v2139_v5 = vpop.permute.xlu0 %2138  ;;  %v2155_v7 = vpop.permute.xlu2 %2154  ;;  %v2824_v0 = vshrl.u32 %v4933_v56, 16  ;;  %v3141_v6 = vsel %vm5548_vm6, %v3139_v58, %v3140_v59  ;;  %v3201_v58 = vsel %vm5548_vm6, %v5002_v45, %v3200_v46  ;;  %v2619_v59 = vshrl.u32 %v4908_v50, 16 }
 0x1ff   : > { %2228 = vst.msk [vmem:[#allocation2 + $0x1c] sm:$0xf] %vm2220_vm11, %v2139_v5  ;;  %v2728_v5 = vshrl.u32 %v4921_v54, 16  ;;  %v4897_v54 = vld [vmem:[%s5362_s30 + $0x28] sm:$0xf] }
 0x200   : > { %2236 = vst.msk [vmem:[#allocation2 + $0x3c] sm:$0xf] %vm2220_vm11, %v2155_v7  ;;  %v2722_v7 = vrot.slane %v2721_v63, 4  ;;  %v2826_v10 = vrot.slane %v2824_v0, 4  ;;  %v2536_v63 = vshrl.u32 %v4897_v54, 16  ;;  %v2621_v3 = vrot.slane %v2619_v59, 4 }
 0x201   : > { %v2730_v16 = vrot.slane %v2728_v5, 4 }
 0x203   : > { %2882 = vrot.lane.b32.xlu1 %v2511_v9, %s5279_s10  ;;  %v2822_v9 = vrot.slane %v2820_v55, 5 }
 0x204   : > { %2339 = vrot.lane.b32.xlu0 %v4870_v12, %s5278_s9  ;;  %2337 = vrot.lane.b32.xlu2 %v4869_v14, %s5278_s9  ;;  %v4934_v12 = vld [vmem:[%s5362_s30 + $0xbc] sm:$0x1]  ;;  %v2816_v14 = vrot.slane %v2814_v4, 5  ;;  %v2624_v4 = vrot.slane %v2622_v60, 5  ;;  %v5115_v60 = vld [vmem:[%s7096_s1 + $0x8] sm:$0xff] }
 0x205   : > { %v2147_v19 = vpop.permute.xlu1 %2146  ;;  %v2827_v20 = vor.u32 %v2826_v10, %v2822_v9 }
 0x206   : > { %2232 = vst.msk [vmem:[#allocation2 + $0x2c] sm:$0xf] %vm2220_vm11, %v2147_v19  ;;  %v2145_v21 = vpop.permute.xlu0 %2144  ;;  %v2161_v26 = vpop.permute.xlu2 %2160  ;;  %v2727_v19 = vsel %vm5373_vm2, %v2722_v7, %v2726_v8  ;;  %v2817_v23 = vor.u32 %v2816_v14, %v2813_v13  ;;  %v4898_v7 = vld [vmem:[%s5362_s30 + $0x2c] sm:$0x1] }
 0x207   : > { %2231 = vst.msk [vmem:[#allocation2 + $0x28] sm:$0xf] %vm2220_vm11, %v2145_v21  ;;  %v2830_v21 = vshll.u32 %v4934_v12, 16 }
 0x208   : > { %2239 = vst.msk [vmem:[#allocation2 + $0x48] sm:$0xf] %vm2220_vm11, %v2161_v26  ;;  %v2731_v26 = vor.u32 %v2730_v16, %v2726_v8  ;;  %v2818_v32 = vrot.slane %v2817_v23, 4  ;;  %v4872_v16 = vld [vmem:[%s5362_s30 + $0x58] sm:$0xf] }
 0x209   : > { %v2832_v29 = vrot.slane %v2830_v21, 5  ;;  %v2542_v21 = vshll.u32 %v4898_v7, 16 }
 0x20a   : > { %v2732_v33 = vrot.slane %v2731_v26, 4  ;;  %v2823_v38 = vsel %vm5373_vm2, %v2818_v32, %v2822_v9  ;;  %v2538_v9 = vrot.slane %v2536_v63, 4  ;;  %v4945_v32 = vld [vmem:[%s5362_s30 + $0x28] sm:$0xf] }
 0x20b   : > { %2900 = vrot.lane.b32.xlu1 %v2617_v27, %s5279_s10  ;;  %v2734_v27 = vshll.u32 %v4922_v18, 16 }
 0x20c   : > { %2898 = vrot.lane.b32.xlu0 %v2607_v28, %s5279_s10  ;;  %2884 = vrot.lane.b32.xlu2 %v2521_v36, %s5279_s10  ;;  %v2828_v28 = vrot.slane %v2827_v20, 4  ;;  %v4969_v36 = vld [vmem:[%s5362_s30 + $0x88] sm:$0xf] }
 0x20d   : > { %v2153_v30 = vpop.permute.xlu1 %2152  ;;  %v2736_v37 = vrot.slane %v2734_v27, 5 }
 0x20e   : > { %2235 = vst.msk [vmem:[#allocation2 + $0x38] sm:$0xf] %vm2220_vm11, %v2153_v30  ;;  %v2151_v41 = vpop.permute.xlu0 %2150  ;;  %v2167_v43 = vpop.permute.xlu2 %2166  ;;  %v2833_v30 = vsel %vm5373_vm2, %v2828_v28, %v2832_v29 }
 0x20f   : > { %2234 = vst.msk [vmem:[#allocation2 + $0x34] sm:$0xf] %vm2220_vm11, %v2151_v41  ;;  %v3172_v41 = vrot.slane %v4969_v36, 5 }
 0x210   : > { %2242 = vst.msk [vmem:[#allocation2 + $0x54] sm:$0xf] %vm2220_vm11, %v2167_v43  ;;  %v2737_v43 = vsel %vm5373_vm2, %v2732_v33, %v2736_v37 }
 0x213   : > { %3235 = vrot.lane.b32.xlu1 %v3138_v44, %s5280_s11  ;;  %v4968_v44 = vld [vmem:[%s5362_s30 + $0x84] sm:$0xe] }
 0x214   : > { %3221 = vrot.lane.b32.xlu0 %v3113_v47, %s5280_s11  ;;  %3219 = vrot.lane.b32.xlu2 %v3110_v48, %s5280_s11  ;;  %v3174_v48 = vrot.slane %v3172_v41, 4 }
 0x215   : > { %v2159_v53 = vpop.permute.xlu1 %2158 }
 0x216   : > { %2238 = vst.msk [vmem:[#allocation2 + $0x44] sm:$0xf] %vm2220_vm11, %v2159_v53  ;;  %v2157_v57 = vpop.permute.xlu0 %2156  ;;  %v2173_v62 = vpop.permute.xlu2 %2172  ;;  %v4998_v53 = vrot.slane %v4968_v44, 9 }
 0x217   : > { %2237 = vst.msk [vmem:[#allocation2 + $0x40] sm:$0xf] %vm2220_vm11, %v2157_v57  ;;  %v4896_v57 = vld [vmem:[%s5362_s30 + $0x24] sm:$0xf] }
 0x218   : > { %2245 = vst.msk [vmem:[#allocation2 + $0x60] sm:$0xf] %vm2220_vm11, %v2173_v62  ;;  %v2532_v62 = vshll.u32 %v4897_v54, 16  ;;  %v3173_v52 = vsel %vm5548_vm6, %v4998_v53, %v3172_v41  ;;  %v2523_v55 = vshrl.u32 %v4896_v57, 16  ;;  %v2526_v0 = vshll.u32 %v4896_v57, 16 }
 0x219   : > { %v3384_v41 = vld [vmem:[%s7096_s1 + $0x10] sm:$0x3]  ;;  %v4957_v53 = vld [vmem:[%s5362_s30 + $0x58] sm:$0xf] }
 0x21a   : > { %v2534_v8 = vrot.slane %v2532_v62, 5  ;;  %v2525_v13 = vrot.slane %v2523_v55, 4  ;;  %v2528_v14 = vrot.slane %v2526_v0, 5  ;;  %v3144_v63 = vrot.slane %v4957_v53, 5  ;;  %v4956_v0 = vld [vmem:[%s5362_s30 + $0x54] sm:$0xe] }
 0x21b   : > { %2359 = vrot.lane.b32.xlu1 %v4880_v61, %s5278_s9  ;;  %v3176_v61 = vsel %vm5548_vm6, %v3174_v48, %v3175_v49  ;;  %v3119_v48 = vrot.slane %v4946_v40, 5  ;;  %v4882_v40 = vld [vmem:[%s5362_s30 + $0x94] sm:$0xf]  ;;  %v4937_v53 = vld [vmem:[%s5362_s30 + $0xc8] sm:$0x1] }
 0x21c   : > { %2357 = vrot.lane.b32.xlu0 %v4879_v2, %s5278_s9  ;;  %3237 = vrot.lane.b32.xlu2 %v3141_v6, %s5280_s11  ;;  %v4982_v2 = vld [vmem:[%s5362_s30 + $0xbc] sm:$0x1]  ;;  %v4909_v6 = vld [vmem:[%s5362_s30 + $0x58] sm:$0xf]  ;;  %v2539_v20 = vor.u32 %v2538_v9, %v2534_v8 }
 0x21d   : > { %v2165_v11 = vpop.permute.xlu1 %2164  ;;  %v3203_v12 = vrot.slane %v4982_v2, 5  ;;  %v2628_v18 = vshll.u32 %v4909_v6, 16  ;;  %v5114_v2 = vld [vmem:[%s7096_s1] sm:$0xff]  ;;  %v4924_v9 = vld [vmem:[%s5362_s30 + $0x94] sm:$0xf] }
 0x21e   : > { %2241 = vst.msk [vmem:[#allocation2 + $0x50] sm:$0xf] %vm2220_vm11, %v2165_v11  ;;  %v2163_v15 = vpop.permute.xlu0 %2162  ;;  %v2179_v17 = vpop.permute.xlu2 %2178  ;;  %v3202_v11 = vrot.slane %v3200_v46, 4  ;;  %v2540_v29 = vrot.slane %v2539_v20, 4  ;;  %v3474_v46 = vunpack.c.l.b16 %v3384_v41 }
 0x21f   : > { %2240 = vst.msk [vmem:[#allocation2 + $0x4c] sm:$0xf] %vm2220_vm11, %v2163_v15  ;;  %v2630_v27 = vrot.slane %v2628_v18, 5 }
 0x220   : > { %2248 = vst.msk [vmem:[#allocation2 + $0x6c] sm:$0xf] %vm2220_vm11, %v2179_v17  ;;  %v2625_v17 = vor.u32 %v2624_v4, %v2621_v3  ;;  %v3204_v23 = vsel %vm5548_vm6, %v3202_v11, %v3203_v12  ;;  %v3477_v49 = vpack.c.b16 %v3474_v46, %v3474_v46  ;;  %v3146_v4 = vrot.slane %v3144_v63, 4  ;;  %v4923_v11 = vld [vmem:[%s5362_s30 + $0x90] sm:$0xf] }
 0x221   : > { %v4881_v12 = vld [vmem:[%s5362_s30 + $0x90] sm:$0xf]  ;;  %v2742_v20 = vshll.u32 %v4923_v11, 16 }
 0x222   : > { %v2626_v26 = vrot.slane %v2625_v17, 4  ;;  %v2752_v17 = vshrl.u32 %v4924_v9, 16 }
 0x223   : > { %2918 = vrot.lane.b32.xlu1 %v2727_v19, %s5279_s10  ;;  %v4871_v19 = vld [vmem:[%s5362_s30 + $0x54] sm:$0xf] }
 0x224   : > { %2375 = vrot.lane.b32.xlu0 %v4888_v22, %s5278_s9  ;;  %2373 = vrot.lane.b32.xlu2 %v4887_v24, %s5278_s9  ;;  %v2632_v22 = vshrl.u32 %v4909_v6, 16  ;;  %v2529_v24 = vor.u32 %v2528_v14, %v2525_v13  ;;  %v4935_v6 = vld [vmem:[%s5362_s30 + $0xc0] sm:$0xf] }
 0x225   : > { %v2171_v31 = vpop.permute.xlu1 %2170  ;;  %v2835_v13 = vshrl.u32 %v4935_v6, 16  ;;  %v2838_v14 = vshll.u32 %v4935_v6, 16 }
 0x226   : > { %2244 = vst.msk [vmem:[#allocation2 + $0x5c] sm:$0xf] %vm2220_vm11, %v2171_v31  ;;  %v2169_v34 = vpop.permute.xlu0 %2168  ;;  %v2185_v35 = vpop.permute.xlu2 %2184  ;;  %v2544_v31 = vrot.slane %v2542_v21, 5  ;;  %v2530_v36 = vrot.slane %v2529_v24, 4  ;;  %v2634_v33 = vrot.slane %v2632_v22, 4 }
 0x227   : > { %2243 = vst.msk [vmem:[#allocation2 + $0x58] sm:$0xf] %vm2220_vm11, %v2169_v34  ;;  %v2837_v21 = vrot.slane %v2835_v13, 4  ;;  %v2840_v22 = vrot.slane %v2838_v14, 5  ;;  %v4936_v24 = vld [vmem:[%s5362_s30 + $0xc4] sm:$0xf] }
 0x228   : > { %2251 = vst.msk [vmem:[#allocation2 + $0x78] sm:$0xf] %vm2220_vm11, %v2185_v35  ;;  %v4910_v35 = vld [vmem:[%s5362_s30 + $0x5c] sm:$0x1]  ;;  %v2545_v39 = vsel %vm5373_vm2, %v2540_v29, %v2544_v31  ;;  %v2635_v44 = vor.u32 %v2634_v33, %v2630_v27  ;;  %v4925_v29 = vld [vmem:[%s5362_s30 + $0x98] sm:$0x1] }
 0x229   : > { %v2638_v45 = vshll.u32 %v4910_v35, 16  ;;  %v2841_v33 = vor.u32 %v2840_v22, %v2837_v21  ;;  %v4889_v35 = vld [vmem:[%s5362_s30 + $0xc0] sm:$0xf] }
 0x22b   : > { %2936 = vrot.lane.b32.xlu1 %v2833_v30, %s5279_s10  ;;  %v2631_v30 = vsel %vm5373_vm2, %v2626_v26, %v2630_v27  ;;  %v2640_v57 = vrot.slane %v2638_v45, 5  ;;  %v2754_v27 = vrot.slane %v2752_v17, 4 }
 0x22c   : > { %2934 = vrot.lane.b32.xlu0 %v2823_v38, %s5279_s10  ;;  %2920 = vrot.lane.b32.xlu2 %v2737_v43, %s5279_s10  ;;  %v3116_v38 = vrot.slane %v4945_v32, 5  ;;  %v2535_v43 = vsel %vm5373_vm2, %v2530_v36, %v2534_v8  ;;  %v4994_v8 = vrot.slane %v4956_v0, 9  ;;  %v2744_v32 = vrot.slane %v2742_v20, 5  ;;  %v4890_v36 = vld [vmem:[%s5362_s30 + $0xc4] sm:$0xf] }
 0x22d   : > { %v2177_v47 = vpop.permute.xlu1 %2176 }
 0x22e   : > { %2247 = vst.msk [vmem:[#allocation2 + $0x68] sm:$0xf] %vm2220_vm11, %v2177_v47  ;;  %v2175_v51 = vpop.permute.xlu0 %2174  ;;  %v2324_v56 = vpop.permute.xlu2 %2323  ;;  %v3118_v47 = vrot.slane %v3116_v38, 4  ;;  %v3145_v18 = vsel %vm5548_vm6, %v4994_v8, %v3144_v63 }
 0x22f   : > { %2246 = vst.msk [vmem:[#allocation2 + $0x64] sm:$0xf] %vm2220_vm11, %v2175_v51  ;;  %v4990_v51 = vrot.slane %v4944_v42, 9  ;;  %v2842_v42 = vrot.slane %v2841_v33, 4  ;;  %v4873_v33 = vld [vmem:[%s5362_s30 + $0x60] sm:$0xf] }
 0x230   : > { %2419 = vst.msk [vmem:[#allocation2 + $0x4] sm:$0xf] %vm2417_vm12, %v2324_v56  ;;  %v2636_v56 = vrot.slane %v2635_v44, 4 }
 0x231   : > { %v3117_v62 = vsel %vm5548_vm6, %v4990_v51, %v3116_v38  ;;  %v2758_v38 = vshll.u32 %v4925_v29, 16 }
 0x232   : > { %v2641_v55 = vsel %vm5373_vm2, %v2636_v56, %v2640_v57 }
 0x233   : > { %3271 = vrot.lane.b32.xlu1 %v3201_v58, %s5280_s11  ;;  %v3531_v58 = vsel %vm3529_vm13, %v3477_v49, 0  ;;  %v2760_v46 = vrot.slane %v2758_v38, 5 }
 0x234   : > { %3257 = vrot.lane.b32.xlu0 %v3176_v61, %s5280_s11  ;;  %3255 = vrot.lane.b32.xlu2 %v3173_v52, %s5280_s11  ;;  %v3120_v61 = vsel %vm5548_vm6, %v3118_v47, %v3119_v48  ;;  %v4958_v52 = vld [vmem:[%s5362_s30 + $0x5c] sm:$0x1]  ;;  %v4972_v47 = vld [vmem:[%s5362_s30 + $0x94] sm:$0xf] }
 0x235   : > { %v2183_v5 = vpop.permute.xlu1 %2182  ;;  %5118 = vmatpush.bf16.msra.mxu2 %v3531_v58  ;;  %5119 = vmatpush.bf16.msra.mxu3 %v3531_v58  ;;  %v3179_v56 = vrot.slane %v4972_v47, 5 }
 0x236   : > { %2250 = vst.msk [vmem:[#allocation2 + $0x74] sm:$0xf] %vm2220_vm11, %v2183_v5  ;;  %v2181_v10 = vpop.permute.xlu0 %2180  ;;  %v2330_v15 = vpop.permute.xlu2 %2329  ;;  %3538 = vmatpush.bf16.msra.mxu0 %v3531_v58  ;;  %5117 = vmatpush.bf16.msra.mxu1 %v3531_v58  ;;  %v3147_v5 = vrot.slane %v4958_v52, 5  ;;  %v4973_v58 = vld [vmem:[%s5362_s30 + $0x98] sm:$0x1] }
 0x237   : > { %2249 = vst.msk [vmem:[#allocation2 + $0x70] sm:$0xf] %vm2220_vm11, %v2181_v10  ;;  %v3181_v63 = vrot.slane %v3179_v56, 4  ;;  %v3182_v52 = vrot.slane %v4973_v58, 5 }
 0x238   : > { %2422 = vst.msk [vmem:[#allocation2 + $0x10] sm:$0xf] %vm2417_vm12, %v2330_v15  ;;  %v3148_v15 = vsel %vm5548_vm6, %v3146_v4, %v3147_v5 }
 0x239   : > { %5121 = vmatpush.bf16.msra.mxu2 %v5115_v60  ;;  %5122 = vmatpush.bf16.msra.mxu3 %v5115_v60 }
 0x23a   : > { %3539 = vmatpush.bf16.msra.mxu0 %v5115_v60  ;;  %5120 = vmatpush.bf16.msra.mxu1 %v5115_v60 }
 0x23b   : > { %2343 = vrot.lane.b32.xlu1 %v4872_v16, %s5278_s9  ;;  %v2748_v16 = vshll.u32 %v4924_v9, 16  ;;  %v3183_v9 = vsel %vm5548_vm6, %v3181_v63, %v3182_v52  ;;  %v4874_v52 = vld [vmem:[%s5362_s30 + $0x64] sm:$0xf] }
 0x23c   : > { %2341 = vrot.lane.b32.xlu0 %v4871_v19, %s5278_s9  ;;  %3273 = vrot.lane.b32.xlu2 %v3204_v23, %s5280_s11  ;;  %v2739_v19 = vshrl.u32 %v4923_v11, 16 }
 0x23d   : > { %v2322_v28 = vpop.permute.xlu1 %2321  ;;  %5124 = vmatpush.bf16.msra.mxu2 %v5114_v2  ;;  %5125 = vmatpush.bf16.msra.mxu3 %v5114_v2  ;;  %v2750_v26 = vrot.slane %v2748_v16, 5  ;;  %v4985_v16 = vld [vmem:[%s5362_s30 + $0xc8] sm:$0x1] }
 0x23e   : > { %2418 = vst.msk [vmem:[#allocation2] sm:$0xf] %vm2417_vm12, %v2322_v28  ;;  %v2187_v34 = vpop.permute.xlu0 %2186  ;;  %v2354_v37 = vpop.permute.xlu2 %2353  ;;  %3540 = vmatpush.bf16.msra.mxu0 %v5114_v2  ;;  %5123 = vmatpush.bf16.msra.mxu1 %v5114_v2  ;;  %v2741_v31 = vrot.slane %v2739_v19, 4  ;;  %v4984_v2 = vld [vmem:[%s5362_s30 + $0xc4] sm:$0xf] }
 0x23f   : > { %2252 = vst.msk [vmem:[#allocation2 + $0x7c] sm:$0xf] %vm2220_vm11, %v2187_v34 }
 0x240   : > { %2434 = vst.msk [vmem:[#allocation2 + $0x40] sm:$0xf] %vm2417_vm12, %v2354_v37  ;;  %v2844_v37 = vshll.u32 %v4936_v24, 16  ;;  %v2745_v41 = vor.u32 %v2744_v32, %v2741_v31  ;;  %v4912_v32 = vld [vmem:[%s5362_s30 + $0x64] sm:$0xf] }
 0x242   : > { %v2746_v49 = vrot.slane %v2745_v41, 4 }
 0x243   : > { %2902 = vrot.lane.b32.xlu1 %v2631_v30, %s5279_s10  ;;  %v2755_v30 = vor.u32 %v2754_v27, %v2750_v26 }
 0x244   : > { %2888 = vrot.lane.b32.xlu0 %v2545_v39, %s5279_s10  ;;  %2886 = vrot.lane.b32.xlu2 %v2535_v43, %s5279_s10  ;;  %v2848_v39 = vshrl.u32 %v4936_v24, 16  ;;  %v2846_v43 = vrot.slane %v2844_v37, 5  ;;  %v2751_v60 = vsel %vm5373_vm2, %v2746_v49, %v2750_v26  ;;  %v3210_v24 = vrot.slane %v4985_v16, 5  ;;  %v4901_v26 = vld [vmem:[%s5362_s30 + $0x38] sm:$0x1] }
 0x245   : > { %v2328_v50 = vpop.permute.xlu1 %2327  ;;  %v2756_v45 = vrot.slane %v2755_v30, 4  ;;  %v4949_v16 = vld [vmem:[%s5362_s30 + $0x38] sm:$0x1] }
 0x246   : > { %2421 = vst.msk [vmem:[#allocation2 + $0xc] sm:$0xf] %vm2417_vm12, %v2328_v50  ;;  %v2326_v54 = vpop.permute.xlu0 %2325  ;;  %v2372_v59 = vpop.permute.xlu2 %2371  ;;  %v2850_v50 = vrot.slane %v2848_v39, 4  ;;  %v2652_v39 = vshll.u32 %v4912_v32, 16 }
 0x247   : > { %2420 = vst.msk [vmem:[#allocation2 + $0x8] sm:$0xf] %vm2417_vm12, %v2326_v54  ;;  %v2847_v54 = vsel %vm5373_vm2, %v2842_v42, %v2846_v43  ;;  %v2761_v57 = vsel %vm5373_vm2, %v2756_v45, %v2760_v46 }
 0x248   : > { %2443 = vst.msk [vmem:[#allocation2 + $0x64] sm:$0xf] %vm2417_vm12, %v2372_v59  ;;  %v4971_v59 = vld [vmem:[%s5362_s30 + $0x90] sm:$0xe]  ;;  %v2654_v49 = vrot.slane %v2652_v39, 5 }
 0x249   : > { %v4999_v0 = vrot.slane %v4971_v59, 9  ;;  %v4928_v39 = vld [vmem:[%s5362_s30 + $0xa4] sm:$0x1] }
 0x24b   : > { %3225 = vrot.lane.b32.xlu1 %v3120_v61, %s5280_s11  ;;  %v2851_v61 = vor.u32 %v2850_v50, %v2846_v43  ;;  %v3180_v13 = vsel %vm5548_vm6, %v4999_v0, %v3179_v56 }
 0x24c   : > { %3223 = vrot.lane.b32.xlu0 %v3117_v62, %s5280_s11  ;;  %2904 = vrot.lane.b32.xlu2 %v2641_v55, %s5279_s10  ;;  %v2854_v62 = vshll.u32 %v4937_v53, 16 }
 0x24d   : > { %v2334_v3 = vpop.permute.xlu1 %2333  ;;  %v2852_v5 = vrot.slane %v2851_v61, 4  ;;  %v4948_v61 = vld [vmem:[%s5362_s30 + $0x34] sm:$0xf] }
 0x24e   : > { %2424 = vst.msk [vmem:[#allocation2 + $0x18] sm:$0xf] %vm2417_vm12, %v2334_v3  ;;  %v2332_v7 = vpop.permute.xlu0 %2331  ;;  %v2931_v10 = vpop.permute.xlu2 %2930  ;;  %v4900_v3 = vld [vmem:[%s5362_s30 + $0x34] sm:$0xf]  ;;  %v2856_v6 = vrot.slane %v2854_v62, 5 }
 0x24f   : > { %2423 = vst.msk [vmem:[#allocation2 + $0x14] sm:$0xf] %vm2417_vm12, %v2332_v7  ;;  %v4899_v7 = vld [vmem:[%s5362_s30 + $0x30] sm:$0xf]  ;;  %v2556_v11 = vshll.u32 %v4900_v3, 16 }
 0x250   : > { %v2547_v14 = vshrl.u32 %v4899_v7, 16  ;;  %v2857_v17 = vsel %vm5373_vm2, %v2852_v5, %v2856_v6  ;;  %v4960_v6 = vld [vmem:[%s5362_s30 + $0x64] sm:$0xf] }
 0x251   : > { %v2558_v20 = vrot.slane %v2556_v11, 5  ;;  %v3151_v11 = vrot.slane %v4960_v6, 5 }
 0x252   : > { %v2549_v27 = vrot.slane %v2547_v14, 4  ;;  %v4959_v14 = vld [vmem:[%s5362_s30 + $0x60] sm:$0xe] }
 0x253   : > { %2361 = vrot.lane.b32.xlu1 %v4881_v12, %s5278_s9  ;;  %v2560_v12 = vshrl.u32 %v4900_v3, 16 }
 0x254   : > { %3241 = vrot.lane.b32.xlu0 %v3148_v15, %s5280_s11  ;;  %3239 = vrot.lane.b32.xlu2 %v3145_v18, %s5280_s11  ;;  %v2550_v15 = vshll.u32 %v4899_v7, 16  ;;  %v4983_v18 = vld [vmem:[%s5362_s30 + $0xc0] sm:$0xe] }
 0x255   : > { %v2370_v23 = vpop.permute.xlu1 %2369  ;;  %v2562_v21 = vrot.slane %v2560_v12, 4  ;;  %v5003_v31 = vrot.slane %v4983_v18, 9 }
 0x256   : > { %2442 = vst.msk [vmem:[#allocation2 + $0x60] sm:$0xf] %vm2417_vm12, %v2370_v23  ;;  %v2356_v28 = vpop.permute.xlu0 %2355  ;;  %v3254_v34 = vpop.permute.xlu2 %3253 }
 0x257   : > { %2435 = vst.msk [vmem:[#allocation2 + $0x44] sm:$0xf] %vm2417_vm12, %v2356_v28  ;;  %v2552_v28 = vrot.slane %v2550_v15, 5  ;;  %v2563_v37 = vor.u32 %v2562_v21, %v2558_v20  ;;  %v4927_v21 = vld [vmem:[%s5362_s30 + $0xa0] sm:$0xf] }
 0x258   : > { %3003 = vst.msk [vmem:[#allocation2 + $0x60] sm:$0xf] %vm2978_vm14, %v2931_v10  ;;  %v3207_v10 = vrot.slane %v4984_v2, 5  ;;  %v3123_v2 = vrot.slane %v4948_v61, 5 }
 0x259   : > { %v2553_v38 = vor.u32 %v2552_v28, %v2549_v27 }
 0x25a   : > { %v3209_v19 = vrot.slane %v3207_v10, 4  ;;  %v3208_v41 = vsel %vm5548_vm6, %v5003_v31, %v3207_v10  ;;  %v2776_v31 = vshrl.u32 %v4927_v21, 16 }
 0x25b   : > { %2379 = vrot.lane.b32.xlu1 %v4890_v36, %s5278_s9  ;;  %v4911_v36 = vld [vmem:[%s5362_s30 + $0x60] sm:$0xf]  ;;  %v2554_v47 = vrot.slane %v2553_v38, 4 }
 0x25c   : > { %2377 = vrot.lane.b32.xlu0 %v4889_v35, %s5278_s9  ;;  %2363 = vrot.lane.b32.xlu2 %v4882_v40, %s5278_s9  ;;  %v2566_v35 = vshll.u32 %v4901_v26, 16  ;;  %v3211_v30 = vsel %vm5548_vm6, %v3209_v19, %v3210_v24  ;;  %v2656_v40 = vshrl.u32 %v4912_v32, 16  ;;  %v2643_v42 = vshrl.u32 %v4911_v36, 16  ;;  %v4926_v26 = vld [vmem:[%s5362_s30 + $0x9c] sm:$0xf] }
 0x25d   : > { %v2917_v44 = vpop.permute.xlu1 %2916  ;;  %v2646_v43 = vshll.u32 %v4911_v36, 16  ;;  %v2559_v59 = vsel %vm5373_vm2, %v2554_v47, %v2558_v20  ;;  %v4995_v20 = vrot.slane %v4959_v14, 9  ;;  %v3126_v24 = vrot.slane %v4949_v16, 5  ;;  %v4891_v47 = vld [vmem:[%s5362_s30 + $0xcc] sm:$0xf] }
 0x25e   : > { %2996 = vst.msk [vmem:[#allocation2 + $0x44] sm:$0xf] %vm2978_vm14, %v2917_v44  ;;  %v2915_v48 = vpop.permute.xlu0 %2914  ;;  %v2338_v51 = vpop.permute.xlu2 %2337  ;;  %v2564_v44 = vrot.slane %v2563_v37, 4  ;;  %v2568_v45 = vrot.slane %v2566_v35, 5  ;;  %v2658_v50 = vrot.slane %v2656_v40, 4  ;;  %v2766_v36 = vshll.u32 %v4926_v26, 16 }
 0x25f   : > { %2995 = vst.msk [vmem:[#allocation2 + $0x40] sm:$0xf] %vm2978_vm14, %v2915_v48  ;;  %v4913_v48 = vld [vmem:[%s5362_s30 + $0x68] sm:$0x1]  ;;  %v2648_v56 = vrot.slane %v2646_v43, 5  ;;  %v3152_v32 = vsel %vm5548_vm6, %v4995_v20, %v3151_v11  ;;  %v2778_v35 = vrot.slane %v2776_v31, 4 }
 0x260   : > { %3333 = vst.msk [vmem:[#allocation2 + $0x44] sm:$0xf] %vm3315_vm15, %v3254_v34  ;;  %v2569_v58 = vsel %vm5373_vm2, %v2564_v44, %v2568_v45  ;;  %v2659_v62 = vor.u32 %v2658_v50, %v2654_v49  ;;  %v2662_v63 = vshll.u32 %v4913_v48, 16  ;;  %v4939_v44 = vld [vmem:[%s5362_s30 + $0xd0] sm:$0xf] }
 0x261   : > { %2426 = vst.msk [vmem:[#allocation2 + $0x20] sm:$0xf] %vm2417_vm12, %v2338_v51  ;;  %v4884_v50 = vld [vmem:[%s5362_s30 + $0xa0] sm:$0xf] }
 0x262   : > { %v2664_v5 = vrot.slane %v2662_v63, 5 }
 0x263   : > { %2938 = vrot.lane.b32.xlu1 %v2847_v54, %s5279_s10  ;;  %v2645_v54 = vrot.slane %v2643_v42, 4 }
 0x264   : > { %2924 = vrot.lane.b32.xlu0 %v2761_v57, %s5279_s10  ;;  %2922 = vrot.lane.b32.xlu2 %v2751_v60, %s5279_s10  ;;  %v4947_v60 = vld [vmem:[%s5362_s30 + $0x30] sm:$0xe] }
 0x265   : > { %v3252_v55 = vpop.permute.xlu1 %3251  ;;  %v4991_v0 = vrot.slane %v4947_v60, 9 }
 0x266   : > { %3332 = vst.msk [vmem:[#allocation2 + $0x40] sm:$0xf] %vm3315_vm15, %v3252_v55  ;;  %v2933_v4 = vpop.permute.xlu0 %2932  ;;  %v2885_v8 = vpop.permute.xlu2 %2884  ;;  %v2649_v55 = vor.u32 %v2648_v56, %v2645_v54  ;;  %v2872_v54 = vshrl.u32 %v4939_v44, 16  ;;  %v4883_v56 = vld [vmem:[%s5362_s30 + $0x9c] sm:$0xf] }
 0x267   : > { %3004 = vst.msk [vmem:[#allocation2 + $0x64] sm:$0xf] %vm2978_vm14, %v2933_v4  ;;  %v2660_v4 = vrot.slane %v2659_v62, 4  ;;  %v3124_v10 = vsel %vm5548_vm6, %v4991_v0, %v3123_v2  ;;  %v4940_v0 = vld [vmem:[%s5362_s30 + $0xd4] sm:$0x1] }
 0x268   : > { %2980 = vst.msk [vmem:[#allocation2 + $0x4] sm:$0xf] %vm2978_vm14, %v2885_v8  ;;  %v2650_v8 = vrot.slane %v2649_v55, 4 }
 0x269   : > { %v2665_v12 = vsel %vm5373_vm2, %v2660_v4, %v2664_v5 }
 0x26a   : > { %v2655_v15 = vsel %vm5373_vm2, %v2650_v8, %v2654_v49  ;;  %v2782_v49 = vshll.u32 %v4928_v39, 16  ;;  %v4975_v8 = vld [vmem:[%s5362_s30 + $0xa0] sm:$0xf] }
 0x26b   : > { %3261 = vrot.lane.b32.xlu1 %v3183_v9, %s5280_s11  ;;  %v3186_v14 = vrot.slane %v4975_v8, 5 }
 0x26c   : > { %3259 = vrot.lane.b32.xlu0 %v3180_v13, %s5280_s11  ;;  %2940 = vrot.lane.b32.xlu2 %v2857_v17, %s5279_s10  ;;  %v4961_v13 = vld [vmem:[%s5362_s30 + $0x68] sm:$0x1]  ;;  %v3153_v17 = vrot.slane %v3151_v11, 4  ;;  %v2784_v60 = vrot.slane %v2782_v49, 5  ;;  %v4892_v11 = vld [vmem:[%s5362_s30 + $0xd0] sm:$0xf] }
 0x26d   : > { %v3270_v22 = vpop.permute.xlu1 %3269  ;;  %v5106_v23 = vld [vmem:[#allocation2 + $0x40] sm:$0xff]  ;;  %v3154_v18 = vrot.slane %v4961_v13, 5 }
 0x26e   : > { %3341 = vst.msk [vmem:[#allocation2 + $0x64] sm:$0xf] %vm3315_vm15, %v3270_v22  ;;  %v3268_v29 = vpop.permute.xlu0 %3267  ;;  %5085 = vmatmul.msk.bf16.vlgmr.msra.gmra.mxu2 %vm3480_vm0, %v5106_v23  ;;  %v3220_v34 = vpop.permute.xlu2 %3219  ;;  %v3125_v23 = vrot.slane %v3123_v2, 4 }
 0x26f   : > { %3340 = vst.msk [vmem:[#allocation2 + $0x60] sm:$0xf] %vm3315_vm15, %v3268_v29  ;;  %v3155_v28 = vsel %vm5548_vm6, %v3153_v17, %v3154_v18  ;;  %v2772_v29 = vshll.u32 %v4927_v21, 16  ;;  %v4987_v18 = vld [vmem:[%s5362_s30 + $0xd0] sm:$0xf] }
 0x271   : > { %v2774_v37 = vrot.slane %v2772_v29, 5  ;;  %v4976_v29 = vld [vmem:[%s5362_s30 + $0xa4] sm:$0x1] }
 0x273   : > { %2345 = vrot.lane.b32.xlu1 %v4873_v33, %s5278_s9  ;;  %v3127_v33 = vsel %vm5548_vm6, %v3125_v23, %v3126_v24  ;;  %v2779_v48 = vor.u32 %v2778_v35, %v2774_v37  ;;  %v3214_v23 = vrot.slane %v4987_v18, 5 }
 0x274   : > { %3277 = vrot.lane.b32.xlu0 %v3211_v30, %s5280_s11  ;;  %3275 = vrot.lane.b32.xlu2 %v3208_v41, %s5280_s11  ;;  %v2768_v41 = vrot.slane %v2766_v36, 5 }
 0x275   : > { %v2883_v46 = vpop.permute.xlu1 %2882  ;;  %v3216_v31 = vrot.slane %v3214_v23, 4 }
 0x276   : > { %2979 = vst.msk [vmem:[#allocation2] sm:$0xf] %vm2978_vm14, %v2883_v46  ;;  %v2340_v51 = vpop.permute.xlu0 %2339  ;;  %v5110_v53 = vld [vmem:[#allocation2 + $0x60] sm:$0xff]  ;;  %v3238_v57 = vpop.permute.xlu2 %3237  ;;  %v4938_v46 = vld [vmem:[%s5362_s30 + $0xcc] sm:$0xf] }
 0x277   : > { %2427 = vst.msk [vmem:[#allocation2 + $0x24] sm:$0xf] %vm2417_vm12, %v2340_v51  ;;  %5089 = vmatmul.msk.bf16.vlgmr.msra.gmra.mxu3 %vm3480_vm0, %v5110_v53  ;;  %v2868_v53 = vshll.u32 %v4939_v44, 16 }
 0x278   : > { %3316 = vst.msk [vmem:[#allocation2] sm:$0xf] %vm3315_vm15, %v3220_v34  ;;  %v2763_v34 = vshrl.u32 %v4926_v26, 16  ;;  %v4988_v26 = vld [vmem:[%s5362_s30 + $0xd4] sm:$0x1] }
 0x279   : > { %v2870_v63 = vrot.slane %v2868_v53, 5 }
 0x27a   : > { %v2765_v40 = vrot.slane %v2763_v34, 4 }
 0x27b   : > { %2892 = vrot.lane.b32.xlu1 %v2569_v58, %s5279_s10  ;;  %v2862_v58 = vshll.u32 %v4938_v46, 16 }
 0x27c   : > { %2890 = vrot.lane.b32.xlu0 %v2559_v59, %s5279_s10  ;;  %2347 = vrot.lane.b32.xlu2 %v4874_v52, %s5278_s9  ;;  %v2769_v51 = vor.u32 %v2768_v41, %v2765_v40  ;;  %v2780_v59 = vrot.slane %v2779_v48, 4  ;;  %v2874_v52 = vrot.slane %v2872_v54, 4 }
 0x27d   : > { %v2901_v3 = vpop.permute.xlu1 %2900 }
 0x27e   : > { %2988 = vst.msk [vmem:[#allocation2 + $0x24] sm:$0xf] %vm2978_vm14, %v2901_v3  ;;  %v2899_v7 = vpop.permute.xlu0 %2898  ;;  %v2374_v9 = vpop.permute.xlu2 %2373  ;;  %v2770_v62 = vrot.slane %v2769_v51, 4  ;;  %v2864_v3 = vrot.slane %v2862_v58, 5  ;;  %v2785_v5 = vsel %vm5373_vm2, %v2780_v59, %v2784_v60  ;;  %v4904_v58 = vld [vmem:[%s5362_s30 + $0x44] sm:$0x1] }
 0x27f   : > { %2987 = vst.msk [vmem:[#allocation2 + $0x20] sm:$0xf] %vm2978_vm14, %v2899_v7  ;;  %v4974_v7 = vld [vmem:[%s5362_s30 + $0x9c] sm:$0xe] }
 0x280   : > { %3325 = vst.msk [vmem:[#allocation2 + $0x24] sm:$0xf] %vm3315_vm15, %v3238_v57  ;;  %v2859_v57 = vshrl.u32 %v4938_v46, 16  ;;  %v2775_v6 = vsel %vm5373_vm2, %v2770_v62, %v2774_v37  ;;  %v5000_v13 = vrot.slane %v4974_v7, 9  ;;  %v4903_v37 = vld [vmem:[%s5362_s30 + $0x40] sm:$0xf] }
 0x281   : > { %2444 = vst.msk [vmem:[#allocation2 + $0x68] sm:$0xf] %vm2417_vm12, %v2374_v9  ;;  %v2875_v9 = vor.u32 %v2874_v52, %v2870_v63  ;;  %v4868_v7 = vld [vmem:[%s5362_s30 + $0x40] sm:$0xf] }
 0x282   : > { %v2861_v2 = vrot.slane %v2859_v57, 4  ;;  %v4915_v57 = vld [vmem:[%s5362_s30 + $0x70] sm:$0xf] }
 0x283   : > { %3227 = vrot.lane.b32.xlu1 %v3124_v10, %s5280_s11  ;;  %v2878_v10 = vshll.u32 %v4940_v0, 16  ;;  %v2876_v16 = vrot.slane %v2875_v9, 4 }
 0x284   : > { %2908 = vrot.lane.b32.xlu0 %v2665_v12, %s5279_s10  ;;  %2906 = vrot.lane.b32.xlu2 %v2655_v15, %s5279_s10  ;;  %v2865_v12 = vor.u32 %v2864_v3, %v2861_v2  ;;  %v2676_v2 = vshll.u32 %v4915_v57, 16  ;;  %v4875_v3 = vld [vmem:[%s5362_s30 + $0x6c] sm:$0xf] }
 0x285   : > { %v3236_v19 = vpop.permute.xlu1 %3235  ;;  %v2880_v17 = vrot.slane %v2878_v10, 5 }
 0x286   : > { %3324 = vst.msk [vmem:[#allocation2 + $0x20] sm:$0xf] %vm3315_vm15, %v3236_v19  ;;  %v3222_v22 = vpop.permute.xlu0 %3221  ;;  %v2921_v27 = vpop.permute.xlu2 %2920  ;;  %v2866_v20 = vrot.slane %v2865_v12, 4  ;;  %v2678_v10 = vrot.slane %v2676_v2, 5 }
 0x287   : > { %3317 = vst.msk [vmem:[#allocation2 + $0x4] sm:$0xf] %vm3315_vm15, %v3222_v22  ;;  %v3187_v22 = vsel %vm5548_vm6, %v5000_v13, %v3186_v14  ;;  %v2881_v24 = vsel %vm5373_vm2, %v2876_v16, %v2880_v17 }
 0x28b   : > { %3245 = vrot.lane.b32.xlu1 %v3155_v28, %s5280_s11  ;;  %v2871_v28 = vsel %vm5373_vm2, %v2866_v20, %v2870_v63 }
 0x28c   : > { %3243 = vrot.lane.b32.xlu0 %v3152_v32, %s5280_s11  ;;  %3229 = vrot.lane.b32.xlu2 %v3127_v33, %s5280_s11  ;;  %v3217_v32 = vrot.slane %v4988_v26, 5  ;;  %v4914_v33 = vld [vmem:[%s5362_s30 + $0x6c] sm:$0xf] }
 0x28d   : > { %v2360_v30 = vpop.permute.xlu1 %2359  ;;  %v5102_v38 = vld [vmem:[#allocation2 + $0x20] sm:$0xff]  ;;  %v2667_v41 = vshrl.u32 %v4914_v33, 16 }
 0x28e   : > { %2437 = vst.msk [vmem:[#allocation2 + $0x4c] sm:$0xf] %vm2417_vm12, %v2360_v30  ;;  %v2358_v42 = vpop.permute.xlu0 %2357  ;;  %v5098_v43 = vld [vmem:[#allocation2] sm:$0xff]  ;;  %5081 = vmatmul.msk.bf16.vlgmr.msra.gmra.mxu1 %vm3480_vm0, %v5102_v38  ;;  %v3256_v45 = vpop.permute.xlu2 %3255  ;;  %v3188_v30 = vrot.slane %v3186_v14, 4  ;;  %v3189_v38 = vrot.slane %v4976_v29, 5  ;;  %v3218_v40 = vsel %vm5548_vm6, %v3216_v31, %v3217_v32 }
 0x28f   : > { %2436 = vst.msk [vmem:[#allocation2 + $0x48] sm:$0xf] %vm2417_vm12, %v2358_v42  ;;  %5077 = vmatmul.msk.bf16.vlgmr.msra.gmra.mxu0 %vm3480_vm0, %v5098_v43  ;;  %v2670_v42 = vshll.u32 %v4914_v33, 16  ;;  %v2580_v43 = vshll.u32 %v4903_v37, 16  ;;  %v4951_v14 = vld [vmem:[%s5362_s30 + $0x40] sm:$0xf] }
 0x290   : > { %2998 = vst.msk [vmem:[#allocation2 + $0x4c] sm:$0xf] %vm2978_vm14, %v2921_v27  ;;  %v4986_v27 = vld [vmem:[%s5362_s30 + $0xcc] sm:$0xe]  ;;  %v3190_v46 = vsel %vm5548_vm6, %v3188_v30, %v3189_v38  ;;  %v4963_v33 = vld [vmem:[%s5362_s30 + $0x70] sm:$0xf] }
 0x291   : > { %v5004_v36 = vrot.slane %v4986_v27, 9  ;;  %v2672_v51 = vrot.slane %v2670_v42, 5  ;;  %v2582_v53 = vrot.slane %v2580_v43, 5  ;;  %v4962_v43 = vld [vmem:[%s5362_s30 + $0x6c] sm:$0xe] }
 0x293   : > { %2381 = vrot.lane.b32.xlu1 %v4891_v47, %s5278_s9  ;;  %v3215_v44 = vsel %vm5548_vm6, %v5004_v36, %v3214_v23  ;;  %v4902_v47 = vld [vmem:[%s5362_s30 + $0x3c] sm:$0xf]  ;;  %v4952_v23 = vld [vmem:[%s5362_s30 + $0x44] sm:$0x1] }
 0x294   : > { %2367 = vrot.lane.b32.xlu0 %v4884_v50, %s5278_s9  ;;  %2365 = vrot.lane.b32.xlu2 %v4883_v56, %s5278_s9  ;;  %v2571_v48 = vshrl.u32 %v4902_v47, 16  ;;  %v2574_v49 = vshll.u32 %v4902_v47, 16  ;;  %v2669_v50 = vrot.slane %v2667_v41, 4  ;;  %v3133_v31 = vrot.slane %v4952_v23, 5  ;;  %v4964_v41 = vld [vmem:[%s5362_s30 + $0x74] sm:$0x1] }
 0x295   : > { %v2919_v61 = vpop.permute.xlu1 %2918 }
 0x296   : > { %2997 = vst.msk [vmem:[#allocation2 + $0x48] sm:$0xf] %vm2978_vm14, %v2919_v61  ;;  %v2376_v55 = vpop.permute.xlu0 %2375  ;;  %v3274_v4 = vpop.permute.xlu2 %3273  ;;  %v2573_v62 = vrot.slane %v2571_v48, 4  ;;  %v2576_v63 = vrot.slane %v2574_v49, 5  ;;  %v2673_v0 = vor.u32 %v2672_v51, %v2669_v50  ;;  %v4996_v49 = vrot.slane %v4962_v43, 9 }
 0x297   : > { %2445 = vst.msk [vmem:[#allocation2 + $0x6c] sm:$0xf] %vm2417_vm12, %v2376_v55  ;;  %v4876_v55 = vld [vmem:[%s5362_s30 + $0x70] sm:$0xf] }
 0x298   : > { %3334 = vst.msk [vmem:[#allocation2 + $0x48] sm:$0xf] %vm3315_vm15, %v3256_v45  ;;  %v2584_v45 = vshrl.u32 %v4903_v37, 16  ;;  %v2577_v8 = vor.u32 %v2576_v63, %v2573_v62  ;;  %v2674_v9 = vrot.slane %v2673_v0, 4 }
 0x29a   : > { %v2586_v59 = vrot.slane %v2584_v45, 4  ;;  %v2578_v16 = vrot.slane %v2577_v8, 4  ;;  %v2679_v20 = vsel %vm5373_vm2, %v2674_v9, %v2678_v10 }
 0x29b   : > { %2928 = vrot.lane.b32.xlu1 %v2785_v5, %s5279_s10  ;;  %v2590_v5 = vshll.u32 %v4904_v58, 16 }
 0x29c   : > { %2926 = vrot.lane.b32.xlu0 %v2775_v6, %s5279_s10  ;;  %2383 = vrot.lane.b32.xlu2 %v4892_v11, %s5278_s9  ;;  %v2680_v6 = vshrl.u32 %v4915_v57, 16  ;;  %v2583_v26 = vsel %vm5373_vm2, %v2578_v16, %v2582_v53 }
 0x29d   : > { %v2937_v15 = vpop.permute.xlu1 %2936  ;;  %v2592_v13 = vrot.slane %v2590_v5, 5 }
 0x29e   : > { %3006 = vst.msk [vmem:[#allocation2 + $0x6c] sm:$0xf] %vm2978_vm14, %v2937_v15  ;;  %v2935_v19 = vpop.permute.xlu0 %2934  ;;  %v2887_v21 = vpop.permute.xlu2 %2886  ;;  %v2682_v17 = vrot.slane %v2680_v6, 4 }
 0x29f   : > { %3005 = vst.msk [vmem:[#allocation2 + $0x68] sm:$0xf] %vm2978_vm14, %v2935_v19  ;;  %v4916_v19 = vld [vmem:[%s5362_s30 + $0x74] sm:$0x1] }
 0x2a0   : > { %3343 = vst.msk [vmem:[#allocation2 + $0x6c] sm:$0xf] %vm3315_vm15, %v3274_v4  ;;  %v2587_v4 = vor.u32 %v2586_v59, %v2582_v53  ;;  %v2683_v27 = vor.u32 %v2682_v17, %v2678_v10 }
 0x2a1   : > { %2981 = vst.msk [vmem:[#allocation2 + $0x8] sm:$0xf] %vm2978_vm14, %v2887_v21  ;;  %v3130_v21 = vrot.slane %v4951_v14, 5 }
 0x2a2   : > { %v2588_v12 = vrot.slane %v2587_v4, 4  ;;  %v2684_v37 = vrot.slane %v2683_v27, 4 }
 0x2a3   : > { %3263 = vrot.lane.b32.xlu1 %v3187_v22, %s5280_s11  ;;  %v3132_v29 = vrot.slane %v3130_v21, 4 }
 0x2a4   : > { %2944 = vrot.lane.b32.xlu0 %v2881_v24, %s5279_s10  ;;  %2942 = vrot.lane.b32.xlu2 %v2871_v28, %s5279_s10  ;;  %v2593_v22 = vsel %vm5373_vm2, %v2588_v12, %v2592_v13  ;;  %v4950_v24 = vld [vmem:[%s5362_s30 + $0x3c] sm:$0xe]  ;;  %v2686_v28 = vshll.u32 %v4916_v19, 16  ;;  %s175_s30 = sand.u32 1, %s5255_s13  }
 0x2a5   : > { %v3272_v34 = vpop.permute.xlu1 %3271  ;;  %v3134_v38 = vsel %vm5548_vm6, %v3132_v29, %v3133_v31  ;;  %s4699_s4 = sshll.u32 %s175_s30, 6  ;;  %s4594_s21 = scalar_lea.sflag [#allocation4], %s175_s30 }
 0x2a6   : > { %3342 = vst.msk [vmem:[#allocation2 + $0x68] sm:$0xf] %vm3315_vm15, %v3272_v34  ;;  %v3258_v35 = vpop.permute.xlu0 %3257  ;;  %v2905_v39 = vpop.permute.xlu2 %2904  ;;  %v4992_v34 = vrot.slane %v4950_v24, 9  ;;  %s6856_s6 = scalar_lea.vmem [#allocation3], %s4699_s4 }
 0x2a7   : > { %3335 = vst.msk [vmem:[#allocation2 + $0x4c] sm:$0xf] %vm3315_vm15, %v3258_v35  ;;  %v2688_v35 = vrot.slane %v2686_v28, 5 }
 0x2a9   : > { %v2689_v42 = vsel %vm5373_vm2, %v2684_v37, %v2688_v35  ;;  %vm4462_vm2 = vcmask 1042434  }
 0x2ab   : > { %3281 = vrot.lane.b32.xlu1 %v3218_v40, %s5280_s11  ;;  %v3158_v40 = vrot.slane %v4963_v33, 5 }
 0x2ac   : > { %3279 = vrot.lane.b32.xlu0 %v3215_v44, %s5280_s11  ;;  %3265 = vrot.lane.b32.xlu2 %v3190_v46, %s5280_s11  ;;  %v3161_v46 = vrot.slane %v4964_v41, 5 }
 0x2ad   : > { %v2344_v54 = vpop.permute.xlu1 %2343  ;;  %v5111_v56 = vld [vmem:[#allocation2 + $0x68] sm:$0xff]  ;;  %v3160_v45 = vrot.slane %v3158_v40, 4  ;;  %v3159_v51 = vsel %vm5548_vm6, %v4996_v49, %v3158_v40 }
 0x2ae   : > { %2429 = vst.msk [vmem:[#allocation2 + $0x2c] sm:$0xf] %vm2417_vm12, %v2344_v54  ;;  %v2342_v60 = vpop.permute.xlu0 %2341  ;;  %v5107_v61 = vld [vmem:[#allocation2 + $0x48] sm:$0xff]  ;;  %5090 = vmatmul.msk.bf16.gmra.mxu3 %vm3480_vm0, %v5111_v56  ;;  %v3240_v52 = vpop.permute.xlu2 %3239 }
 0x2af   : > { %2428 = vst.msk [vmem:[#allocation2 + $0x28] sm:$0xf] %vm2417_vm12, %v2342_v60  ;;  %5086 = vmatmul.msk.bf16.gmra.mxu2 %vm3480_vm0, %v5107_v61  ;;  %v3162_v25 = vsel %vm5548_vm6, %v3160_v45, %v3161_v46 }
 0x2b0   : > { %2990 = vst.msk [vmem:[#allocation2 + $0x2c] sm:$0xf] %vm2978_vm14, %v2905_v39  ;;  %v3131_v39 = vsel %vm5548_vm6, %v4992_v34, %v3130_v21  ;;  %vm4474_vm6 = vcmask 1046534  }
 0x2b3   : > { %2351 = vrot.lane.b32.xlu1 %v4876_v55, %s5278_s9 }
 0x2b4   : > { %2349 = vrot.lane.b32.xlu0 %v4875_v3, %s5278_s9  ;;  %2335 = vrot.lane.b32.xlu2 %v4868_v7, %s5278_s9  ;;  %s5116_s9 = sshll.u32 %s5263_s15, 6  ;;  %s4608_s15 = sshll.u32 %s6856_s6, 4  ;;  %s4609_s15 = int_to_ptr.vmem [resolvable:$true] %s4608_s15 }
 0x2b5   : > { %v2903_v11 = vpop.permute.xlu1 %2902  ;;  %s4607_s18 = scalar_lea.hbm %s7098_s3, %s5116_s9 }
 0x2b6   : > { %2989 = vst.msk [vmem:[#allocation2 + $0x28] sm:$0xf] %vm2978_vm14, %v2903_v11  ;;  %v2889_v15 = vpop.permute.xlu0 %2888  ;;  %v2364_v18 = vpop.permute.xlu2 %2363  ;;  %s4610_s19 = sshll.u32 %s4607_s18, 4  ;;  %s4611_s19 = int_to_ptr.hbm [resolvable:$true] %s4610_s19 }
 0x2b7   : > { %2982 = vst.msk [vmem:[#allocation2 + $0xc] sm:$0xf] %vm2978_vm14, %v2889_v15  ;;  %s5207_s23 = sshra.s32 %s4611_s19, 4  ;;  %s5208_s23 = int_to_ptr.hbm [resolvable:$true] %s5207_s23 }
 0x2b8   : > { %3326 = vst.msk [vmem:[#allocation2 + $0x28] sm:$0xf] %vm3315_vm15, %v3240_v52  ;;  %s5209_s26 = scalar_lea.hbm %s5208_s23, 64  ;;  %p5214_p1 = scmp.lt.s32.totalorder %s5208_s23, %s7098_s3 }
 0x2b9   : > { %2439 = vst.msk [vmem:[#allocation2 + $0x54] sm:$0xf] %vm2417_vm12, %v2364_v18  ;;  %p5210_p12 = scmp.ne.s32.totalorder %s5208_s23, %s5209_s26  ;;  %p5215_p2 = scmp.lt.s32.totalorder %s5213_s29, %s5209_s26 }
 0x2bb   : > { %2910 = vrot.lane.b32.xlu1 %v2679_v20, %s5279_s10  ;;  %p5211_p13 = pnand %p5210_p12, %p5342_p4  ;;  %p5216_p3 = por %p5215_p2, %p5214_p1 }
 0x2bc   : > { %2896 = vrot.lane.b32.xlu0 %v2593_v22, %s5279_s10  ;;  %2894 = vrot.lane.b32.xlu2 %v2583_v26, %s5279_s10 }
 0x2bd   : > { %v3226_v32 = vpop.permute.xlu1 %3225  ;;  %p5212_p0 = pneg %p5211_p13 }
 0x2be   : > { %3319 = vst.msk [vmem:[#allocation2 + $0xc] sm:$0xf] %vm3315_vm15, %v3226_v32  ;;  %v3224_v36 = vpop.permute.xlu0 %3223  ;;  %v2923_v30 = vpop.permute.xlu2 %2922 }
 0x2bf   : > { %3318 = vst.msk [vmem:[#allocation2 + $0x8] sm:$0xf] %vm3315_vm15, %v3224_v36  ;;  %p5217_p5 = pnand %p5216_p3, %p5212_p0 }
 0x2c3   : > { %3233 = vrot.lane.b32.xlu1 %v3134_v38, %s5280_s11 }
 0x2c4   : > { %3231 = vrot.lane.b32.xlu0 %v3131_v39, %s5280_s11  ;;  %2912 = vrot.lane.b32.xlu2 %v2689_v42, %s5279_s10 }
 0x2c5   : > { %v2362_v44 = vpop.permute.xlu1 %2361 }
 0x2c6   : > { %2438 = vst.msk [vmem:[#allocation2 + $0x50] sm:$0xf] %vm2417_vm12, %v2362_v44  ;;  %v3242_v47 = vpop.permute.xlu0 %3241  ;;  %v5099_v48 = vld [vmem:[#allocation2 + $0x8] sm:$0xff]  ;;  %v2941_v50 = vpop.permute.xlu2 %2940 }
 0x2c7   : > { %3327 = vst.msk [vmem:[#allocation2 + $0x2c] sm:$0xf] %vm3315_vm15, %v3242_v47  ;;  %5078 = vmatmul.msk.bf16.gmra.mxu0 %vm3480_vm0, %v5099_v48 }
 0x2c8   : > { %2999 = vst.msk [vmem:[#allocation2 + $0x50] sm:$0xf] %vm2978_vm14, %v2923_v30 }
 0x2cc   : > { %3249 = vrot.lane.b32.xlu0 %v3162_v25, %s5280_s11  ;;  %3247 = vrot.lane.b32.xlu2 %v3159_v51, %s5280_s11 }
 0x2cd   : > { %v2380_v53 = vpop.permute.xlu1 %2379 }
 0x2ce   : > { %2447 = vst.msk [vmem:[#allocation2 + $0x74] sm:$0xf] %vm2417_vm12, %v2380_v53  ;;  %v2378_v54 = vpop.permute.xlu0 %2377  ;;  %v5103_v56 = vld [vmem:[#allocation2 + $0x28] sm:$0xff]  ;;  %v3276_v57 = vpop.permute.xlu2 %3275 }
 0x2cf   : > { %2446 = vst.msk [vmem:[#allocation2 + $0x70] sm:$0xf] %vm2417_vm12, %v2378_v54  ;;  %5082 = vmatmul.msk.bf16.gmra.mxu1 %vm3480_vm0, %v5103_v56 }
 0x2d0   : > { %3008 = vst.msk [vmem:[#allocation2 + $0x74] sm:$0xf] %vm2978_vm14, %v2941_v50 }
 0x2d5   : > { %v2939_v58 = vpop.permute.xlu1 %2938 }
 0x2d6   : > { %3007 = vst.msk [vmem:[#allocation2 + $0x70] sm:$0xf] %vm2978_vm14, %v2939_v58  ;;  %v2925_v1 = vpop.permute.xlu0 %2924  ;;  %v2348_v59 = vpop.permute.xlu2 %2347 }
 0x2d7   : > { %3000 = vst.msk [vmem:[#allocation2 + $0x54] sm:$0xf] %vm2978_vm14, %v2925_v1 }
 0x2d8   : > { %3344 = vst.msk [vmem:[#allocation2 + $0x70] sm:$0xf] %vm3315_vm15, %v3276_v57 }
 0x2d9   : > { %2431 = vst.msk [vmem:[#allocation2 + $0x34] sm:$0xf] %vm2417_vm12, %v2348_v59 }
 0x2dd   : > { %v3262_v60 = vpop.permute.xlu1 %3261 }
 0x2de   : > { %3337 = vst.msk [vmem:[#allocation2 + $0x54] sm:$0xf] %vm3315_vm15, %v3262_v60  ;;  %v3260_v61 = vpop.permute.xlu0 %3259  ;;  %v2907_v62 = vpop.permute.xlu2 %2906 }
 0x2df   : > { %3336 = vst.msk [vmem:[#allocation2 + $0x50] sm:$0xf] %vm3315_vm15, %v3260_v61 }
 0x2e5   : > { %v2346_v63 = vpop.permute.xlu1 %2345 }
 0x2e6   : > { %2430 = vst.msk [vmem:[#allocation2 + $0x30] sm:$0xf] %vm2417_vm12, %v2346_v63  ;;  %v3278_v52 = vpop.permute.xlu0 %3277  ;;  %v5108_v55 = vld [vmem:[#allocation2 + $0x50] sm:$0xff]  ;;  %v3230_v0 = vpop.permute.xlu2 %3229 }
 0x2e7   : > { %3345 = vst.msk [vmem:[#allocation2 + $0x74] sm:$0xf] %vm3315_vm15, %v3278_v52  ;;  %5087 = vmatmul.msk.bf16.gmra.mxu2 %vm3480_vm0, %v5108_v55 }
 0x2e8   : > { %2991 = vst.msk [vmem:[#allocation2 + $0x30] sm:$0xf] %vm2978_vm14, %v2907_v62 }
 0x2ed   : > { %v2893_v2 = vpop.permute.xlu1 %2892 }
 0x2ee   : > { %2984 = vst.msk [vmem:[#allocation2 + $0x14] sm:$0xf] %vm2978_vm14, %v2893_v2  ;;  %v2891_v3 = vpop.permute.xlu0 %2890  ;;  %v5112_v4 = vld [vmem:[#allocation2 + $0x70] sm:$0xff]  ;;  %v2366_v5 = vpop.permute.xlu2 %2365 }
 0x2ef   : > { %2983 = vst.msk [vmem:[#allocation2 + $0x10] sm:$0xf] %vm2978_vm14, %v2891_v3  ;;  %5091 = vmatmul.msk.bf16.gmra.mxu3 %vm3480_vm0, %v5112_v4 }
 0x2f0   : > { %3321 = vst.msk [vmem:[#allocation2 + $0x14] sm:$0xf] %vm3315_vm15, %v3230_v0 }
 0x2f1   : > { %2440 = vst.msk [vmem:[#allocation2 + $0x58] sm:$0xf] %vm2417_vm12, %v2366_v5  ;;  %v3582_v28 = vpop.f32.mrf.mxu2 }
 0x2f5   : > { %v3228_v6 = vpop.permute.xlu1 %3227 }
 0x2f6   : > { %3320 = vst.msk [vmem:[#allocation2 + $0x10] sm:$0xf] %vm3315_vm15, %v3228_v6  ;;  %v2909_v7 = vpop.permute.xlu0 %2908  ;;  %v2384_v8 = vpop.permute.xlu2 %2383 }
 0x2f7   : > { %2992 = vst.msk [vmem:[#allocation2 + $0x34] sm:$0xf] %vm2978_vm14, %v2909_v7 }
 0x2f8   : > { %2449 = vst.msk [vmem:[#allocation2 + $0x7c] sm:$0xf] %vm2417_vm12, %v2384_v8 }
 0x2f9   : > { %v6770_v33 = vpop.f32.mrf.mxu2 }
 0x2fa   : > { %v3602_v27 = vpop.f32.mrf.mxu3 }
 0x2fd   : > { %v3246_v9 = vpop.permute.xlu1 %3245  ;;  %v5100_v10 = vld [vmem:[#allocation2 + $0x10] sm:$0xff] }
 0x2fe   : > { %3329 = vst.msk [vmem:[#allocation2 + $0x34] sm:$0xf] %vm3315_vm15, %v3246_v9  ;;  %v3244_v11 = vpop.permute.xlu0 %3243  ;;  %5079 = vmatmul.msk.bf16.gmra.mxu0 %vm3480_vm0, %v5100_v10  ;;  %v2943_v12 = vpop.permute.xlu2 %2942 }
 0x2ff   : > { %3328 = vst.msk [vmem:[#allocation2 + $0x30] sm:$0xf] %vm3315_vm15, %v3244_v11 }
 0x302   : > { %v6768_v36 = vpop.f32.mrf.mxu3 }
 0x305   : > { %v2382_v13 = vpop.permute.xlu1 %2381 }
 0x306   : > { %2448 = vst.msk [vmem:[#allocation2 + $0x78] sm:$0xf] %vm2417_vm12, %v2382_v13  ;;  %v2368_v14 = vpop.permute.xlu0 %2367  ;;  %v5104_v15 = vld [vmem:[#allocation2 + $0x30] sm:$0xff]  ;;  %v3266_v16 = vpop.permute.xlu2 %3265 }
 0x307   : > { %2441 = vst.msk [vmem:[#allocation2 + $0x5c] sm:$0xf] %vm2417_vm12, %v2368_v14  ;;  %5083 = vmatmul.msk.bf16.gmra.mxu1 %vm3480_vm0, %v5104_v15 }
 0x308   : > { %3009 = vst.msk [vmem:[#allocation2 + $0x78] sm:$0xf] %vm2978_vm14, %v2943_v12 }
 0x30b   : > { %v6787_v12 = vpop.f32.mrf.mxu1 }
 0x30c   : > { %v6774_v40 = vpop.f32.mrf.mxu0 }
 0x30d   : > { %v2929_v17 = vpop.permute.xlu1 %2928 }
 0x30e   : > { %3002 = vst.msk [vmem:[#allocation2 + $0x5c] sm:$0xf] %vm2978_vm14, %v2929_v17  ;;  %v2927_v18 = vpop.permute.xlu0 %2926  ;;  %v2336_v19 = vpop.permute.xlu2 %2335 }
 0x30f   : > { %3001 = vst.msk [vmem:[#allocation2 + $0x58] sm:$0xf] %vm2978_vm14, %v2927_v18 }
 0x310   : > { %3339 = vst.msk [vmem:[#allocation2 + $0x5c] sm:$0xf] %vm3315_vm15, %v3266_v16 }
 0x311   : > { %2425 = vst.msk [vmem:[#allocation2 + $0x1c] sm:$0xf] %vm2417_vm12, %v2336_v19 }
 0x314   : > { %v6789_v17 = vpop.f32.mrf.mxu0 }
 0x315   : > { %v3264_v20 = vpop.permute.xlu1 %3263 }
 0x316   : > { %3338 = vst.msk [vmem:[#allocation2 + $0x58] sm:$0xf] %vm3315_vm15, %v3264_v20  ;;  %v2945_v21 = vpop.permute.xlu0 %2944  ;;  %v2895_v22 = vpop.permute.xlu2 %2894 }
 0x317   : > { %3010 = vst.msk [vmem:[#allocation2 + $0x7c] sm:$0xf] %vm2978_vm14, %v2945_v21 }
 0x318   : > { %2985 = vst.msk [vmem:[#allocation2 + $0x18] sm:$0xf] %vm2978_vm14, %v2895_v22 }
 0x31d   : > { %v3282_v23 = vpop.permute.xlu1 %3281  ;;  %v5109_v24 = vld [vmem:[#allocation2 + $0x58] sm:$0xff] }
 0x31e   : > { %3347 = vst.msk [vmem:[#allocation2 + $0x7c] sm:$0xf] %vm3315_vm15, %v3282_v23  ;;  %v3280_v26 = vpop.permute.xlu0 %3279  ;;  %5088 = vmatmul.msk.bf16.gmra.mxu2 %vm3480_vm0, %v5109_v24  ;;  %v2913_v31 = vpop.permute.xlu2 %2912 }
 0x31f   : > { %3346 = vst.msk [vmem:[#allocation2 + $0x78] sm:$0xf] %vm3315_vm15, %v3280_v26 }
 0x325   : > { %v2352_v29 = vpop.permute.xlu1 %2351 }
 0x326   : > { %2433 = vst.msk [vmem:[#allocation2 + $0x3c] sm:$0xf] %vm2417_vm12, %v2352_v29  ;;  %v2350_v32 = vpop.permute.xlu0 %2349  ;;  %v5113_v34 = vld [vmem:[#allocation2 + $0x78] sm:$0xff]  ;;  %v3248_v51 = vpop.permute.xlu2 %3247  ;;  %v6794_v29 = vld [vmem:[%s7097_s2] ss:$0 sm:$0xff] }
 0x327   : > { %2432 = vst.msk [vmem:[#allocation2 + $0x38] sm:$0xf] %vm2417_vm12, %v2350_v32  ;;  %5092 = vmatmul.msk.bf16.gmra.mxu3 %vm3480_vm0, %v5113_v34 }
 0x328   : > { %2994 = vst.msk [vmem:[#allocation2 + $0x3c] sm:$0xf] %vm2978_vm14, %v2913_v31 }
 0x32d   : > { %v2911_v37 = vpop.permute.xlu1 %2910 }
 0x32e   : > { %2993 = vst.msk [vmem:[#allocation2 + $0x38] sm:$0xf] %vm2978_vm14, %v2911_v37  ;;  %v2897_v35 = vpop.permute.xlu0 %2896 }
 0x32f   : > { %2986 = vst.msk [vmem:[#allocation2 + $0x1c] sm:$0xf] %vm2978_vm14, %v2897_v35 }
 0x330   : > { %3330 = vst.msk [vmem:[#allocation2 + $0x38] sm:$0xf] %vm3315_vm15, %v3248_v51 }
 0x331   : > { %v3607_v30 = vpop.f32.mrf.mxu3 }
 0x332   : > { %v3587_v38 = vpop.f32.mrf.mxu2  ;;  %v3634_v39 = vmax.f32 %v3602_v27, %v3607_v30 }
 0x333   : > { %v3630_v41 = vmax.f32 %v3582_v28, %v3587_v38 }
 0x334   : > { %v3690_v42 = vrot.slane %v3634_v39, 2  ;;  %v3691_v43 = vrot.slane %v3634_v39, 4  ;;  %v3692_v44 = vrot.slane %v3634_v39, 6  ;;  %v4086_v45 = vsel %vm3529_vm13, %v3634_v39, -inf }
 0x335   : > { %v3234_v46 = vpop.permute.xlu1 %3233  ;;  %v3678_v47 = vrot.slane %v3630_v41, 2  ;;  %v3679_v48 = vrot.slane %v3630_v41, 4  ;;  %v3680_v49 = vrot.slane %v3630_v41, 6  ;;  %v3974_v50 = vsel %vm3529_vm13, %v3630_v41, -inf }
 0x336   : > { %3323 = vst.msk [vmem:[#allocation2 + $0x1c] sm:$0xf] %vm3315_vm15, %v3234_v46  ;;  %v3232_v25 = vpop.permute.xlu0 %3231  ;;  %v3975_v53 = vrot.slane %v3974_v50, 4  ;;  %v4087_v54 = vrot.slane %v4086_v45, 4  ;;  %v4093_v56 = vsel %vm3529_vm13, %v3690_v42, -inf  ;;  %v4100_v57 = vsel %vm3529_vm13, %v3691_v43, -inf }
 0x337   : > { %3322 = vst.msk [vmem:[#allocation2 + $0x18] sm:$0xf] %vm3315_vm15, %v3232_v25  ;;  %v3981_v58 = vsel %vm3529_vm13, %v3678_v47, -inf  ;;  %v3988_v1 = vsel %vm3529_vm13, %v3679_v48, -inf  ;;  %v3995_v59 = vsel %vm3529_vm13, %v3680_v49, -inf  ;;  %v4094_v60 = vrot.slane %v4093_v56, 4 }
 0x338   : > { %v3976_v61 = vmax.f32 %v3974_v50, %v3975_v53  ;;  %v3982_v62 = vrot.slane %v3981_v58, 4  ;;  %v3989_v63 = vrot.slane %v3988_v1, 4  ;;  %v3996_v52 = vrot.slane %v3995_v59, 4 }
 0x339   : > { %v4088_v55 = vmax.f32 %v4086_v45, %v4087_v54  ;;  %v4095_v0 = vmax.f32 %v4093_v56, %v4094_v60  ;;  %v4101_v2 = vrot.slane %v4100_v57, 4  ;;  %v4107_v3 = vsel %vm3529_vm13, %v3692_v44, -inf }
 0x33a   : > { %v3977_v4 = vrot.slane %v3976_v61, 2  ;;  %v3983_v5 = vmax.f32 %v3981_v58, %v3982_v62  ;;  %v3990_v6 = vmax.f32 %v3988_v1, %v3989_v63  ;;  %v3997_v7 = vmax.f32 %v3995_v59, %v3996_v52 }
 0x33b   : > { %v4089_v8 = vrot.slane %v4088_v55, 2  ;;  %v4096_v9 = vrot.slane %v4095_v0, 2  ;;  %v4102_v10 = vmax.f32 %v4100_v57, %v4101_v2  ;;  %v4108_v11 = vrot.slane %v4107_v3, 4 }
 0x33c   : > { %v3978_v13 = vmax.f32 %v3976_v61, %v3977_v4  ;;  %v3984_v14 = vrot.slane %v3983_v5, 2  ;;  %v3991_v15 = vrot.slane %v3990_v6, 2  ;;  %v3998_v16 = vrot.slane %v3997_v7, 2  ;;  %v3589_v61 = vpop.f32.mrf.mxu2 }
 0x33d   : > { %v4090_v18 = vmax.f32 %v4088_v55, %v4089_v8  ;;  %v4097_v19 = vmax.f32 %v4095_v0, %v4096_v9  ;;  %v4103_v20 = vrot.slane %v4102_v10, 2  ;;  %v4109_v21 = vmax.f32 %v4107_v3, %v4108_v11  ;;  %v6805_v0 = vpop.f32.mrf.mxu1 }
 0x33e   : > { %v3250_v22 = vpop.permute.xlu0 %3249  ;;  %v5101_v23 = vld [vmem:[#allocation2 + $0x18] sm:$0xff]  ;;  %v3979_v24 = vrot.slane %v3978_v13, 1  ;;  %v3985_v26 = vmax.f32 %v3983_v5, %v3984_v14  ;;  %v3992_v27 = vmax.f32 %v3990_v6, %v3991_v15  ;;  %v3999_v28 = vmax.f32 %v3997_v7, %v3998_v16 }
 0x33f   : > { %3331 = vst.msk [vmem:[#allocation2 + $0x3c] sm:$0xf] %vm3315_vm15, %v3250_v22  ;;  %v4091_v31 = vrot.slane %v4090_v18, 1  ;;  %v4098_v32 = vrot.slane %v4097_v19, 1  ;;  %v4104_v34 = vmax.f32 %v4102_v10, %v4103_v20  ;;  %v4110_v37 = vrot.slane %v4109_v21, 2  ;;  %5080 = vmatmul.msk.bf16.gmra.mxu0 %vm3480_vm0, %v5101_v23 }
 0x340   : > { %v3980_v35 = vmax.f32 %v3978_v13, %v3979_v24  ;;  %v3986_v30 = vrot.slane %v3985_v26, 1  ;;  %v3993_v38 = vrot.slane %v3992_v27, 1  ;;  %v4000_v39 = vrot.slane %v3999_v28, 1 }
 0x341   : > { %v4092_v41 = vmax.f32 %v4090_v18, %v4091_v31  ;;  %v4099_v42 = vmax.f32 %v4097_v19, %v4098_v32  ;;  %v4105_v43 = vrot.slane %v4104_v34, 1  ;;  %v4111_v44 = vmax.f32 %v4109_v21, %v4110_v37 }
 0x342   : > { %v3987_v45 = vmax.f32 %v3985_v26, %v3986_v30  ;;  %v3994_v46 = vmax.f32 %v3992_v27, %v3993_v38  ;;  %v4001_v47 = vmax.f32 %v3999_v28, %v4000_v39  ;;  %v4234_v48 = vadd.f32 %v6794_v29, %v3980_v35  ;;  %v3609_v39 = vpop.f32.mrf.mxu3 }
 0x343   : > { %v4106_v49 = vmax.f32 %v4104_v34, %v4105_v43  ;;  %v4112_v50 = vrot.slane %v4111_v44, 1  ;;  %v4250_v25 = vadd.f32 %v6794_v29, %v4092_v41  ;;  %v4251_v51 = vadd.f32 %v6794_v29, %v4099_v42 }
 0x344   : > { %v4235_v53 = vadd.f32 %v6794_v29, %v3987_v45  ;;  %v4236_v54 = vadd.f32 %v6794_v29, %v3994_v46  ;;  %v4237_v56 = vadd.f32 %v6794_v29, %v4001_v47  ;;  %v4298_v57 = vmul.f32 0.01, %v4234_v48  ;;  %v3547_v62 = vpop.f32.mrf.mxu0 }
 0x345   : > { %v4113_v58 = vmax.f32 %v4111_v44, %v4112_v50  ;;  %v4252_v1 = vadd.f32 %v6794_v29, %v4106_v49  ;;  %v4314_v59 = vmul.f32 0.01, %v4250_v25  ;;  %v4315_v60 = vmul.f32 0.01, %v4251_v51 }
 0x346   : > { %v4299_v63 = vmul.f32 0.01, %v4235_v53  ;;  %v4300_v52 = vmul.f32 0.01, %v4236_v54  ;;  %v4301_v55 = vmul.f32 0.01, %v4237_v56  ;;  %v3631_v9 = vmax.f32 %v6770_v33, %v3589_v61 }
 0x347   : > { %v4253_v2 = vadd.f32 %v6794_v29, %v4113_v58  ;;  %v4316_v3 = vmul.f32 0.01, %v4252_v1  ;;  %v4379_v4 = vmax.f32 %v4251_v51, %v4315_v60  ;;  %v5105_v5 = vld [vmem:[#allocation2 + $0x38] sm:$0xff]  ;;  %v4378_v8 = vmax.f32 %v4250_v25, %v4314_v59 }
 0x348   : > { %v4363_v6 = vmax.f32 %v4235_v53, %v4299_v63  ;;  %v4364_v7 = vmax.f32 %v4236_v54, %v4300_v52  ;;  %v4365_v10 = vmax.f32 %v4237_v56, %v4301_v55  ;;  %5084 = vmatmul.msk.bf16.gmra.mxu1 %vm3480_vm0, %v5105_v5  ;;  %v4362_v15 = vmax.f32 %v4234_v48, %v4298_v57 }
 0x349   : > { %v4317_v11 = vmul.f32 0.01, %v4253_v2  ;;  %v4380_v13 = vmax.f32 %v4252_v1, %v4316_v3  ;;  %v4549_v14 = vrot.slane %v4379_v4, 7  ;;  %v3681_v19 = vrot.slane %v3631_v9, 2 }
 0x34a   : > { %v4521_v16 = vrot.slane %v4363_v6, 7  ;;  %v4523_v18 = vrot.slane %v4364_v7, 6  ;;  %v3682_v23 = vrot.slane %v3631_v9, 4  ;;  %v3683_v26 = vrot.slane %v3631_v9, 6 }
 0x34b   : > { %v4381_v20 = vmax.f32 %v4253_v2, %v4317_v11  ;;  %v4550_v21 = vsel %vm4459_vm1, %v4549_v14, %v4378_v8  ;;  %v4551_v22 = vrot.slane %v4380_v13, 6  ;;  %v4002_v33 = vsel %vm3529_vm13, %v3631_v9, -inf }
 0x34c   : > { %v4522_v24 = vsel %vm4459_vm1, %v4521_v16, %v4362_v15  ;;  %v4009_v27 = vsel %vm3529_vm13, %v3681_v19, -inf  ;;  %v4525_v31 = vrot.slane %v4365_v10, 5  ;;  %v4003_v34 = vrot.slane %v4002_v33, 4  ;;  %v3549_v44 = vpop.f32.mrf.mxu0  ;;  %v3567_v45 = vpop.f32.mrf.mxu1 }
 0x34d   : > { %v4524_v28 = vsel %vm4462_vm2, %v4523_v18, %v4522_v24  ;;  %v4552_v32 = vsel %vm4462_vm2, %v4551_v22, %v4550_v21  ;;  %v4553_v37 = vrot.slane %v4381_v20, 5  ;;  %v4010_v35 = vrot.slane %v4009_v27, 4 }
 0x34e   : > { %v4016_v30 = vsel %vm3529_vm13, %v3682_v23, -inf  ;;  %v4023_v38 = vsel %vm3529_vm13, %v3683_v26, -inf  ;;  %v4004_v41 = vmax.f32 %v4002_v33, %v4003_v34  ;;  %v6819_v46 = vsel %vm4465_vm3, %v4525_v31, %v4524_v28 }
 0x34f   : > { %v4017_v42 = vrot.slane %v4016_v30, 4  ;;  %v4024_v43 = vrot.slane %v4023_v38, 4  ;;  %v6822_v47 = vsel %vm4465_vm3, %v4553_v37, %v4552_v32  ;;  %v4011_v48 = vmax.f32 %v4009_v27, %v4010_v35 }
 0x350   : > { %v4005_v49 = vrot.slane %v4004_v41, 2  ;;  %v3635_v51 = vmax.f32 %v6768_v36, %v3609_v39  ;;  %v6826_v54 = vmax.f32 %v6774_v40, %v3547_v62  ;;  %v6829_v56 = vmax.f32 %v6789_v17, %v3549_v44 }
 0x351   : > { %v4018_v50 = vmax.f32 %v4016_v30, %v4017_v42  ;;  %v4025_v25 = vmax.f32 %v4023_v38, %v4024_v43  ;;  %v4012_v53 = vrot.slane %v4011_v48, 2  ;;  %v6832_v57 = vmax.f32 %v6787_v12, %v3567_v45 }
 0x352   : > { %v4006_v58 = vmax.f32 %v4004_v41, %v4005_v49  ;;  %v3693_v60 = vrot.slane %v3635_v51, 2  ;;  %v3694_v63 = vrot.slane %v3635_v51, 4  ;;  %v3695_v52 = vrot.slane %v3635_v51, 6 }
 0x353   : > { %v4019_v1 = vrot.slane %v4018_v50, 2  ;;  %v4026_v59 = vrot.slane %v4025_v25, 2  ;;  %v4013_v61 = vmax.f32 %v4011_v48, %v4012_v53  ;;  %v4114_v55 = vsel %vm3529_vm13, %v3635_v51, -inf }
 0x354   : > { %v4007_v36 = vrot.slane %v4006_v58, 1  ;;  %v4115_v40 = vrot.slane %v4114_v55, 4  ;;  %v4121_v17 = vsel %vm3529_vm13, %v3693_v60, -inf  ;;  %v4128_v12 = vsel %vm3529_vm13, %v3694_v63, -inf }
 0x355   : > { %v4020_v2 = vmax.f32 %v4018_v50, %v4019_v1  ;;  %v4027_v3 = vmax.f32 %v4025_v25, %v4026_v59  ;;  %v4014_v62 = vrot.slane %v4013_v61, 1  ;;  %v4135_v4 = vsel %vm3529_vm13, %v3695_v52, -inf }
 0x356   : > { %v4008_v5 = vmax.f32 %v4006_v58, %v4007_v36  ;;  %v4116_v8 = vmax.f32 %v4114_v55, %v4115_v40  ;;  %v4122_v10 = vrot.slane %v4121_v17, 4  ;;  %v4129_v11 = vrot.slane %v4128_v12, 4 }
 0x357   : > { %v4021_v6 = vrot.slane %v4020_v2, 1  ;;  %v4028_v7 = vrot.slane %v4027_v3, 1  ;;  %v4015_v9 = vmax.f32 %v4013_v61, %v4014_v62  ;;  %v4136_v13 = vrot.slane %v4135_v4, 4 }
 0x358   : > { %v4238_v16 = vadd.f32 %v6794_v29, %v4008_v5  ;;  %v4117_v18 = vrot.slane %v4116_v8, 2  ;;  %v4123_v20 = vmax.f32 %v4121_v17, %v4122_v10  ;;  %v4130_v21 = vmax.f32 %v4128_v12, %v4129_v11 }
 0x359   : > { %v4022_v14 = vmax.f32 %v4020_v2, %v4021_v6  ;;  %v4029_v15 = vmax.f32 %v4027_v3, %v4028_v7  ;;  %v4239_v19 = vadd.f32 %v6794_v29, %v4015_v9  ;;  %v4137_v22 = vmax.f32 %v4135_v4, %v4136_v13  ;;  %v3569_v7 = vpop.f32.mrf.mxu1 }
 0x35a   : > { %v4302_v26 = vmul.f32 0.01, %v4238_v16  ;;  %v4118_v33 = vmax.f32 %v4116_v8, %v4117_v18  ;;  %v4124_v28 = vrot.slane %v4123_v20, 2  ;;  %v4131_v31 = vrot.slane %v4130_v21, 2 }
 0x35b   : > { %v4240_v23 = vadd.f32 %v6794_v29, %v4022_v14  ;;  %v4241_v24 = vadd.f32 %v6794_v29, %v4029_v15  ;;  %v4303_v27 = vmul.f32 0.01, %v4239_v19  ;;  %v4138_v32 = vrot.slane %v4137_v22, 2 }
 0x35c   : > { %v4366_v35 = vmax.f32 %v4238_v16, %v4302_v26  ;;  %v4119_v30 = vrot.slane %v4118_v33, 1  ;;  %v4125_v39 = vmax.f32 %v4123_v20, %v4124_v28  ;;  %v4132_v41 = vmax.f32 %v4130_v21, %v4131_v31 }
 0x35d   : > { %v4304_v34 = vmul.f32 0.01, %v4240_v23  ;;  %v4305_v37 = vmul.f32 0.01, %v4241_v24  ;;  %v4367_v38 = vmax.f32 %v4239_v19, %v4303_v27  ;;  %v4139_v42 = vmax.f32 %v4137_v22, %v4138_v32 }
 0x35e   : > { %v4527_v45 = vrot.slane %v4366_v35, 4  ;;  %v4120_v48 = vmax.f32 %v4118_v33, %v4119_v30  ;;  %v4126_v50 = vrot.slane %v4125_v39, 1  ;;  %v4133_v25 = vrot.slane %v4132_v41, 1 }
 0x35f   : > { %v4368_v43 = vmax.f32 %v4240_v23, %v4304_v34  ;;  %v4369_v44 = vmax.f32 %v4241_v24, %v4305_v37  ;;  %v4529_v49 = vrot.slane %v4367_v38, 3  ;;  %v4140_v51 = vrot.slane %v4139_v42, 1 }
 0x360   : > { %v4528_v53 = vsel %vm4468_vm4, %v4527_v45, %v6819_v46  ;;  %v4254_v59 = vadd.f32 %v6794_v29, %v4120_v48  ;;  %v4127_v61 = vmax.f32 %v4125_v39, %v4126_v50  ;;  %v4134_v63 = vmax.f32 %v4132_v41, %v4133_v25 }
 0x361   : > { %v4531_v58 = vrot.slane %v4368_v43, 2  ;;  %v4533_v1 = vrot.slane %v4369_v44, 1  ;;  %v4530_v60 = vsel %vm4471_vm5, %v4529_v49, %v4528_v53  ;;  %v4141_v52 = vmax.f32 %v4139_v42, %v4140_v51 }
 0x362   : > { %v4318_v36 = vmul.f32 0.01, %v4254_v59  ;;  %v3654_v2 = vrot.slane %v6826_v54, 2  ;;  %v3655_v3 = vrot.slane %v6826_v54, 4  ;;  %v4255_v46 = vadd.f32 %v6794_v29, %v4127_v61 }
 0x363   : > { %v4532_v55 = vsel %vm4474_vm6, %v4531_v58, %v4530_v60  ;;  %v4256_v62 = vadd.f32 %v6794_v29, %v4134_v63  ;;  %v4257_v17 = vadd.f32 %v6794_v29, %v4141_v52  ;;  %v3656_v4 = vrot.slane %v6826_v54, 6 }
 0x364   : > { %v4534_v40 = vsel %vm4477_vm7, %v4533_v1, %v4532_v55  ;;  %v4382_v12 = vmax.f32 %v4254_v59, %v4318_v36  ;;  %v3750_v5 = vsel %vm3529_vm13, %v6826_v54, -inf  ;;  %v3757_v6 = vsel %vm3529_vm13, %v3654_v2, -inf }
 0x365   : > { %4589 = vst [vmem:[%s6856_s6 + $0x20] sm:$0xff] %v4534_v40  ;;  %v4319_v8 = vmul.f32 0.01, %v4255_v46  ;;  %v4320_v9 = vmul.f32 0.01, %v4256_v62  ;;  %v6864_v11 = vmax.f32 %v6805_v0, %v3569_v7  ;;  %v3751_v14 = vrot.slane %v3750_v5, 4 }
 0x366   : > { %v4321_v10 = vmul.f32 0.01, %v4257_v17  ;;  %v4555_v13 = vrot.slane %v4382_v12, 4  ;;  %v3758_v15 = vrot.slane %v3757_v6, 4  ;;  %v3764_v16 = vsel %vm3529_vm13, %v3655_v3, -inf }
 0x367   : > { %v4383_v18 = vmax.f32 %v4255_v46, %v4319_v8  ;;  %v4384_v19 = vmax.f32 %v4256_v62, %v4320_v9  ;;  %v3765_v21 = vrot.slane %v3764_v16, 4  ;;  %v3752_v22 = vmax.f32 %v3750_v5, %v3751_v14 }
 0x368   : > { %v4385_v20 = vmax.f32 %v4257_v17, %v4321_v10  ;;  %v4556_v54 = vsel %vm4468_vm4, %v4555_v13, %v6822_v47  ;;  %v3759_v23 = vmax.f32 %v3757_v6, %v3758_v15  ;;  %v3771_v24 = vsel %vm3529_vm13, %v3656_v4, -inf }
 0x369   : > { %v4557_v26 = vrot.slane %v4383_v18, 3  ;;  %v4559_v33 = vrot.slane %v4384_v19, 2  ;;  %v3766_v27 = vmax.f32 %v3764_v16, %v3765_v21  ;;  %v3753_v28 = vrot.slane %v3752_v22, 2 }
 0x36a   : > { %v4561_v0 = vrot.slane %v4385_v20, 1  ;;  %v3760_v31 = vrot.slane %v3759_v23, 2  ;;  %v3772_v32 = vrot.slane %v3771_v24, 4  ;;  %v3657_v34 = vrot.slane %v6829_v56, 2 }
 0x36b   : > { %v4558_v37 = vsel %vm4471_vm5, %v4557_v26, %v4556_v54  ;;  %v3767_v35 = vrot.slane %v3766_v27, 2  ;;  %v3658_v30 = vrot.slane %v6829_v56, 4  ;;  %v3659_v47 = vrot.slane %v6829_v56, 6 }
 0x36c   : > { %v4560_v38 = vsel %vm4474_vm6, %v4559_v33, %v4558_v37  ;;  %v3754_v39 = vmax.f32 %v3752_v22, %v3753_v28  ;;  %v3761_v41 = vmax.f32 %v3759_v23, %v3760_v31  ;;  %v3773_v42 = vmax.f32 %v3771_v24, %v3772_v32 }
 0x36d   : > { %v4562_v43 = vsel %vm4477_vm7, %v4561_v0, %v4560_v38  ;;  %v3768_v44 = vmax.f32 %v3766_v27, %v3767_v35  ;;  %v3778_v45 = vsel %vm3529_vm13, %v6829_v56, -inf  ;;  %v3785_v48 = vsel %vm3529_vm13, %v3657_v34, -inf }
 0x36e   : > { %4591 = vst [vmem:[%s6856_s6 + $0x30] sm:$0xff] %v4562_v43  ;;  %v3755_v49 = vrot.slane %v3754_v39, 1  ;;  %v3762_v50 = vrot.slane %v3761_v41, 1  ;;  %v3774_v25 = vrot.slane %v3773_v42, 2  ;;  %v3779_v51 = vrot.slane %v3778_v45, 4 }
 0x36f   : > { %v3769_v53 = vrot.slane %v3768_v44, 1  ;;  %v3786_v58 = vrot.slane %v3785_v48, 4  ;;  %v3792_v1 = vsel %vm3529_vm13, %v3658_v30, -inf  ;;  %v3799_v59 = vsel %vm3529_vm13, %v3659_v47, -inf }
 0x370   : > { %v3756_v60 = vmax.f32 %v3754_v39, %v3755_v49  ;;  %v3763_v61 = vmax.f32 %v3761_v41, %v3762_v50  ;;  %v3775_v63 = vmax.f32 %v3773_v42, %v3774_v25  ;;  %v3780_v52 = vmax.f32 %v3778_v45, %v3779_v51 }
 0x371   : > { %v3770_v55 = vmax.f32 %v3768_v44, %v3769_v53  ;;  %v3787_v36 = vmax.f32 %v3785_v48, %v3786_v58  ;;  %v3793_v56 = vrot.slane %v3792_v1, 4  ;;  %v3800_v2 = vrot.slane %v3799_v59, 4 }
 0x372   : > { %v3776_v3 = vrot.slane %v3775_v63, 1  ;;  %v4202_v40 = vadd.f32 %v6794_v29, %v3756_v60  ;;  %v4203_v46 = vadd.f32 %v6794_v29, %v3763_v61  ;;  %v3781_v62 = vrot.slane %v3780_v52, 2 }
 0x373   : > { %v4204_v17 = vadd.f32 %v6794_v29, %v3770_v55  ;;  %v3788_v12 = vrot.slane %v3787_v36, 2  ;;  %v3794_v4 = vmax.f32 %v3792_v1, %v3793_v56  ;;  %v3801_v5 = vmax.f32 %v3799_v59, %v3800_v2 }
 0x374   : > { %v3777_v6 = vmax.f32 %v3775_v63, %v3776_v3  ;;  %v4266_v7 = vmul.f32 0.01, %v4202_v40  ;;  %v4267_v8 = vmul.f32 0.01, %v4203_v46  ;;  %v3782_v9 = vmax.f32 %v3780_v52, %v3781_v62 }
 0x375   : > { %v4268_v10 = vmul.f32 0.01, %v4204_v17  ;;  %v3789_v13 = vmax.f32 %v3787_v36, %v3788_v12  ;;  %v3795_v14 = vrot.slane %v3794_v4, 2  ;;  %v3802_v15 = vrot.slane %v3801_v5, 2 }
 0x376   : > { %v4205_v16 = vadd.f32 %v6794_v29, %v3777_v6  ;;  %v4330_v18 = vmax.f32 %v4202_v40, %v4266_v7  ;;  %v4331_v19 = vmax.f32 %v4203_v46, %v4267_v8  ;;  %v3783_v20 = vrot.slane %v3782_v9, 1 }
 0x377   : > { %v4332_v21 = vmax.f32 %v4204_v17, %v4268_v10  ;;  %v3790_v54 = vrot.slane %v3789_v13, 1  ;;  %v3796_v22 = vmax.f32 %v3794_v4, %v3795_v14  ;;  %v3803_v23 = vmax.f32 %v3801_v5, %v3802_v15 }
 0x378   : > { %v4269_v24 = vmul.f32 0.01, %v4205_v16  ;;  %v4458_v26 = vrot.slane %v4331_v19, 7  ;;  %v3784_v33 = vmax.f32 %v3782_v9, %v3783_v20  ;;  %v3666_v0 = vrot.slane %v6832_v57, 2 }
 0x379   : > { %v4461_v27 = vrot.slane %v4332_v21, 6  ;;  %v3791_v28 = vmax.f32 %v3789_v13, %v3790_v54  ;;  %v3797_v31 = vrot.slane %v3796_v22, 1  ;;  %v3804_v32 = vrot.slane %v3803_v23, 1 }
 0x37a   : > { %v4333_v34 = vmax.f32 %v4205_v16, %v4269_v24  ;;  %v4460_v37 = vsel %vm4459_vm1, %v4458_v26, %v4330_v18  ;;  %v4206_v35 = vadd.f32 %v6794_v29, %v3784_v33  ;;  %v3667_v30 = vrot.slane %v6832_v57, 4 }
 0x37b   : > { %v4463_v47 = vsel %vm4462_vm2, %v4461_v27, %v4460_v37  ;;  %v3798_v38 = vmax.f32 %v3796_v22, %v3797_v31  ;;  %v3805_v39 = vmax.f32 %v3803_v23, %v3804_v32  ;;  %v4207_v41 = vadd.f32 %v6794_v29, %v3791_v28 }
 0x37c   : > { %v4464_v42 = vrot.slane %v4333_v34, 5  ;;  %v4270_v43 = vmul.f32 0.01, %v4206_v35  ;;  %v3668_v44 = vrot.slane %v6832_v57, 6  ;;  %v3862_v45 = vsel %vm3529_vm13, %v6832_v57, -inf }
 0x37d   : > { %v4208_v48 = vadd.f32 %v6794_v29, %v3798_v38  ;;  %v4209_v49 = vadd.f32 %v6794_v29, %v3805_v39  ;;  %v4271_v50 = vmul.f32 0.01, %v4207_v41  ;;  %v3863_v25 = vrot.slane %v3862_v45, 4 }
 0x37e   : > { %v4466_v51 = vsel %vm4465_vm3, %v4464_v42, %v4463_v47  ;;  %v4334_v53 = vmax.f32 %v4206_v35, %v4270_v43  ;;  %v3869_v58 = vsel %vm3529_vm13, %v3666_v0, -inf  ;;  %v3876_v1 = vsel %vm3529_vm13, %v3667_v30, -inf }
 0x37f   : > { %v4272_v59 = vmul.f32 0.01, %v4208_v48  ;;  %v4273_v60 = vmul.f32 0.01, %v4209_v49  ;;  %v4335_v61 = vmax.f32 %v4207_v41, %v4271_v50  ;;  %v3864_v63 = vmax.f32 %v3862_v45, %v3863_v25 }
 0x380   : > { %v4467_v52 = vrot.slane %v4334_v53, 4  ;;  %v3870_v55 = vrot.slane %v3869_v58, 4  ;;  %v3877_v57 = vrot.slane %v3876_v1, 4  ;;  %v3883_v36 = vsel %vm3529_vm13, %v3668_v44, -inf }
 0x381   : > { %v4336_v56 = vmax.f32 %v4208_v48, %v4272_v59  ;;  %v4337_v2 = vmax.f32 %v4209_v49, %v4273_v60  ;;  %v4470_v3 = vrot.slane %v4335_v61, 3  ;;  %v3865_v40 = vrot.slane %v3864_v63, 2 }
 0x382   : > { %v4469_v46 = vsel %vm4468_vm4, %v4467_v52, %v4466_v51  ;;  %v3871_v62 = vmax.f32 %v3869_v58, %v3870_v55  ;;  %v3878_v17 = vmax.f32 %v3876_v1, %v3877_v57  ;;  %v3884_v12 = vrot.slane %v3883_v36, 4  ;;  %v3592_v1 = vpop.f32.mrf.mxu2 }
 0x383   : > { %v4472_v4 = vsel %vm4471_vm5, %v4470_v3, %v4469_v46  ;;  %v4473_v5 = vrot.slane %v4336_v56, 2  ;;  %v4476_v6 = vrot.slane %v4337_v2, 1  ;;  %v3866_v7 = vmax.f32 %v3864_v63, %v3865_v40 }
 0x384   : > { %v3872_v8 = vrot.slane %v3871_v62, 2  ;;  %v3879_v9 = vrot.slane %v3878_v17, 2  ;;  %v3885_v10 = vmax.f32 %v3883_v36, %v3884_v12  ;;  %v3669_v13 = vrot.slane %v6864_v11, 2 }
 0x385   : > { %v4475_v14 = vsel %vm4474_vm6, %v4473_v5, %v4472_v4  ;;  %v3867_v15 = vrot.slane %v3866_v7, 1  ;;  %v3670_v16 = vrot.slane %v6864_v11, 4  ;;  %v3671_v18 = vrot.slane %v6864_v11, 6 }
 0x386   : > { %v4478_v19 = vsel %vm4477_vm7, %v4476_v6, %v4475_v14  ;;  %v3873_v20 = vmax.f32 %v3871_v62, %v3872_v8  ;;  %v3880_v21 = vmax.f32 %v3878_v17, %v3879_v9  ;;  %v3886_v54 = vrot.slane %v3885_v10, 2 }
 0x387   : > { %4585 = vst [vmem:[%s6856_s6] sm:$0xff] %v4478_v19  ;;  %v3868_v22 = vmax.f32 %v3866_v7, %v3867_v15  ;;  %v3890_v23 = vsel %vm3529_vm13, %v6864_v11, -inf  ;;  %v3897_v24 = vsel %vm3529_vm13, %v3669_v13, -inf  ;;  %v3904_v26 = vsel %vm3529_vm13, %v3670_v16, -inf }
 0x388   : > { %v3874_v33 = vrot.slane %v3873_v20, 1  ;;  %v3881_v0 = vrot.slane %v3880_v21, 1  ;;  %v3887_v27 = vmax.f32 %v3885_v10, %v3886_v54  ;;  %v3891_v28 = vrot.slane %v3890_v23, 4 }
 0x389   : > { %v3898_v31 = vrot.slane %v3897_v24, 4  ;;  %v3905_v32 = vrot.slane %v3904_v26, 4  ;;  %v3911_v34 = vsel %vm3529_vm13, %v3671_v18, -inf  ;;  %v4218_v38 = vadd.f32 %v6794_v29, %v3868_v22 }
 0x38a   : > { %v3875_v37 = vmax.f32 %v3873_v20, %v3874_v33  ;;  %v3882_v35 = vmax.f32 %v3880_v21, %v3881_v0  ;;  %v3888_v30 = vrot.slane %v3887_v27, 1  ;;  %v3892_v47 = vmax.f32 %v3890_v23, %v3891_v28  ;;  %v3594_v21 = vpop.f32.mrf.mxu2 }
 0x38b   : > { %v3899_v39 = vmax.f32 %v3897_v24, %v3898_v31  ;;  %v3906_v11 = vmax.f32 %v3904_v26, %v3905_v32  ;;  %v3912_v41 = vrot.slane %v3911_v34, 4  ;;  %v4282_v59 = vmul.f32 0.01, %v4218_v38 }
 0x38c   : > { %v3889_v42 = vmax.f32 %v3887_v27, %v3888_v30  ;;  %v4219_v43 = vadd.f32 %v6794_v29, %v3875_v37  ;;  %v4220_v44 = vadd.f32 %v6794_v29, %v3882_v35  ;;  %v3893_v45 = vrot.slane %v3892_v47, 2  ;;  %v6928_v35 = vpop.f32.mrf.mxu3 }
 0x38d   : > { %v3900_v48 = vrot.slane %v3899_v39, 2  ;;  %v3907_v49 = vrot.slane %v3906_v11, 2  ;;  %v3913_v50 = vmax.f32 %v3911_v34, %v3912_v41  ;;  %v4346_v62 = vmax.f32 %v4218_v38, %v4282_v59 }
 0x38e   : > { %v4221_v25 = vadd.f32 %v6794_v29, %v3889_v42  ;;  %v4283_v51 = vmul.f32 0.01, %v4219_v43  ;;  %v4284_v53 = vmul.f32 0.01, %v4220_v44  ;;  %v3894_v58 = vmax.f32 %v3892_v47, %v3893_v45 }
 0x38f   : > { %v3901_v60 = vmax.f32 %v3899_v39, %v3900_v48  ;;  %v3908_v61 = vmax.f32 %v3906_v11, %v3907_v49  ;;  %v3914_v63 = vrot.slane %v3913_v50, 2 }
 0x390   : > { %v4285_v52 = vmul.f32 0.01, %v4221_v25  ;;  %v4347_v55 = vmax.f32 %v4219_v43, %v4283_v51  ;;  %v4348_v57 = vmax.f32 %v4220_v44, %v4284_v53  ;;  %v3895_v36 = vrot.slane %v3894_v58, 1 }
 0x391   : > { %v3902_v56 = vrot.slane %v3901_v60, 1  ;;  %v3909_v2 = vrot.slane %v3908_v61, 1  ;;  %v3915_v3 = vmax.f32 %v3913_v50, %v3914_v63 }
 0x392   : > { %v4493_v40 = vrot.slane %v4347_v55, 7  ;;  %v3896_v46 = vmax.f32 %v3894_v58, %v3895_v36  ;;  %v4349_v5 = vmax.f32 %v4221_v25, %v4285_v52  ;;  %v4495_v6 = vrot.slane %v4348_v57, 6 }
 0x393   : > { %v3903_v17 = vmax.f32 %v3901_v60, %v3902_v56  ;;  %v3910_v12 = vmax.f32 %v3908_v61, %v3909_v2  ;;  %v3916_v4 = vrot.slane %v3915_v3, 1 }
 0x394   : > { %v4222_v7 = vadd.f32 %v6794_v29, %v3896_v46  ;;  %v4494_v8 = vsel %vm4459_vm1, %v4493_v40, %v4346_v62  ;;  %v4497_v54 = vrot.slane %v4349_v5, 5  ;;  %v6936_v53 = vpop.f32.mrf.mxu3 }
 0x395   : > { %v3917_v9 = vmax.f32 %v3915_v3, %v3916_v4  ;;  %v4223_v10 = vadd.f32 %v6794_v29, %v3903_v17  ;;  %v4224_v13 = vadd.f32 %v6794_v29, %v3910_v12  ;;  %v4496_v19 = vsel %vm4462_vm2, %v4495_v6, %v4494_v8 }
 0x396   : > { %v4286_v14 = vmul.f32 0.01, %v4222_v7  ;;  %v4498_v33 = vsel %vm4465_vm3, %v4497_v54, %v4496_v19 }
 0x397   : > { %v4225_v15 = vadd.f32 %v6794_v29, %v3917_v9  ;;  %v4287_v16 = vmul.f32 0.01, %v4223_v10  ;;  %v4288_v18 = vmul.f32 0.01, %v4224_v13 }
 0x398   : > { %v4350_v20 = vmax.f32 %v4222_v7, %v4286_v14 }
 0x399   : > { %v4289_v22 = vmul.f32 0.01, %v4225_v15  ;;  %v4351_v23 = vmax.f32 %v4223_v10, %v4287_v16  ;;  %v4352_v24 = vmax.f32 %v4224_v13, %v4288_v18 }
 0x39a   : > { %v4499_v26 = vrot.slane %v4350_v20, 4 }
 0x39b   : > { %v4353_v0 = vmax.f32 %v4225_v15, %v4289_v22  ;;  %v4501_v27 = vrot.slane %v4351_v23, 3  ;;  %v4503_v28 = vrot.slane %v4352_v24, 2 }
 0x39c   : > { %v4500_v31 = vsel %vm4468_vm4, %v4499_v26, %v4498_v33 }
 0x39d   : > { %v4502_v32 = vsel %vm4471_vm5, %v4501_v27, %v4500_v31  ;;  %v4505_v34 = vrot.slane %v4353_v0, 1 }
 0x39e   : > { %v4504_v37 = vsel %vm4474_vm6, %v4503_v28, %v4502_v32 }
 0x39f   : > { %v4506_v30 = vsel %vm4477_vm7, %v4505_v34, %v4504_v37 }
 0x3a0   : > { %4587 = vst [vmem:[%s6856_s6 + $0x10] sm:$0xff] %v4506_v30 }
 0x3a1   : > { %v3597_v47 = vpop.f32.mrf.mxu2 }
 0x3a2   : > { %v3632_v38 = vmax.f32 %v3592_v1, %v3597_v47 }
 0x3a4   : > { %v3684_v39 = vrot.slane %v3632_v38, 2  ;;  %v3685_v11 = vrot.slane %v3632_v38, 4  ;;  %v3686_v41 = vrot.slane %v3632_v38, 6  ;;  %v4030_v42 = vsel %vm3529_vm13, %v3632_v38, -inf }
 0x3a5   : > { %v4031_v43 = vrot.slane %v4030_v42, 4 }
 0x3a6   : > { %v4037_v44 = vsel %vm3529_vm13, %v3684_v39, -inf  ;;  %v4044_v45 = vsel %vm3529_vm13, %v3685_v11, -inf  ;;  %v4051_v48 = vsel %vm3529_vm13, %v3686_v41, -inf }
 0x3a7   : > { %v4032_v49 = vmax.f32 %v4030_v42, %v4031_v43  ;;  %v4038_v50 = vrot.slane %v4037_v44, 4  ;;  %v4045_v25 = vrot.slane %v4044_v45, 4  ;;  %v4052_v51 = vrot.slane %v4051_v48, 4 }
 0x3a9   : > { %v4033_v58 = vrot.slane %v4032_v49, 2  ;;  %v4039_v1 = vmax.f32 %v4037_v44, %v4038_v50  ;;  %v4046_v59 = vmax.f32 %v4044_v45, %v4045_v25  ;;  %v4053_v60 = vmax.f32 %v4051_v48, %v4052_v51  ;;  %v3599_v61 = vpop.f32.mrf.mxu2 }
 0x3aa   : > { %v3633_v63 = vmax.f32 %v3594_v21, %v3599_v61  ;;  %v3617_v22 = vpop.f32.mrf.mxu3 }
 0x3ab   : > { %v4034_v52 = vmax.f32 %v4032_v49, %v4033_v58  ;;  %v4040_v55 = vrot.slane %v4039_v1, 2  ;;  %v4047_v57 = vrot.slane %v4046_v59, 2  ;;  %v4054_v36 = vrot.slane %v4053_v60, 2 }
 0x3ac   : > { %v3687_v56 = vrot.slane %v3633_v63, 2  ;;  %v3688_v2 = vrot.slane %v3633_v63, 4  ;;  %v3689_v3 = vrot.slane %v3633_v63, 6  ;;  %v4058_v40 = vsel %vm3529_vm13, %v3633_v63, -inf }
 0x3ad   : > { %v4035_v46 = vrot.slane %v4034_v52, 1  ;;  %v4041_v62 = vmax.f32 %v4039_v1, %v4040_v55  ;;  %v4048_v17 = vmax.f32 %v4046_v59, %v4047_v57  ;;  %v4055_v12 = vmax.f32 %v4053_v60, %v4054_v36 }
 0x3ae   : > { %v4059_v4 = vrot.slane %v4058_v40, 4  ;;  %v4065_v5 = vsel %vm3529_vm13, %v3687_v56, -inf  ;;  %v4072_v6 = vsel %vm3529_vm13, %v3688_v2, -inf  ;;  %v4079_v7 = vsel %vm3529_vm13, %v3689_v3, -inf }
 0x3af   : > { %v4036_v8 = vmax.f32 %v4034_v52, %v4035_v46  ;;  %v4042_v9 = vrot.slane %v4041_v62, 1  ;;  %v4049_v10 = vrot.slane %v4048_v17, 1  ;;  %v4056_v13 = vrot.slane %v4055_v12, 1  ;;  %v6947_v52 = vpop.f32.mrf.mxu0 }
 0x3b0   : > { %v4060_v14 = vmax.f32 %v4058_v40, %v4059_v4  ;;  %v4066_v15 = vrot.slane %v4065_v5, 4  ;;  %v4073_v16 = vrot.slane %v4072_v6, 4  ;;  %v4080_v18 = vrot.slane %v4079_v7, 4 }
 0x3b1   : > { %v4043_v19 = vmax.f32 %v4041_v62, %v4042_v9  ;;  %v4050_v20 = vmax.f32 %v4048_v17, %v4049_v10  ;;  %v4057_v21 = vmax.f32 %v4055_v12, %v4056_v13  ;;  %v4242_v54 = vadd.f32 %v6794_v29, %v4036_v8 }
 0x3b2   : > { %v4061_v23 = vrot.slane %v4060_v14, 2  ;;  %v4067_v24 = vmax.f32 %v4065_v5, %v4066_v15  ;;  %v4074_v26 = vmax.f32 %v4072_v6, %v4073_v16  ;;  %v4081_v33 = vmax.f32 %v4079_v7, %v4080_v18  ;;  %v3619_v46 = vpop.f32.mrf.mxu3 }
 0x3b3   : > { %v4243_v0 = vadd.f32 %v6794_v29, %v4043_v19  ;;  %v4244_v27 = vadd.f32 %v6794_v29, %v4050_v20  ;;  %v4245_v28 = vadd.f32 %v6794_v29, %v4057_v21  ;;  %v4306_v31 = vmul.f32 0.01, %v4242_v54 }
 0x3b4   : > { %v4062_v32 = vmax.f32 %v4060_v14, %v4061_v23  ;;  %v4068_v34 = vrot.slane %v4067_v24, 2  ;;  %v4075_v37 = vrot.slane %v4074_v26, 2  ;;  %v4082_v30 = vrot.slane %v4081_v33, 2 }
 0x3b5   : > { %v4307_v47 = vmul.f32 0.01, %v4243_v0  ;;  %v4308_v38 = vmul.f32 0.01, %v4244_v27  ;;  %v4309_v39 = vmul.f32 0.01, %v4245_v28  ;;  %v4370_v11 = vmax.f32 %v4242_v54, %v4306_v31 }
 0x3b6   : > { %v4063_v41 = vrot.slane %v4062_v32, 1  ;;  %v4069_v42 = vmax.f32 %v4067_v24, %v4068_v34  ;;  %v4076_v43 = vmax.f32 %v4074_v26, %v4075_v37  ;;  %v4083_v44 = vmax.f32 %v4081_v33, %v4082_v30 }
 0x3b7   : > { %v4371_v45 = vmax.f32 %v4243_v0, %v4307_v47  ;;  %v4372_v48 = vmax.f32 %v4244_v27, %v4308_v38  ;;  %v4373_v49 = vmax.f32 %v4245_v28, %v4309_v39  ;;  %v3636_v50 = vmax.f32 %v6928_v35, %v3617_v22  ;;  %v6962_v37 = vpop.f32.mrf.mxu0 }
 0x3b8   : > { %v4064_v25 = vmax.f32 %v4062_v32, %v4063_v41  ;;  %v4070_v51 = vrot.slane %v4069_v42, 1  ;;  %v4077_v58 = vrot.slane %v4076_v43, 1  ;;  %v4084_v1 = vrot.slane %v4083_v44, 1 }
 0x3b9   : > { %v4535_v59 = vrot.slane %v4371_v45, 7  ;;  %v4537_v60 = vrot.slane %v4372_v48, 6  ;;  %v4539_v61 = vrot.slane %v4373_v49, 5  ;;  %v3696_v63 = vrot.slane %v3636_v50, 2 }
 0x3ba   : > { %v4071_v55 = vmax.f32 %v4069_v42, %v4070_v51  ;;  %v4078_v57 = vmax.f32 %v4076_v43, %v4077_v58  ;;  %v4085_v36 = vmax.f32 %v4083_v44, %v4084_v1  ;;  %v4246_v56 = vadd.f32 %v6794_v29, %v4064_v25 }
 0x3bb   : > { %v4536_v2 = vsel %vm4459_vm1, %v4535_v59, %v4370_v11  ;;  %v3697_v3 = vrot.slane %v3636_v50, 4  ;;  %v3698_v40 = vrot.slane %v3636_v50, 6  ;;  %v4142_v35 = vsel %vm3529_vm13, %v3636_v50, -inf }
 0x3bc   : > { %v4538_v62 = vsel %vm4462_vm2, %v4537_v60, %v4536_v2  ;;  %v4247_v17 = vadd.f32 %v6794_v29, %v4071_v55  ;;  %v4248_v12 = vadd.f32 %v6794_v29, %v4078_v57  ;;  %v4249_v4 = vadd.f32 %v6794_v29, %v4085_v36  ;;  %v6977_v36 = vld [vmem:[%s7097_s2] ss:$0 sm:$0xff] }
 0x3bd   : > { %v4540_v5 = vsel %vm4465_vm3, %v4539_v61, %v4538_v62  ;;  %v4310_v6 = vmul.f32 0.01, %v4246_v56  ;;  %v4143_v7 = vrot.slane %v4142_v35, 4  ;;  %v4149_v8 = vsel %vm3529_vm13, %v3696_v63, -inf  ;;  %v6972_v63 = vpop.f32.mrf.mxu1 }
 0x3be   : > { %v4311_v9 = vmul.f32 0.01, %v4247_v17  ;;  %v4312_v10 = vmul.f32 0.01, %v4248_v12  ;;  %v4313_v13 = vmul.f32 0.01, %v4249_v4  ;;  %v3637_v14 = vmax.f32 %v6936_v53, %v3619_v46 }
 0x3bf   : > { %v4374_v15 = vmax.f32 %v4246_v56, %v4310_v6  ;;  %v4144_v16 = vmax.f32 %v4142_v35, %v4143_v7  ;;  %v4150_v18 = vrot.slane %v4149_v8, 4  ;;  %v4156_v19 = vsel %vm3529_vm13, %v3697_v3, -inf }
 0x3c0   : > { %v4375_v20 = vmax.f32 %v4247_v17, %v4311_v9  ;;  %v4376_v21 = vmax.f32 %v4248_v12, %v4312_v10  ;;  %v4377_v54 = vmax.f32 %v4249_v4, %v4313_v13  ;;  %v4157_v29 = vrot.slane %v4156_v19, 4  ;;  %v3557_v9 = vpop.f32.mrf.mxu0 }
 0x3c1   : > { %v4541_v22 = vrot.slane %v4374_v15, 4  ;;  %v4145_v23 = vrot.slane %v4144_v16, 2  ;;  %v4151_v24 = vmax.f32 %v4149_v8, %v4150_v18  ;;  %v4163_v26 = vsel %vm3529_vm13, %v3698_v40, -inf }
 0x3c2   : > { %v4543_v33 = vrot.slane %v4375_v20, 3  ;;  %v4545_v0 = vrot.slane %v4376_v21, 2  ;;  %v4547_v27 = vrot.slane %v4377_v54, 1  ;;  %v4158_v28 = vmax.f32 %v4156_v19, %v4157_v29 }
 0x3c3   : > { %v4542_v53 = vsel %vm4468_vm4, %v4541_v22, %v4540_v5  ;;  %v4146_v31 = vmax.f32 %v4144_v16, %v4145_v23  ;;  %v4152_v32 = vrot.slane %v4151_v24, 2  ;;  %v4164_v34 = vrot.slane %v4163_v26, 4 }
 0x3c4   : > { %v4544_v30 = vsel %vm4471_vm5, %v4543_v33, %v4542_v53  ;;  %v4159_v47 = vrot.slane %v4158_v28, 2  ;;  %v3699_v38 = vrot.slane %v3637_v14, 2  ;;  %v3700_v39 = vrot.slane %v3637_v14, 4 }
 0x3c5   : > { %v4546_v11 = vsel %vm4474_vm6, %v4545_v0, %v4544_v30  ;;  %v4147_v41 = vrot.slane %v4146_v31, 1  ;;  %v4153_v42 = vmax.f32 %v4151_v24, %v4152_v32  ;;  %v4165_v43 = vmax.f32 %v4163_v26, %v4164_v34 }
 0x3c6   : > { %v4548_v44 = vsel %vm4477_vm7, %v4547_v27, %v4546_v11  ;;  %v4160_v45 = vmax.f32 %v4158_v28, %v4159_v47  ;;  %v3701_v48 = vrot.slane %v3637_v14, 6  ;;  %v4170_v49 = vsel %vm3529_vm13, %v3637_v14, -inf  ;;  %v6984_v47 = vpop.f32.mrf.mxu1 }
 0x3c7   : > { %4590 = vst [vmem:[%s6856_s6 + $0x28] sm:$0xff] %v4548_v44  ;;  %v4148_v50 = vmax.f32 %v4146_v31, %v4147_v41  ;;  %v4154_v25 = vrot.slane %v4153_v42, 1  ;;  %v4166_v51 = vrot.slane %v4165_v43, 2  ;;  %v4171_v58 = vrot.slane %v4170_v49, 4 }
 0x3c8   : > { %v4161_v1 = vrot.slane %v4160_v45, 1  ;;  %v4177_v59 = vsel %vm3529_vm13, %v3699_v38, -inf  ;;  %v4184_v60 = vsel %vm3529_vm13, %v3700_v39, -inf  ;;  %v4191_v61 = vsel %vm3529_vm13, %v3701_v48, -inf }
 0x3c9   : > { %v4155_v55 = vmax.f32 %v4153_v42, %v4154_v25  ;;  %v4167_v57 = vmax.f32 %v4165_v43, %v4166_v51  ;;  %v4258_v56 = vadd.f32 %v6977_v36, %v4148_v50  ;;  %v4172_v2 = vmax.f32 %v4170_v49, %v4171_v58 }
 0x3ca   : > { %v4162_v3 = vmax.f32 %v4160_v45, %v4161_v1  ;;  %v4178_v40 = vrot.slane %v4177_v59, 4  ;;  %v4185_v35 = vrot.slane %v4184_v60, 4  ;;  %v4192_v46 = vrot.slane %v4191_v61, 4 }
 0x3cb   : > { %v4168_v62 = vrot.slane %v4167_v57, 1  ;;  %v4259_v17 = vadd.f32 %v6977_v36, %v4155_v55  ;;  %v4322_v12 = vmul.f32 0.01, %v4258_v56  ;;  %v4173_v4 = vrot.slane %v4172_v2, 2 }
 0x3cc   : > { %v4260_v5 = vadd.f32 %v6977_v36, %v4162_v3  ;;  %v4179_v6 = vmax.f32 %v4177_v59, %v4178_v40  ;;  %v4186_v7 = vmax.f32 %v4184_v60, %v4185_v35  ;;  %v4193_v8 = vmax.f32 %v4191_v61, %v4192_v46 }
 0x3cd   : > { %v4169_v10 = vmax.f32 %v4167_v57, %v4168_v62  ;;  %v4323_v13 = vmul.f32 0.01, %v4259_v17  ;;  %v4386_v14 = vmax.f32 %v4258_v56, %v4322_v12  ;;  %v4174_v15 = vmax.f32 %v4172_v2, %v4173_v4 }
 0x3ce   : > { %v4324_v16 = vmul.f32 0.01, %v4260_v5  ;;  %v4180_v18 = vrot.slane %v4179_v6, 2  ;;  %v4187_v19 = vrot.slane %v4186_v7, 2  ;;  %v4194_v20 = vrot.slane %v4193_v8, 2 }
 0x3cf   : > { %v4261_v21 = vadd.f32 %v6977_v36, %v4169_v10  ;;  %v4387_v54 = vmax.f32 %v4259_v17, %v4323_v13  ;;  %v4175_v29 = vrot.slane %v4174_v15, 1  ;;  %v3624_v22 = vmax.f32 %v6947_v52, %v3557_v9  ;;  %v3577_v13 = vpop.f32.mrf.mxu1 }
 0x3d0   : > { %v4388_v23 = vmax.f32 %v4260_v5, %v4324_v16  ;;  %v4181_v24 = vmax.f32 %v4179_v6, %v4180_v18  ;;  %v4188_v26 = vmax.f32 %v4186_v7, %v4187_v19  ;;  %v4195_v33 = vmax.f32 %v4193_v8, %v4194_v20  ;;  %v3559_v6 = vpop.f32.mrf.mxu0 }
 0x3d1   : > { %v4325_v0 = vmul.f32 0.01, %v4261_v21  ;;  %v4563_v27 = vrot.slane %v4387_v54, 7  ;;  %v4176_v28 = vmax.f32 %v4174_v15, %v4175_v29  ;;  %v3660_v53 = vrot.slane %v3624_v22, 2 }
 0x3d2   : > { %v4565_v31 = vrot.slane %v4388_v23, 6  ;;  %v4182_v32 = vrot.slane %v4181_v24, 1  ;;  %v4189_v34 = vrot.slane %v4188_v26, 1  ;;  %v4196_v30 = vrot.slane %v4195_v33, 1 }
 0x3d3   : > { %v4389_v38 = vmax.f32 %v4261_v21, %v4325_v0  ;;  %v4564_v39 = vsel %vm4459_vm1, %v4563_v27, %v4386_v14  ;;  %v4262_v11 = vadd.f32 %v6977_v36, %v4176_v28  ;;  %v3661_v52 = vrot.slane %v3624_v22, 4 }
 0x3d4   : > { %v4566_v41 = vsel %vm4462_vm2, %v4565_v31, %v4564_v39  ;;  %v4183_v42 = vmax.f32 %v4181_v24, %v4182_v32  ;;  %v4190_v43 = vmax.f32 %v4188_v26, %v4189_v34  ;;  %v4197_v44 = vmax.f32 %v4195_v33, %v4196_v30 }
 0x3d5   : > { %v4567_v45 = vrot.slane %v4389_v38, 5  ;;  %v4326_v48 = vmul.f32 0.01, %v4262_v11  ;;  %v3662_v49 = vrot.slane %v3624_v22, 6  ;;  %v3806_v50 = vsel %vm3529_vm13, %v3624_v22, -inf }
 0x3d6   : > { %v4263_v25 = vadd.f32 %v6977_v36, %v4183_v42  ;;  %v4264_v51 = vadd.f32 %v6977_v36, %v4190_v43  ;;  %v4265_v58 = vadd.f32 %v6977_v36, %v4197_v44  ;;  %v3807_v1 = vrot.slane %v3806_v50, 4 }
 0x3d7   : > { %v4568_v59 = vsel %vm4465_vm3, %v4567_v45, %v4566_v41  ;;  %v4390_v60 = vmax.f32 %v4262_v11, %v4326_v48  ;;  %v3813_v61 = vsel %vm3529_vm13, %v3660_v53, -inf  ;;  %v3820_v55 = vsel %vm3529_vm13, %v3661_v52, -inf }
 0x3d8   : > { %v4327_v57 = vmul.f32 0.01, %v4263_v25  ;;  %v4328_v56 = vmul.f32 0.01, %v4264_v51  ;;  %v4329_v2 = vmul.f32 0.01, %v4265_v58  ;;  %v3808_v3 = vmax.f32 %v3806_v50, %v3807_v1 }
 0x3d9   : > { %v4569_v40 = vrot.slane %v4390_v60, 4  ;;  %v3814_v35 = vrot.slane %v3813_v61, 4  ;;  %v3821_v46 = vrot.slane %v3820_v55, 4  ;;  %v3827_v62 = vsel %vm3529_vm13, %v3662_v49, -inf }
 0x3da   : > { %v4391_v17 = vmax.f32 %v4263_v25, %v4327_v57  ;;  %v4392_v12 = vmax.f32 %v4264_v51, %v4328_v56  ;;  %v4393_v4 = vmax.f32 %v4265_v58, %v4329_v2  ;;  %v3809_v5 = vrot.slane %v3808_v3, 2 }
 0x3db   : > { %v4570_v7 = vsel %vm4468_vm4, %v4569_v40, %v4568_v59  ;;  %v3815_v8 = vmax.f32 %v3813_v61, %v3814_v35  ;;  %v3822_v9 = vmax.f32 %v3820_v55, %v3821_v46  ;;  %v3828_v10 = vrot.slane %v3827_v62, 4 }
 0x3dc   : > { %v4571_v14 = vrot.slane %v4391_v17, 3  ;;  %v4573_v15 = vrot.slane %v4392_v12, 2  ;;  %v3810_v16 = vmax.f32 %v3808_v3, %v3809_v5  ;;  %v3625_v21 = vmax.f32 %v6962_v37, %v3559_v6 }
 0x3dd   : > { %v3816_v18 = vrot.slane %v3815_v8, 2  ;;  %v3823_v19 = vrot.slane %v3822_v9, 2  ;;  %v3829_v20 = vmax.f32 %v3827_v62, %v3828_v10  ;;  %v4575_v29 = vrot.slane %v4393_v4, 1 }
 0x3de   : > { %v4572_v54 = vsel %vm4471_vm5, %v4571_v14, %v4570_v7  ;;  %v3811_v22 = vrot.slane %v3810_v16, 1  ;;  %v7001_v23 = vmax.f32 %v6972_v63, %v3577_v13  ;;  %v3663_v53 = vrot.slane %v3625_v21, 2 }
 0x3df   : > { %v4574_v24 = vsel %vm4474_vm6, %v4573_v15, %v4572_v54  ;;  %v3817_v26 = vmax.f32 %v3815_v8, %v3816_v18  ;;  %v3824_v33 = vmax.f32 %v3822_v9, %v3823_v19  ;;  %v3830_v0 = vrot.slane %v3829_v20, 2 }
 0x3e0   : > { %v4576_v27 = vsel %vm4477_vm7, %v4575_v29, %v4574_v24  ;;  %v3812_v28 = vmax.f32 %v3810_v16, %v3811_v22  ;;  %v3664_v31 = vrot.slane %v3625_v21, 4  ;;  %v3665_v30 = vrot.slane %v3625_v21, 6 }
 0x3e1   : > { %4592 = vst [vmem:[%s6856_s6 + $0x38] sm:$0xff] %v4576_v27  ;;  %v3818_v32 = vrot.slane %v3817_v26, 1  ;;  %v3825_v37 = vrot.slane %v3824_v33, 1  ;;  %v3831_v34 = vmax.f32 %v3829_v20, %v3830_v0  ;;  %v3834_v63 = vsel %vm3529_vm13, %v3625_v21, -inf }
 0x3e2   : > { %v4210_v38 = vadd.f32 %v6977_v36, %v3812_v28  ;;  %v3841_v39 = vsel %vm3529_vm13, %v3663_v53, -inf  ;;  %v3848_v11 = vsel %vm3529_vm13, %v3664_v31, -inf  ;;  %v3835_v43 = vrot.slane %v3834_v63, 4 }
 0x3e3   : > { %v3819_v52 = vmax.f32 %v3817_v26, %v3818_v32  ;;  %v3826_v41 = vmax.f32 %v3824_v33, %v3825_v37  ;;  %v3832_v42 = vrot.slane %v3831_v34, 1  ;;  %v3842_v45 = vrot.slane %v3841_v39, 4 }
 0x3e4   : > { %v4274_v44 = vmul.f32 0.01, %v4210_v38  ;;  %v3849_v48 = vrot.slane %v3848_v11, 4  ;;  %v3855_v49 = vsel %vm3529_vm13, %v3665_v30, -inf  ;;  %v3836_v58 = vmax.f32 %v3834_v63, %v3835_v43 }
 0x3e5   : > { %v3833_v50 = vmax.f32 %v3831_v34, %v3832_v42  ;;  %v4211_v25 = vadd.f32 %v6977_v36, %v3819_v52  ;;  %v4212_v51 = vadd.f32 %v6977_v36, %v3826_v41  ;;  %v3843_v59 = vmax.f32 %v3841_v39, %v3842_v45 }
 0x3e6   : > { %v4338_v1 = vmax.f32 %v4210_v38, %v4274_v44  ;;  %v3850_v60 = vmax.f32 %v3848_v11, %v3849_v48  ;;  %v3856_v61 = vrot.slane %v3855_v49, 4  ;;  %v3837_v2 = vrot.slane %v3836_v58, 2 }
 0x3e7   : > { %v4213_v55 = vadd.f32 %v6977_v36, %v3833_v50  ;;  %v4275_v57 = vmul.f32 0.01, %v4211_v25  ;;  %v4276_v56 = vmul.f32 0.01, %v4212_v51  ;;  %v3844_v3 = vrot.slane %v3843_v59, 2 }
 0x3e8   : > { %v3851_v40 = vrot.slane %v3850_v60, 2  ;;  %v3857_v35 = vmax.f32 %v3855_v49, %v3856_v61  ;;  %v3672_v46 = vrot.slane %v7001_v23, 2  ;;  %v3838_v4 = vmax.f32 %v3836_v58, %v3837_v2 }
 0x3e9   : > { %v4277_v62 = vmul.f32 0.01, %v4213_v55  ;;  %v4339_v17 = vmax.f32 %v4211_v25, %v4275_v57  ;;  %v4340_v12 = vmax.f32 %v4212_v51, %v4276_v56  ;;  %v3845_v5 = vmax.f32 %v3843_v59, %v3844_v3 }
 0x3ea   : > { %v3852_v6 = vmax.f32 %v3850_v60, %v3851_v40  ;;  %v3858_v7 = vrot.slane %v3857_v35, 2  ;;  %v3673_v8 = vrot.slane %v7001_v23, 4  ;;  %v3839_v14 = vrot.slane %v3838_v4, 1  ;;  %v3579_v60 = vpop.f32.mrf.mxu1 }
 0x3eb   : > { %v4341_v9 = vmax.f32 %v4213_v55, %v4277_v62  ;;  %v4479_v10 = vrot.slane %v4339_v17, 7  ;;  %v4481_v13 = vrot.slane %v4340_v12, 6  ;;  %v3846_v15 = vrot.slane %v3845_v5, 1 }
 0x3ec   : > { %v3853_v16 = vrot.slane %v3852_v6, 1  ;;  %v3859_v18 = vmax.f32 %v3857_v35, %v3858_v7  ;;  %v3674_v19 = vrot.slane %v7001_v23, 6  ;;  %v3840_v54 = vmax.f32 %v3838_v4, %v3839_v14 }
 0x3ed   : > { %v4480_v20 = vsel %vm4459_vm1, %v4479_v10, %v4338_v1  ;;  %v4483_v21 = vrot.slane %v4341_v9, 5  ;;  %v3918_v29 = vsel %vm3529_vm13, %v7001_v23, -inf  ;;  %v3847_v24 = vmax.f32 %v3845_v5, %v3846_v15 }
 0x3ee   : > { %v4482_v22 = vsel %vm4462_vm2, %v4481_v13, %v4480_v20  ;;  %v3854_v26 = vmax.f32 %v3852_v6, %v3853_v16  ;;  %v3860_v33 = vrot.slane %v3859_v18, 1  ;;  %v4214_v27 = vadd.f32 %v6977_v36, %v3840_v54 }
 0x3ef   : > { %v4484_v0 = vsel %vm4465_vm3, %v4483_v21, %v4482_v22  ;;  %v3919_v28 = vrot.slane %v3918_v29, 4  ;;  %v3925_v53 = vsel %vm3529_vm13, %v3672_v46, -inf  ;;  %v4215_v32 = vadd.f32 %v6977_v36, %v3847_v24 }
 0x3f0   : > { %v3861_v31 = vmax.f32 %v3859_v18, %v3860_v33  ;;  %v4216_v37 = vadd.f32 %v6977_v36, %v3854_v26  ;;  %v3926_v34 = vrot.slane %v3925_v53, 4  ;;  %v4278_v30 = vmul.f32 0.01, %v4214_v27 }
 0x3f1   : > { %v3920_v23 = vmax.f32 %v3918_v29, %v3919_v28  ;;  %v3932_v38 = vsel %vm3529_vm13, %v3673_v8, -inf  ;;  %v3939_v63 = vsel %vm3529_vm13, %v3674_v19, -inf  ;;  %v4279_v11 = vmul.f32 0.01, %v4215_v32 }
 0x3f2   : > { %v4217_v39 = vadd.f32 %v6977_v36, %v3861_v31  ;;  %v4280_v52 = vmul.f32 0.01, %v4216_v37  ;;  %v3927_v41 = vmax.f32 %v3925_v53, %v3926_v34  ;;  %v4342_v42 = vmax.f32 %v4214_v27, %v4278_v30 }
 0x3f3   : > { %v3921_v43 = vrot.slane %v3920_v23, 2  ;;  %v3933_v44 = vrot.slane %v3932_v38, 4  ;;  %v3940_v45 = vrot.slane %v3939_v63, 4  ;;  %v4343_v49 = vmax.f32 %v4215_v32, %v4279_v11 }
 0x3f4   : > { %v4281_v48 = vmul.f32 0.01, %v4217_v39  ;;  %v4344_v50 = vmax.f32 %v4216_v37, %v4280_v52  ;;  %v3928_v25 = vrot.slane %v3927_v41, 2  ;;  %v4485_v51 = vrot.slane %v4342_v42, 4 }
 0x3f5   : > { %v3922_v58 = vmax.f32 %v3920_v23, %v3921_v43  ;;  %v3934_v1 = vmax.f32 %v3932_v38, %v3933_v44  ;;  %v3941_v59 = vmax.f32 %v3939_v63, %v3940_v45  ;;  %v4487_v55 = vrot.slane %v4343_v49, 3 }
 0x3f6   : > { %v4345_v61 = vmax.f32 %v4217_v39, %v4281_v48  ;;  %v4489_v57 = vrot.slane %v4344_v50, 2  ;;  %v3929_v56 = vmax.f32 %v3927_v41, %v3928_v25  ;;  %v4486_v2 = vsel %vm4468_vm4, %v4485_v51, %v4484_v0 }
 0x3f7   : > { %v3923_v3 = vrot.slane %v3922_v58, 1  ;;  %v3935_v40 = vrot.slane %v3934_v1, 2  ;;  %v3942_v35 = vrot.slane %v3941_v59, 2  ;;  %v4488_v46 = vsel %vm4471_vm5, %v4487_v55, %v4486_v2 }
 0x3f8   : > { %v4491_v62 = vrot.slane %v4345_v61, 1  ;;  %v3930_v17 = vrot.slane %v3929_v56, 1  ;;  %v3629_v12 = vmax.f32 %v6984_v47, %v3579_v60  ;;  %v4490_v4 = vsel %vm4474_vm6, %v4489_v57, %v4488_v46 }
 0x3f9   : > { %v3936_v5 = vmax.f32 %v3934_v1, %v3935_v40  ;;  %v3943_v6 = vmax.f32 %v3941_v59, %v3942_v35  ;;  %v3924_v13 = vmax.f32 %v3922_v58, %v3923_v3 }
 0x3fa   : > { %v4492_v7 = vsel %vm4477_vm7, %v4491_v62, %v4490_v4  ;;  %v3931_v8 = vmax.f32 %v3929_v56, %v3930_v17  ;;  %v3675_v9 = vrot.slane %v3629_v12, 2  ;;  %v3676_v10 = vrot.slane %v3629_v12, 4 }
 0x3fb   : > { %4586 = vst [vmem:[%s6856_s6 + $0x8] sm:$0xff] %v4492_v7  ;;  %v3937_v14 = vrot.slane %v3936_v5, 1  ;;  %v3944_v15 = vrot.slane %v3943_v6, 1  ;;  %v3677_v16 = vrot.slane %v3629_v12, 6  ;;  %v3946_v19 = vsel %vm3529_vm13, %v3629_v12, -inf }
 0x3fc   : > { %v4227_v18 = vadd.f32 %v6977_v36, %v3931_v8  ;;  %v3953_v47 = vsel %vm3529_vm13, %v3675_v9, -inf  ;;  %v3960_v20 = vsel %vm3529_vm13, %v3676_v10, -inf  ;;  %v3947_v29 = vrot.slane %v3946_v19, 4 }
 0x3fd   : > { %v3938_v21 = vmax.f32 %v3936_v5, %v3937_v14  ;;  %v3945_v54 = vmax.f32 %v3943_v6, %v3944_v15  ;;  %v3954_v24 = vrot.slane %v3953_v47, 4  ;;  %v3961_v26 = vrot.slane %v3960_v20, 4 }
 0x3fe   : > { %v4291_v22 = vmul.f32 0.01, %v4227_v18  ;;  %v3967_v33 = vsel %vm3529_vm13, %v3677_v16, -inf  ;;  %v3948_v27 = vmax.f32 %v3946_v19, %v3947_v29  ;;  %v4226_v28 = vadd.f32 %v6977_v36, %v3924_v13 }
 0x3ff   : > { %v4228_v0 = vadd.f32 %v6977_v36, %v3938_v21  ;;  %v3955_v53 = vmax.f32 %v3953_v47, %v3954_v24  ;;  %v3962_v31 = vmax.f32 %v3960_v20, %v3961_v26  ;;  %v3968_v32 = vrot.slane %v3967_v33, 4 }
 0x400   : > { %v4229_v37 = vadd.f32 %v6977_v36, %v3945_v54  ;;  %v3949_v30 = vrot.slane %v3948_v27, 2  ;;  %v4355_v23 = vmax.f32 %v4227_v18, %v4291_v22  ;;  %v4290_v52 = vmul.f32 0.01, %v4226_v28 }
 0x401   : > { %v4292_v34 = vmul.f32 0.01, %v4228_v0  ;;  %v3956_v38 = vrot.slane %v3955_v53, 2  ;;  %v3963_v63 = vrot.slane %v3962_v31, 2  ;;  %v3969_v39 = vmax.f32 %v3967_v33, %v3968_v32 }
 0x402   : > { %v3950_v11 = vmax.f32 %v3948_v27, %v3949_v30  ;;  %v4293_v44 = vmul.f32 0.01, %v4229_v37  ;;  %v4507_v49 = vrot.slane %v4355_v23, 7  ;;  %v4354_v1 = vmax.f32 %v4226_v28, %v4290_v52 }
 0x403   : > { %v3957_v41 = vmax.f32 %v3955_v53, %v3956_v38  ;;  %v3964_v42 = vmax.f32 %v3962_v31, %v3963_v63  ;;  %v3970_v43 = vrot.slane %v3969_v39, 2  ;;  %v4356_v45 = vmax.f32 %v4228_v0, %v4292_v34 }
 0x404   : > { %v3951_v48 = vrot.slane %v3950_v11, 1  ;;  %v4357_v55 = vmax.f32 %v4229_v37, %v4293_v44  ;;  %v4508_v2 = vsel %vm4459_vm1, %v4507_v49, %v4354_v1 }
 0x405   : > { %v3958_v50 = vrot.slane %v3957_v41, 1  ;;  %v3965_v25 = vrot.slane %v3964_v42, 1  ;;  %v3971_v51 = vmax.f32 %v3969_v39, %v3970_v43  ;;  %v4509_v57 = vrot.slane %v4356_v45, 6 }
 0x406   : > { %v3952_v58 = vmax.f32 %v3950_v11, %v3951_v48  ;;  %v4511_v6 = vrot.slane %v4357_v55, 5 }
 0x407   : > { %v3959_v59 = vmax.f32 %v3957_v41, %v3958_v50  ;;  %v3966_v60 = vmax.f32 %v3964_v42, %v3965_v25  ;;  %v3972_v61 = vrot.slane %v3971_v51, 1  ;;  %v4510_v4 = vsel %vm4462_vm2, %v4509_v57, %v4508_v2 }
 0x408   : > { %v4230_v56 = vadd.f32 %v6977_v36, %v3952_v58  ;;  %v4512_v13 = vsel %vm4465_vm3, %v4511_v6, %v4510_v4 }
 0x409   : > { %v3973_v3 = vmax.f32 %v3971_v51, %v3972_v61  ;;  %v4231_v40 = vadd.f32 %v6977_v36, %v3959_v59  ;;  %v4232_v35 = vadd.f32 %v6977_v36, %v3966_v60 }
 0x40a   : > { %v4294_v46 = vmul.f32 0.01, %v4230_v56 }
 0x40b   : > { %v4233_v62 = vadd.f32 %v6977_v36, %v3973_v3  ;;  %v4295_v17 = vmul.f32 0.01, %v4231_v40  ;;  %v4296_v12 = vmul.f32 0.01, %v4232_v35 }
 0x40c   : > { %v4358_v5 = vmax.f32 %v4230_v56, %v4294_v46 }
 0x40d   : > { %v4297_v7 = vmul.f32 0.01, %v4233_v62  ;;  %v4359_v8 = vmax.f32 %v4231_v40, %v4295_v17  ;;  %v4360_v9 = vmax.f32 %v4232_v35, %v4296_v12 }
 0x40e   : > { %v4513_v10 = vrot.slane %v4358_v5, 4 }
 0x40f   : > { %v4361_v36 = vmax.f32 %v4233_v62, %v4297_v7  ;;  %v4515_v14 = vrot.slane %v4359_v8, 3  ;;  %v4517_v15 = vrot.slane %v4360_v9, 2 }
 0x410   : > { %v4514_v16 = vsel %vm4468_vm4, %v4513_v10, %v4512_v13 }
 0x411   : > { %v4516_v18 = vsel %vm4471_vm5, %v4515_v14, %v4514_v16  ;;  %v4519_v19 = vrot.slane %v4361_v36, 1 }
 0x412   : > { %v4518_v47 = vsel %vm4474_vm6, %v4517_v15, %v4516_v18 }
 0x413   : > { %v4520_v20 = vsel %vm4477_vm7, %v4519_v19, %v4518_v47 }
 0x414   : > { %4588 = vst [vmem:[%s6856_s6 + $0x18] sm:$0xff] %v4520_v20 }
 0x415   : > { %5220 = shalt.err (!%p5217_p5)
}
 0x416   : > { %s5281_s30 = smov 128  }
 0x417   : > { %5127 = dma.vmem_to_hbm [thread:$0]  (%p5342_p4), %s4609_s15, 1024, %s4611_s19, %s4594_s21, %s5281_s30, %s5281_s30, %s5274_s5  }
 0x418 PF: > { %p5133_p6 = scmp.ge.s32.totalorder %s5271_s17, 2  ;;  %s4625_s6 = sand.u32 1, %s5251_s12  }
 0x419   : > { %s4626_s8 = scalar_lea.sflag [#allocation4], %s4625_s6 }
 0x41a   : > { %p5130_p7 = pnand %p5133_p6, %p5349_p8 }
 0x41c   : > { %p5131_p9 = pneg %p5130_p7 }
 0x41e   : > { %5246 = dma.done.wait (%p5131_p9), %s4626_s8, 1024  }
 0x41f   : > { %5248 = vsyncadd (%p5131_p9), %s4626_s8, 4294966272  ;;  %s16_s17 = sadd.s32 1, %s5271_s17   ;;  %s7105_s12 = smov %s5255_s13 }
 0x420   : > { %p13_p10 = scmp.ge.s32.totalorder %s16_s17, 4   ;;  %s7106_s13 = smov %s5259_s14 }
 0x421   : > { %s7107_s14 = smov %s5355_s25  ;;  %s7108_s15 = smov %s5267_s16 }
 0x422   : > { %s7109_s16 = smov %s7111_s20  ;;  %15 = sbr.rel (!%p13_p10) target bundleno = 4 (0x4), region = 70 }
 0x427   :  { %4632 = vsyncpa [#allocation4], 1 }
 0x428   :  { %4634 = vsyncpa [#allocation4 + $0x1], 1 }

</bundles_post_ra>
